<compile_context>
chip_gen: v6e
topology: v6e:2x2x1
jax: 0.10.0
libtpu: 0.0.40
codegen_flags: <defaults>
</compile_context>

<pallas_src>
import functools
import math

import numpy as np
import jax
import jax.numpy as jnp
from jax.experimental import pallas as pl
from jax.experimental.pallas import tpu as pltpu


# ----------------------------------------------------------------------------
# Positional encoding (parameter-like constant, computed host-side with numpy)
# ----------------------------------------------------------------------------
def positionalencoding2d(d_model, height, width):
    """NumPy port of the torch positionalencoding2d.
    d_model = sequence, height = touchpoints, width = embedding_dim."""
    if d_model % 4 != 0:
        raise ValueError(f"d_model must be divisible by 4, got {d_model}")
    pe = np.zeros((d_model, height, width), dtype=np.float32)
    dm = d_model // 2
    div_term = np.exp(np.arange(0.0, dm, 2.0) * -(math.log(10000.0) / dm))
    pos_w = np.arange(0.0, width, dtype=np.float64)[:, None]
    pos_h = np.arange(0.0, height, dtype=np.float64)[:, None]
    pe[0:dm:2, :, :] = np.repeat(np.sin(pos_w * div_term).T[:, None, :], height, axis=1)
    pe[1:dm:2, :, :] = np.repeat(np.cos(pos_w * div_term).T[:, None, :], height, axis=1)
    pe[dm::2, :, :] = np.repeat(np.sin(pos_h * div_term).T[:, :, None], width, axis=2)
    pe[dm + 1::2, :, :] = np.repeat(np.cos(pos_h * div_term).T[:, :, None], width, axis=2)
    return jnp.asarray(pe, dtype=jnp.float32)


# ----------------------------------------------------------------------------
# Pallas kernel: one (r_blk, T, E) row-slab per grid step, everything fused.
# ----------------------------------------------------------------------------
def swan_kernel(gamma_ref, x_ref, pe_ref, wx_ref, w5_ref, vb_ref, bc_ref,
                aw_ref, vlout_ref, *, pe_blocks):
    r_blk, t, e = x_ref.shape
    e2 = 2 * e
    rt = r_blk * t
    mxu_dtype = wx_ref.dtype                           # f32 or bf16 MXU operands

    # Packed bias / small-vector table (f32): one row each, payload at lane 0.
    vb = vb_ref[...]                                   # (7, 128-padded)
    b1 = vb[0:1, :4 * e2]                              # fused head b1    (1, 8E)
    b2 = vb[1:2, :4]                                   # fused head b2    (1, 4)
    w2row = vb[2:3, :4 * e2]                           # concat'd w2 rows (1, 8E)
    b15 = vb[3:4, :e2]                                 # an5 b1           (1, 2E)
    w25 = vb[4:5, :e2]                                 # an5 w2           (1, 2E)
    b25 = vb[5:6, :1]                                  # an5 b2           (1, 1)
    wc = vb[6:7, :e]                                   # Wc               (1, E)

    # ---- x + gamma * pe; pe stays VMEM-resident (constant block index) ------
    gamma = gamma_ref[0, 0]
    if pe_blocks == 1:
        pe3 = pe_ref[...]
    else:
        off = jax.lax.rem(pl.program_id(0), pe_blocks) * r_blk
        pe3 = pe_ref[pl.ds(pl.multiple_of(off, 8), r_blk), :, :]
    x3 = x_ref[...] + gamma * pe3                      # (R, T, E), f32

    # ---- an1..an4 hidden layer: ONE fused MXU matmul (M = R*T, N = 8E) ------
    x2 = x3.reshape(rt, e)
    h = jnp.tanh(jnp.dot(x2.astype(mxu_dtype), wx_ref[...],
                         preferred_element_type=jnp.float32) + b1)   # (RT, 8E)

    # ---- 4 head scores on the VPU (no N=4 MXU matmul): grouped lane reduces -
    hw = h * w2row                                                    # (RT, 8E)
    sc_cols = [jnp.sum(hw[:, j * e2:(j + 1) * e2], axis=-1, keepdims=True)
               for j in range(4)]
    sc = jnp.concatenate(sc_cols, axis=-1) + b2                       # (RT, 4)

    # heads on sublane, touchpoints on lane -> softmax reduce over the lane axis
    sc = jnp.swapaxes(sc.reshape(r_blk, t, 4), 1, 2)                  # (R, 4, T)
    m = jnp.max(sc, axis=-1, keepdims=True)
    p = jnp.exp(sc - m)
    l = jnp.sum(p, axis=-1, keepdims=True)
    a = p * pl.reciprocal(l, approx=True)                             # (R, 4, T)
    aw_ref[...] = a                                                   # lane-dense

    # ---- per-head contexts via a batched contraction (no (R,T,4,E) temp) ----
    ctx = jnp.einsum("rjt,rte->rje", a, x3,
                     preferred_element_type=jnp.float32)              # (R, 4, E)

    # ---- an5: attention over the 4 head outputs -----------------------------
    h5 = jnp.tanh(jnp.dot(ctx.reshape(r_blk * 4, e).astype(mxu_dtype), w5_ref[...],
                          preferred_element_type=jnp.float32) + b15)  # (R*4, 2E)
    h5 = h5.reshape(r_blk, 4, e2)
    sc5 = jnp.sum(h5 * w25, axis=-1) + b25                            # (R, 4)
    m5 = jnp.max(sc5, axis=-1, keepdims=True)
    p5 = jnp.exp(sc5 - m5)
    a5 = p5 / jnp.sum(p5, axis=-1, keepdims=True)                     # exact (tiny)
    ctx5 = jnp.sum(a5[:, :, None] * ctx, axis=1)                      # (R, E)

    # ---- out = sigmoid(relu(Wc ctx5) + bc), packed next to vl in one store --
    z = jnp.sum(ctx5 * wc, axis=-1, keepdims=True)                    # (R, 1)
    out_col = jax.nn.sigmoid(jnp.maximum(z, 0.0) + bc_ref[...])       # (R, 1)
    vlout_ref[...] = jnp.concatenate([a5, out_col], axis=1)           # (R, 5)


# ----------------------------------------------------------------------------
# Wrapper helpers
# ----------------------------------------------------------------------------
def _vmem_limit_bytes():
    # Gen-aware scoped-VMEM budget: v7x has 64 MiB/core, v5e/v6e 128 MiB.
    # Keep ~25% headroom for Mosaic-internal scratch.
    try:
        cap = pltpu.get_tpu_info().vmem_capacity_bytes
        if cap:
            return int(cap) * 3 // 4
    except Exception:
        pass
    return 48 * 1024 * 1024


def _pick_row_block(R, S, T, sublane_mult):
    """Largest row block that divides R, is a multiple of the sublane packing,
    is pe-compatible (divides S or is a multiple of S), and keeps the fused
    matmul M-dim (r_blk*T) near ~512."""
    target = max(sublane_mult, -(-512 // max(T, 1)))
    best = None
    r = sublane_mult
    while r <= R:
        if R % r == 0 and (S % r == 0 or r % S == 0):
            if best is None or abs(r - target) <= abs(best - target):
                best = r
        r += sublane_mult
    return best


# ----------------------------------------------------------------------------
# Wrapper
# ----------------------------------------------------------------------------
def swan_forward(params, x, *, row_block=None, mxu_dtype=jnp.float32,
                 single_buffer_weights=True):
    B, S, T, E = x.shape
    R = B * S
    E2 = 2 * E
    is_bf16 = np.dtype(mxu_dtype) == np.dtype(jnp.bfloat16)
    sub_mult = 16 if is_bf16 else 8                     # bf16 sublane packing

    if row_block is None:
        r_blk = _pick_row_block(R, S, T, sub_mult)
        if r_blk is None:
            raise ValueError(f"cannot pick a row block for R={R}, S={S}")
    else:
        r_blk = row_block
    assert r_blk % sub_mult == 0 and R % r_blk == 0
    assert (r_blk <= S and S % r_blk == 0) or (r_blk % S == 0)

    # pe is tiny; keep it VMEM-resident. Host-tile only when one row block
    # spans several batch elements.
    pe = positionalencoding2d(S, T, E)                  # (S, T, E)
    if r_blk <= S:
        pe_arr, pe_blocks = pe, S // r_blk
    else:
        pe_arr, pe_blocks = jnp.tile(pe, (r_blk // S, 1, 1)), 1

    # ---- fuse / pack parameters (host-side, plain JAX) ----------------------
    Wx = jnp.transpose(params["w1s"], (1, 0, 2)).reshape(E, 4 * E2).astype(mxu_dtype)
    W5 = params["w15"].astype(mxu_dtype)                # (E, 2E)

    Wp = ((4 * E2 + 127) // 128) * 128                  # lane-padded table width

    def _row(v):
        v = jnp.asarray(v, jnp.float32).reshape(-1)
        return jnp.pad(v, (0, Wp - v.shape[0]))[None, :]

    VB = jnp.concatenate([
        _row(params["b1s"]),       # row 0: fused head b1   (8E,)
        _row(params["b2s"]),       # row 1: fused head b2   (4,)
        _row(params["w2s"]),       # row 2: concatenated w2 (8E,)
        _row(params["b15"]),       # row 3: an5 b1          (2E,)
        _row(params["w25"]),       # row 4: an5 w2          (2E,)
        _row(params["b25"]),       # row 5: an5 b2          (1,)
        _row(params["wc"]),        # row 6: Wc              (E,)
    ], axis=0)                                           # (7, Wp), f32

    gamma = params["gamma"].reshape(1, 1).astype(jnp.float32)          # SMEM
    x_flat = x.reshape(R, T, E).astype(jnp.float32)
    bc_col = params["bc"].reshape(R, 1).astype(jnp.float32)

    kernel = functools.partial(swan_kernel, pe_blocks=pe_blocks)

    def _call(single_buffer):
        def resident(arr):
            # constant block index -> fetched once and kept VMEM-resident;
            # optionally single-buffered to halve its VMEM footprint (v7x).
            nd = arr.ndim
            kw = {"pipeline_mode": pl.Buffered(1)} if single_buffer else {}
            return pl.BlockSpec(arr.shape, lambda i, _nd=nd: (0,) * _nd, **kw)

        return pl.pallas_call(
            kernel,
            grid=(R // r_blk,),
            in_specs=[
                pl.BlockSpec(memory_space=pltpu.MemorySpace.SMEM),     # gamma
                pl.BlockSpec((r_blk, T, E), lambda i: (i, 0, 0)),      # x rows
                resident(pe_arr),                                      # pe
                resident(Wx), resident(W5), resident(VB),              # weights
                pl.BlockSpec((r_blk, 1), lambda i: (i, 0)),            # bc column
            ],
            out_specs=(
                pl.BlockSpec((r_blk, 4, T), lambda i: (i, 0, 0)),      # aw packed
                pl.BlockSpec((r_blk, 5), lambda i: (i, 0)),            # [vl | out]
            ),
            out_shape=(
                jax.ShapeDtypeStruct((R, 4, T), jnp.float32),
                jax.ShapeDtypeStruct((R, 5), jnp.float32),
            ),
            compiler_params=pltpu.CompilerParams(
                dimension_semantics=("parallel",),
                vmem_limit_bytes=_vmem_limit_bytes()),
        )(gamma, x_flat, pe_arr, Wx, W5, VB, bc_col)

    try:
        aw_k, vlout_k = _call(single_buffer_weights)
    except Exception:
        if not single_buffer_weights:
            raise
        aw_k, vlout_k = _call(False)    # fall back to default double buffering

    # ---- plain-JAX glue back to the exact PyTorch output shapes -------------
    aw4 = aw_k.reshape(B, S, 4, T)
    aws = tuple(aw4[:, :, j:j + 1, :] for j in range(4))              # (B,S,1,T)
    vl = vlout_k[:, :4].reshape(B, S, 1, 4)
    out = vlout_k[:, 4].reshape(B, S)
    return (out, vl) + aws


# ----------------------------------------------------------------------------
# Deterministic parameter init (same shapes as the torch module)
# ----------------------------------------------------------------------------
def init_params(key, batchsize, sequence, touchpoints, embedding_dim):
    del touchpoints  # attention weights only depend on embedding_dim
    E = embedding_dim
    keys = list(jax.random.split(key, 32))
    kit = iter(keys)

    def xavier(out_f, in_f):
        bound = math.sqrt(6.0 / (in_f + out_f))
        return jax.random.uniform(next(kit), (out_f, in_f), jnp.float32, -bound, bound)

    def lin_bias(out_f, in_f):
        bound = 1.0 / math.sqrt(in_f)
        return jax.random.uniform(next(kit), (out_f,), jnp.float32, -bound, bound)

    w1s, b1s, w2s, b2s = [], [], [], []
    for _ in range(4):                       # an1 .. an4
        w1s.append(xavier(2 * E, E).T)       # stored as (E, 2E)
        b1s.append(lin_bias(2 * E, E))       # (2E,)
        w2s.append(xavier(1, 2 * E)[0])      # (2E,)
        b2s.append(lin_bias(1, 2 * E))       # (1,)
    w15 = xavier(2 * E, E).T                 # an5
    b15 = lin_bias(2 * E, E)[None, :]        # (1, 2E)
    w25 = xavier(1, 2 * E)                   # (1, 2E)
    b25 = lin_bias(1, 2 * E)[None, :]        # (1, 1)
    wc_bound = 1.0 / math.sqrt(E)
    wc = jax.random.uniform(next(kit), (1, E), jnp.float32, -wc_bound, wc_bound)

    return {
        "gamma": jnp.ones((1,), jnp.float32),
        "w1s": jnp.stack(w1s), "b1s": jnp.stack(b1s),
        "w2s": jnp.stack(w2s), "b2s": jnp.stack(b2s),
        "w15": w15, "b15": b15, "w25": w25, "b25": b25,
        "wc": wc,
        "bc": jnp.ones((batchsize, sequence, 1, 1), jnp.float32),
    }


# ----------------------------------------------------------------------------
# Pure-JAX reference (mirrors the torch forward), used only for validation
# ----------------------------------------------------------------------------
def swan_reference(params, x):
    B, S, T, E = x.shape
    pe = positionalencoding2d(S, T, E)
    xi = x + params["gamma"][0] * pe[None]

    def attn(xin, w1, b1, w2, b2):
        h = jnp.tanh(jnp.einsum("bste,ef->bstf", xin, w1) + b1)
        sc = jnp.einsum("bstf,f->bst", h, w2) + b2[0]
        a = jax.nn.softmax(sc, axis=-1)
        ctx = jnp.einsum("bst,bste->bse", a, xin)
        return ctx, a

    ctxs, aws = [], []
    for i in range(4):
        c, a = attn(xi, params["w1s"][i], params["b1s"][i],
                    params["w2s"][i], params["b2s"][i])
        ctxs.append(c)
        aws.append(a[:, :, None, :])                       # (B, S, 1, T)
    xcat = jnp.stack(ctxs, axis=2)                         # (B, S, 4, E)
    c5, a5 = attn(xcat, params["w15"], params["b15"][0],
                  params["w25"][0], params["b25"][0])
    vl = a5[:, :, None, :]                                 # (B, S, 1, 4)
    z = jnp.einsum("bse,e->bs", c5, params["wc"][0])
    out = jax.nn.sigmoid(jnp.maximum(z, 0.0) + params["bc"][:, :, 0, 0])
    return (out, vl) + tuple(aws)


# ----------------------------------------------------------------------------
if __name__ == "__main__":
    # batch=2, sequence=8 (divisible by 4), touchpoints=8, embedding_dim=12
    B, S, T, E = 2, 8, 8, 12
    key = jax.random.PRNGKey(0)
    kx, kp = jax.random.split(key)
    x = jax.random.normal(kx, (B, S, T, E), jnp.float32)
    params = init_params(kp, B, S, T, E)

    refs = swan_reference(params, x)

    # f32-MXU path (exact-parity target, works on all generations)
    outs = jax.block_until_ready(swan_forward(params, x))
    for o, r in zip(outs, refs):
        np.testing.assert_allclose(np.asarray(o), np.asarray(r),
                                   rtol=2e-3, atol=2e-3)

    # bf16-MXU path (v6e/v7x fast path; looser tolerance for bf16 rounding,
    # all softmax / tanh / bias math stays f32)
    outs_bf16 = jax.block_until_ready(
        swan_forward(params, x, mxu_dtype=jnp.bfloat16))
    for o, r in zip(outs_bf16, refs):
        np.testing.assert_allclose(np.asarray(o), np.asarray(r),
                                   rtol=2e-2, atol=2e-2)

    print("KERNEL_OK")
</pallas_src>

<mosaic_0001>
module attributes {stable_mosaic.version = 11 : i64} {
  func.func @swan_kernel(%arg0: i32, %arg1: memref<1x1xf32, #tpu.memory_space<smem>>, %arg2: memref<16x8x12xf32, #tpu.memory_space<vmem>>, %arg3: memref<16x8x12xf32, #tpu.memory_space<vmem>>, %arg4: memref<12x96xf32, #tpu.memory_space<vmem>>, %arg5: memref<12x24xf32, #tpu.memory_space<vmem>>, %arg6: memref<7x128xf32, #tpu.memory_space<vmem>>, %arg7: memref<16x1xf32, #tpu.memory_space<vmem>>, %arg8: memref<16x4x8xf32, #tpu.memory_space<vmem>>, %arg9: memref<16x5xf32, #tpu.memory_space<vmem>>) attributes {dimension_semantics = [#tpu.dimension_semantics<parallel>], iteration_bounds = array<i64: 1>, scalar_prefetch = 0 : i64, scratch_operands = 0 : i64, tpu.core_type = #tpu.core_type<tc>, window_params = [{transform_indices = @transform_0, window_bounds = array<i64: 1, 1>}, {transform_indices = @transform_1, window_bounds = array<i64: 16, 8, 12>}, {pipeline_mode = #tpu.pipeline_mode<synchronous>, transform_indices = @transform_2, window_bounds = array<i64: 16, 8, 12>}, {pipeline_mode = #tpu.pipeline_mode<synchronous>, transform_indices = @transform_3, window_bounds = array<i64: 12, 96>}, {pipeline_mode = #tpu.pipeline_mode<synchronous>, transform_indices = @transform_4, window_bounds = array<i64: 12, 24>}, {pipeline_mode = #tpu.pipeline_mode<synchronous>, transform_indices = @transform_5, window_bounds = array<i64: 7, 128>}, {transform_indices = @transform_6, window_bounds = array<i64: 16, 1>}, {transform_indices = @transform_7, window_bounds = array<i64: 16, 4, 8>}, {transform_indices = @transform_8, window_bounds = array<i64: 16, 5>}]} {
    %c0 = arith.constant 0 : index
    %c0_0 = arith.constant 0 : index
    %0 = vector.load %arg6[%c0, %c0_0] : memref<7x128xf32, #tpu.memory_space<vmem>>, vector<7x128xf32>
    %1 = vector.extract_strided_slice %0 {offsets = [0, 0], sizes = [1, 96], strides = [1, 1]} : vector<7x128xf32> to vector<1x96xf32>
    %2 = vector.extract_strided_slice %0 {offsets = [1, 0], sizes = [1, 4], strides = [1, 1]} : vector<7x128xf32> to vector<1x4xf32>
    %3 = vector.extract_strided_slice %0 {offsets = [2, 0], sizes = [1, 96], strides = [1, 1]} : vector<7x128xf32> to vector<1x96xf32>
    %4 = vector.extract_strided_slice %0 {offsets = [3, 0], sizes = [1, 24], strides = [1, 1]} : vector<7x128xf32> to vector<1x24xf32>
    %5 = vector.extract_strided_slice %0 {offsets = [4, 0], sizes = [1, 24], strides = [1, 1]} : vector<7x128xf32> to vector<1x24xf32>
    %6 = vector.extract_strided_slice %0 {offsets = [5, 0], sizes = [1, 1], strides = [1, 1]} : vector<7x128xf32> to vector<1x1xf32>
    %7 = vector.extract_strided_slice %0 {offsets = [6, 0], sizes = [1, 12], strides = [1, 1]} : vector<7x128xf32> to vector<1x12xf32>
    %c0_1 = arith.constant 0 : index
    %c0_2 = arith.constant 0 : index
    %8 = memref.load %arg1[%c0_1, %c0_2] : memref<1x1xf32, #tpu.memory_space<smem>>
    %c0_3 = arith.constant 0 : index
    %c0_4 = arith.constant 0 : index
    %c0_5 = arith.constant 0 : index
    %9 = vector.load %arg3[%c0_3, %c0_4, %c0_5] : memref<16x8x12xf32, #tpu.memory_space<vmem>>, vector<16x8x12xf32>
    %c0_6 = arith.constant 0 : index
    %c0_7 = arith.constant 0 : index
    %c0_8 = arith.constant 0 : index
    %10 = vector.load %arg2[%c0_6, %c0_7, %c0_8] : memref<16x8x12xf32, #tpu.memory_space<vmem>>, vector<16x8x12xf32>
    %11 = vector.broadcast %8 : f32 to vector<16x8x12xf32>
    %12 = arith.mulf %11, %9 : vector<16x8x12xf32>
    %13 = arith.addf %10, %12 : vector<16x8x12xf32>
    %14 = vector.shape_cast %13 : vector<16x8x12xf32> to vector<128x12xf32>
    %c0_9 = arith.constant 0 : index
    %c0_10 = arith.constant 0 : index
    %15 = vector.load %arg4[%c0_9, %c0_10] : memref<12x96xf32, #tpu.memory_space<vmem>>, vector<12x96xf32>
    %cst = arith.constant dense<0.000000e+00> : vector<128x96xf32>
    %16 = tpu.matmul %14, %15, %cst {dimension_numbers = #tpu.dot_dimension_numbers<[1], [0], [0], [1], [0, 0, 1, 1], [], []>} : vector<128x12xf32>, vector<12x96xf32>, vector<128x96xf32> -> vector<128x96xf32>
    %17 = vector.broadcast %1 : vector<1x96xf32> to vector<128x96xf32>
    %18 = arith.addf %16, %17 : vector<128x96xf32>
    %19 = math.tanh %18 : vector<128x96xf32>
    %20 = vector.broadcast %3 : vector<1x96xf32> to vector<128x96xf32>
    %21 = arith.mulf %19, %20 : vector<128x96xf32>
    %22 = vector.extract_strided_slice %21 {offsets = [0, 0], sizes = [128, 24], strides = [1, 1]} : vector<128x96xf32> to vector<128x24xf32>
    %cst_11 = arith.constant dense<0.000000e+00> : vector<128xf32>
    %23 = vector.multi_reduction <add>, %22, %cst_11 [1] : vector<128x24xf32> to vector<128xf32>
    %24 = vector.shape_cast %23 : vector<128xf32> to vector<128x1xf32>
    %25 = vector.extract_strided_slice %21 {offsets = [0, 24], sizes = [128, 24], strides = [1, 1]} : vector<128x96xf32> to vector<128x24xf32>
    %cst_12 = arith.constant dense<0.000000e+00> : vector<128xf32>
    %26 = vector.multi_reduction <add>, %25, %cst_12 [1] : vector<128x24xf32> to vector<128xf32>
    %27 = vector.shape_cast %26 : vector<128xf32> to vector<128x1xf32>
    %28 = vector.extract_strided_slice %21 {offsets = [0, 48], sizes = [128, 24], strides = [1, 1]} : vector<128x96xf32> to vector<128x24xf32>
    %cst_13 = arith.constant dense<0.000000e+00> : vector<128xf32>
    %29 = vector.multi_reduction <add>, %28, %cst_13 [1] : vector<128x24xf32> to vector<128xf32>
    %30 = vector.shape_cast %29 : vector<128xf32> to vector<128x1xf32>
    %31 = vector.extract_strided_slice %21 {offsets = [0, 72], sizes = [128, 24], strides = [1, 1]} : vector<128x96xf32> to vector<128x24xf32>
    %cst_14 = arith.constant dense<0.000000e+00> : vector<128xf32>
    %32 = vector.multi_reduction <add>, %31, %cst_14 [1] : vector<128x24xf32> to vector<128xf32>
    %33 = vector.shape_cast %32 : vector<128xf32> to vector<128x1xf32>
    %34 = tpu.concatenate %24, %27, %30, %33 in 1 : vector<128x1xf32>, vector<128x1xf32>, vector<128x1xf32>, vector<128x1xf32> -> vector<128x4xf32>
    %35 = vector.broadcast %2 : vector<1x4xf32> to vector<128x4xf32>
    %36 = arith.addf %34, %35 : vector<128x4xf32>
    %37 = vector.shape_cast %36 : vector<128x4xf32> to vector<16x8x4xf32>
    %38 = tpu.transpose %37, [0, 2, 1] : vector<16x8x4xf32> -> vector<16x4x8xf32>
    %cst_15 = arith.constant dense<0xFF800000> : vector<16x4xf32>
    %39 = vector.multi_reduction <maximumf>, %38, %cst_15 [2] : vector<16x4x8xf32> to vector<16x4xf32>
    %40 = vector.shape_cast %39 : vector<16x4xf32> to vector<16x4x1xf32>
    %41 = vector.broadcast %40 : vector<16x4x1xf32> to vector<16x4x8xf32>
    %42 = arith.subf %38, %41 : vector<16x4x8xf32>
    %43 = math.exp %42 : vector<16x4x8xf32>
    %cst_16 = arith.constant dense<0.000000e+00> : vector<16x4xf32>
    %44 = vector.multi_reduction <add>, %43, %cst_16 [2] : vector<16x4x8xf32> to vector<16x4xf32>
    %45 = vector.shape_cast %44 : vector<16x4xf32> to vector<16x4x1xf32>
    %46 = tpu.reciprocal %45 {approx = true} : vector<16x4x1xf32> -> vector<16x4x1xf32>
    %47 = vector.broadcast %46 : vector<16x4x1xf32> to vector<16x4x8xf32>
    %48 = arith.mulf %43, %47 : vector<16x4x8xf32>
    %c0_17 = arith.constant 0 : index
    %c0_18 = arith.constant 0 : index
    %c0_19 = arith.constant 0 : index
    %49 = vector.load %arg8[%c0_17, %c0_18, %c0_19] : memref<16x4x8xf32, #tpu.memory_space<vmem>>, vector<16x4x8xf32>
    tpu.vector_store %arg8[%c0_17, %c0_18, %c0_19], %48 {strides = array<i32>} : memref<16x4x8xf32, #tpu.memory_space<vmem>>, vector<16x4x8xf32>,
    "tpu.trace_start"() <{level = 10 : i32, message = "rjt,rte->rje"}> : () -> ()
    %cst_20 = arith.constant dense<0.000000e+00> : vector<16x4x12xf32>
    %50 = tpu.matmul %48, %13, %cst_20 {dimension_numbers = #tpu.dot_dimension_numbers<[2], [1], [1], [2], [0, 0, 0, 1, 1, 2], [0], [0]>} : vector<16x4x8xf32>, vector<16x8x12xf32>, vector<16x4x12xf32> -> vector<16x4x12xf32>
    "tpu.trace_stop"() : () -> ()
    %51 = vector.shape_cast %50 : vector<16x4x12xf32> to vector<64x12xf32>
    %c0_21 = arith.constant 0 : index
    %c0_22 = arith.constant 0 : index
    %52 = vector.load %arg5[%c0_21, %c0_22] : memref<12x24xf32, #tpu.memory_space<vmem>>, vector<12x24xf32>
    %cst_23 = arith.constant dense<0.000000e+00> : vector<64x24xf32>
    %53 = tpu.matmul %51, %52, %cst_23 {dimension_numbers = #tpu.dot_dimension_numbers<[1], [0], [0], [1], [0, 0, 1, 1], [], []>} : vector<64x12xf32>, vector<12x24xf32>, vector<64x24xf32> -> vector<64x24xf32>
    %54 = vector.broadcast %4 : vector<1x24xf32> to vector<64x24xf32>
    %55 = arith.addf %53, %54 : vector<64x24xf32>
    %56 = math.tanh %55 : vector<64x24xf32>
    %57 = vector.shape_cast %56 : vector<64x24xf32> to vector<16x4x24xf32>
    %58 = vector.shape_cast %5 : vector<1x24xf32> to vector<1x1x24xf32>
    %59 = vector.broadcast %58 : vector<1x1x24xf32> to vector<16x4x24xf32>
    %60 = arith.mulf %57, %59 : vector<16x4x24xf32>
    %cst_24 = arith.constant dense<0.000000e+00> : vector<16x4xf32>
    %61 = vector.multi_reduction <add>, %60, %cst_24 [2] : vector<16x4x24xf32> to vector<16x4xf32>
    %62 = vector.broadcast %6 : vector<1x1xf32> to vector<16x4xf32>
    %63 = arith.addf %61, %62 : vector<16x4xf32>
    %cst_25 = arith.constant dense<0xFF800000> : vector<16xf32>
    %64 = vector.multi_reduction <maximumf>, %63, %cst_25 [1] : vector<16x4xf32> to vector<16xf32>
    %65 = vector.shape_cast %64 : vector<16xf32> to vector<16x1xf32>
    %66 = vector.broadcast %65 : vector<16x1xf32> to vector<16x4xf32>
    %67 = arith.subf %63, %66 : vector<16x4xf32>
    %68 = math.exp %67 : vector<16x4xf32>
    %cst_26 = arith.constant dense<0.000000e+00> : vector<16xf32>
    %69 = vector.multi_reduction <add>, %68, %cst_26 [1] : vector<16x4xf32> to vector<16xf32>
    %70 = vector.shape_cast %69 : vector<16xf32> to vector<16x1xf32>
    %71 = vector.broadcast %70 : vector<16x1xf32> to vector<16x4xf32>
    %72 = arith.divf %68, %71 : vector<16x4xf32>
    %73 = vector.shape_cast %72 : vector<16x4xf32> to vector<16x4x1xf32>
    %74 = vector.broadcast %73 : vector<16x4x1xf32> to vector<16x4x12xf32>
    %75 = arith.mulf %74, %50 : vector<16x4x12xf32>
    %cst_27 = arith.constant dense<0.000000e+00> : vector<16x12xf32>
    %76 = vector.multi_reduction <add>, %75, %cst_27 [1] : vector<16x4x12xf32> to vector<16x12xf32>
    %77 = vector.broadcast %7 : vector<1x12xf32> to vector<16x12xf32>
    %78 = arith.mulf %76, %77 : vector<16x12xf32>
    %cst_28 = arith.constant dense<0.000000e+00> : vector<16xf32>
    %79 = vector.multi_reduction <add>, %78, %cst_28 [1] : vector<16x12xf32> to vector<16xf32>
    %80 = vector.shape_cast %79 : vector<16xf32> to vector<16x1xf32>
    %cst_29 = arith.constant 0.000000e+00 : f32
    %81 = vector.broadcast %cst_29 : f32 to vector<16x1xf32>
    %82 = arith.maximumf %80, %81 : vector<16x1xf32>
    %c0_30 = arith.constant 0 : index
    %c0_31 = arith.constant 0 : index
    %83 = vector.load %arg7[%c0_30, %c0_31] : memref<16x1xf32, #tpu.memory_space<vmem>>, vector<16x1xf32>
    %84 = arith.addf %82, %83 : vector<16x1xf32>
    %85 = arith.negf %84 : vector<16x1xf32>
    %86 = math.exp %85 : vector<16x1xf32>
    %cst_32 = arith.constant 1.000000e+00 : f32
    %87 = vector.broadcast %cst_32 : f32 to vector<16x1xf32>
    %88 = arith.addf %87, %86 : vector<16x1xf32>
    %89 = arith.divf %87, %88 : vector<16x1xf32>
    %90 = tpu.concatenate %72, %89 in 1 : vector<16x4xf32>, vector<16x1xf32> -> vector<16x5xf32>
    %c0_33 = arith.constant 0 : index
    %c0_34 = arith.constant 0 : index
    %91 = vector.load %arg9[%c0_33, %c0_34] : memref<16x5xf32, #tpu.memory_space<vmem>>, vector<16x5xf32>
    tpu.vector_store %arg9[%c0_33, %c0_34], %90 {strides = array<i32>} : memref<16x5xf32, #tpu.memory_space<vmem>>, vector<16x5xf32>,
    return
  }
  func.func @transform_0(%arg0: i32) -> (i32, i32) {
    %c0_i32 = arith.constant 0 : i32
    %c0_i32_0 = arith.constant 0 : i32
    %c0_i32_1 = arith.constant 0 : i32
    return %c0_i32, %c0_i32_0 : i32, i32
  }
  func.func @transform_1(%arg0: i32) -> (i32, i32, i32) {
    %c0_i32 = arith.constant 0 : i32
    %c0_i32_0 = arith.constant 0 : i32
    %c0_i32_1 = arith.constant 0 : i32
    return %arg0, %c0_i32, %c0_i32_0 : i32, i32, i32
  }
  func.func @transform_2(%arg0: i32) -> (i32, i32, i32) {
    %c0_i32 = arith.constant 0 : i32
    %c0_i32_0 = arith.constant 0 : i32
    %c0_i32_1 = arith.constant 0 : i32
    %c0_i32_2 = arith.constant 0 : i32
    return %c0_i32, %c0_i32_0, %c0_i32_1 : i32, i32, i32
  }
  func.func @transform_3(%arg0: i32) -> (i32, i32) {
    %c0_i32 = arith.constant 0 : i32
    %c0_i32_0 = arith.constant 0 : i32
    %c0_i32_1 = arith.constant 0 : i32
    return %c0_i32, %c0_i32_0 : i32, i32
  }
  func.func @transform_4(%arg0: i32) -> (i32, i32) {
    %c0_i32 = arith.constant 0 : i32
    %c0_i32_0 = arith.constant 0 : i32
    %c0_i32_1 = arith.constant 0 : i32
    return %c0_i32, %c0_i32_0 : i32, i32
  }
  func.func @transform_5(%arg0: i32) -> (i32, i32) {
    %c0_i32 = arith.constant 0 : i32
    %c0_i32_0 = arith.constant 0 : i32
    %c0_i32_1 = arith.constant 0 : i32
    return %c0_i32, %c0_i32_0 : i32, i32
  }
  func.func @transform_6(%arg0: i32) -> (i32, i32) {
    %c0_i32 = arith.constant 0 : i32
    %c0_i32_0 = arith.constant 0 : i32
    return %arg0, %c0_i32 : i32, i32
  }
  func.func @transform_7(%arg0: i32) -> (i32, i32, i32) {
    %c0_i32 = arith.constant 0 : i32
    %c0_i32_0 = arith.constant 0 : i32
    %c0_i32_1 = arith.constant 0 : i32
    return %arg0, %c0_i32, %c0_i32_0 : i32, i32, i32
  }
  func.func @transform_8(%arg0: i32) -> (i32, i32) {
    %c0_i32 = arith.constant 0 : i32
    %c0_i32_0 = arith.constant 0 : i32
    return %arg0, %c0_i32 : i32, i32
  }
}

module attributes {stable_mosaic.version = 11 : i64} {
  func.func @swan_kernel(%arg0: i32, %arg1: memref<1x1xf32, #tpu.memory_space<smem>>, %arg2: memref<16x8x12xf32, #tpu.memory_space<vmem>>, %arg3: memref<16x8x12xf32, #tpu.memory_space<vmem>>, %arg4: memref<12x96xf32, #tpu.memory_space<vmem>>, %arg5: memref<12x24xf32, #tpu.memory_space<vmem>>, %arg6: memref<7x128xf32, #tpu.memory_space<vmem>>, %arg7: memref<16x1xf32, #tpu.memory_space<vmem>>, %arg8: memref<16x4x8xf32, #tpu.memory_space<vmem>>, %arg9: memref<16x5xf32, #tpu.memory_space<vmem>>) attributes {dimension_semantics = [#tpu.dimension_semantics<parallel>], iteration_bounds = array<i64: 1>, scalar_prefetch = 0 : i64, scratch_operands = 0 : i64, tpu.core_type = #tpu.core_type<tc>, window_params = [{transform_indices = @transform_0, window_bounds = array<i64: 1, 1>}, {transform_indices = @transform_1, window_bounds = array<i64: 16, 8, 12>}, {pipeline_mode = #tpu.pipeline_mode<synchronous>, transform_indices = @transform_2, window_bounds = array<i64: 16, 8, 12>}, {pipeline_mode = #tpu.pipeline_mode<synchronous>, transform_indices = @transform_3, window_bounds = array<i64: 12, 96>}, {pipeline_mode = #tpu.pipeline_mode<synchronous>, transform_indices = @transform_4, window_bounds = array<i64: 12, 24>}, {pipeline_mode = #tpu.pipeline_mode<synchronous>, transform_indices = @transform_5, window_bounds = array<i64: 7, 128>}, {transform_indices = @transform_6, window_bounds = array<i64: 16, 1>}, {transform_indices = @transform_7, window_bounds = array<i64: 16, 4, 8>}, {transform_indices = @transform_8, window_bounds = array<i64: 16, 5>}]} {
    %c0 = arith.constant 0 : index
    %c0_0 = arith.constant 0 : index
    %0 = vector.load %arg6[%c0, %c0_0] : memref<7x128xf32, #tpu.memory_space<vmem>>, vector<7x128xf32>
    %1 = vector.extract_strided_slice %0 {offsets = [0, 0], sizes = [1, 96], strides = [1, 1]} : vector<7x128xf32> to vector<1x96xf32>
    %2 = vector.extract_strided_slice %0 {offsets = [1, 0], sizes = [1, 4], strides = [1, 1]} : vector<7x128xf32> to vector<1x4xf32>
    %3 = vector.extract_strided_slice %0 {offsets = [2, 0], sizes = [1, 96], strides = [1, 1]} : vector<7x128xf32> to vector<1x96xf32>
    %4 = vector.extract_strided_slice %0 {offsets = [3, 0], sizes = [1, 24], strides = [1, 1]} : vector<7x128xf32> to vector<1x24xf32>
    %5 = vector.extract_strided_slice %0 {offsets = [4, 0], sizes = [1, 24], strides = [1, 1]} : vector<7x128xf32> to vector<1x24xf32>
    %6 = vector.extract_strided_slice %0 {offsets = [5, 0], sizes = [1, 1], strides = [1, 1]} : vector<7x128xf32> to vector<1x1xf32>
    %7 = vector.extract_strided_slice %0 {offsets = [6, 0], sizes = [1, 12], strides = [1, 1]} : vector<7x128xf32> to vector<1x12xf32>
    %c0_1 = arith.constant 0 : index
    %c0_2 = arith.constant 0 : index
    %8 = memref.load %arg1[%c0_1, %c0_2] : memref<1x1xf32, #tpu.memory_space<smem>>
    %c0_3 = arith.constant 0 : index
    %c0_4 = arith.constant 0 : index
    %c0_5 = arith.constant 0 : index
    %9 = vector.load %arg3[%c0_3, %c0_4, %c0_5] : memref<16x8x12xf32, #tpu.memory_space<vmem>>, vector<16x8x12xf32>
    %c0_6 = arith.constant 0 : index
    %c0_7 = arith.constant 0 : index
    %c0_8 = arith.constant 0 : index
    %10 = vector.load %arg2[%c0_6, %c0_7, %c0_8] : memref<16x8x12xf32, #tpu.memory_space<vmem>>, vector<16x8x12xf32>
    %11 = vector.broadcast %8 : f32 to vector<16x8x12xf32>
    %12 = arith.mulf %11, %9 : vector<16x8x12xf32>
    %13 = arith.addf %10, %12 : vector<16x8x12xf32>
    %14 = vector.shape_cast %13 : vector<16x8x12xf32> to vector<128x12xf32>
    %c0_9 = arith.constant 0 : index
    %c0_10 = arith.constant 0 : index
    %15 = vector.load %arg4[%c0_9, %c0_10] : memref<12x96xf32, #tpu.memory_space<vmem>>, vector<12x96xf32>
    %cst = arith.constant dense<0.000000e+00> : vector<128x96xf32>
    %16 = tpu.matmul %14, %15, %cst {dimension_numbers = #tpu.dot_dimension_numbers<[1], [0], [0], [1], [0, 0, 1, 1], [], []>} : vector<128x12xf32>, vector<12x96xf32>, vector<128x96xf32> -> vector<128x96xf32>
    %17 = vector.broadcast %1 : vector<1x96xf32> to vector<128x96xf32>
    %18 = arith.addf %16, %17 : vector<128x96xf32>
    %19 = math.tanh %18 : vector<128x96xf32>
    %20 = vector.broadcast %3 : vector<1x96xf32> to vector<128x96xf32>
    %21 = arith.mulf %19, %20 : vector<128x96xf32>
    %22 = vector.extract_strided_slice %21 {offsets = [0, 0], sizes = [128, 24], strides = [1, 1]} : vector<128x96xf32> to vector<128x24xf32>
    %cst_11 = arith.constant dense<0.000000e+00> : vector<128xf32>
    %23 = vector.multi_reduction <add>, %22, %cst_11 [1] : vector<128x24xf32> to vector<128xf32>
    %24 = vector.shape_cast %23 : vector<128xf32> to vector<128x1xf32>
    %25 = vector.extract_strided_slice %21 {offsets = [0, 24], sizes = [128, 24], strides = [1, 1]} : vector<128x96xf32> to vector<128x24xf32>
    %cst_12 = arith.constant dense<0.000000e+00> : vector<128xf32>
    %26 = vector.multi_reduction <add>, %25, %cst_12 [1] : vector<128x24xf32> to vector<128xf32>
    %27 = vector.shape_cast %26 : vector<128xf32> to vector<128x1xf32>
    %28 = vector.extract_strided_slice %21 {offsets = [0, 48], sizes = [128, 24], strides = [1, 1]} : vector<128x96xf32> to vector<128x24xf32>
    %cst_13 = arith.constant dense<0.000000e+00> : vector<128xf32>
    %29 = vector.multi_reduction <add>, %28, %cst_13 [1] : vector<128x24xf32> to vector<128xf32>
    %30 = vector.shape_cast %29 : vector<128xf32> to vector<128x1xf32>
    %31 = vector.extract_strided_slice %21 {offsets = [0, 72], sizes = [128, 24], strides = [1, 1]} : vector<128x96xf32> to vector<128x24xf32>
    %cst_14 = arith.constant dense<0.000000e+00> : vector<128xf32>
    %32 = vector.multi_reduction <add>, %31, %cst_14 [1] : vector<128x24xf32> to vector<128xf32>
    %33 = vector.shape_cast %32 : vector<128xf32> to vector<128x1xf32>
    %34 = tpu.concatenate %24, %27, %30, %33 in 1 : vector<128x1xf32>, vector<128x1xf32>, vector<128x1xf32>, vector<128x1xf32> -> vector<128x4xf32>
    %35 = vector.broadcast %2 : vector<1x4xf32> to vector<128x4xf32>
    %36 = arith.addf %34, %35 : vector<128x4xf32>
    %37 = vector.shape_cast %36 : vector<128x4xf32> to vector<16x8x4xf32>
    %38 = tpu.transpose %37, [0, 2, 1] : vector<16x8x4xf32> -> vector<16x4x8xf32>
    %cst_15 = arith.constant dense<0xFF800000> : vector<16x4xf32>
    %39 = vector.multi_reduction <maximumf>, %38, %cst_15 [2] : vector<16x4x8xf32> to vector<16x4xf32>
    %40 = vector.shape_cast %39 : vector<16x4xf32> to vector<16x4x1xf32>
    %41 = vector.broadcast %40 : vector<16x4x1xf32> to vector<16x4x8xf32>
    %42 = arith.subf %38, %41 : vector<16x4x8xf32>
    %43 = math.exp %42 : vector<16x4x8xf32>
    %cst_16 = arith.constant dense<0.000000e+00> : vector<16x4xf32>
    %44 = vector.multi_reduction <add>, %43, %cst_16 [2] : vector<16x4x8xf32> to vector<16x4xf32>
    %45 = vector.shape_cast %44 : vector<16x4xf32> to vector<16x4x1xf32>
    %46 = tpu.reciprocal %45 {approx = true} : vector<16x4x1xf32> -> vector<16x4x1xf32>
    %47 = vector.broadcast %46 : vector<16x4x1xf32> to vector<16x4x8xf32>
    %48 = arith.mulf %43, %47 : vector<16x4x8xf32>
    %c0_17 = arith.constant 0 : index
    %c0_18 = arith.constant 0 : index
    %c0_19 = arith.constant 0 : index
    %49 = vector.load %arg8[%c0_17, %c0_18, %c0_19] : memref<16x4x8xf32, #tpu.memory_space<vmem>>, vector<16x4x8xf32>
    tpu.vector_store %arg8[%c0_17, %c0_18, %c0_19], %48 {strides = array<i32>} : memref<16x4x8xf32, #tpu.memory_space<vmem>>, vector<16x4x8xf32>,
    "tpu.trace_start"() <{level = 10 : i32, message = "rjt,rte->rje"}> : () -> ()
    %cst_20 = arith.constant dense<0.000000e+00> : vector<16x4x12xf32>
    %50 = tpu.matmul %48, %13, %cst_20 {dimension_numbers = #tpu.dot_dimension_numbers<[2], [1], [1], [2], [0, 0, 0, 1, 1, 2], [0], [0]>} : vector<16x4x8xf32>, vector<16x8x12xf32>, vector<16x4x12xf32> -> vector<16x4x12xf32>
    "tpu.trace_stop"() : () -> ()
    %51 = vector.shape_cast %50 : vector<16x4x12xf32> to vector<64x12xf32>
    %c0_21 = arith.constant 0 : index
    %c0_22 = arith.constant 0 : index
    %52 = vector.load %arg5[%c0_21, %c0_22] : memref<12x24xf32, #tpu.memory_space<vmem>>, vector<12x24xf32>
    %cst_23 = arith.constant dense<0.000000e+00> : vector<64x24xf32>
    %53 = tpu.matmul %51, %52, %cst_23 {dimension_numbers = #tpu.dot_dimension_numbers<[1], [0], [0], [1], [0, 0, 1, 1], [], []>} : vector<64x12xf32>, vector<12x24xf32>, vector<64x24xf32> -> vector<64x24xf32>
    %54 = vector.broadcast %4 : vector<1x24xf32> to vector<64x24xf32>
    %55 = arith.addf %53, %54 : vector<64x24xf32>
    %56 = math.tanh %55 : vector<64x24xf32>
    %57 = vector.shape_cast %56 : vector<64x24xf32> to vector<16x4x24xf32>
    %58 = vector.shape_cast %5 : vector<1x24xf32> to vector<1x1x24xf32>
    %59 = vector.broadcast %58 : vector<1x1x24xf32> to vector<16x4x24xf32>
    %60 = arith.mulf %57, %59 : vector<16x4x24xf32>
    %cst_24 = arith.constant dense<0.000000e+00> : vector<16x4xf32>
    %61 = vector.multi_reduction <add>, %60, %cst_24 [2] : vector<16x4x24xf32> to vector<16x4xf32>
    %62 = vector.broadcast %6 : vector<1x1xf32> to vector<16x4xf32>
    %63 = arith.addf %61, %62 : vector<16x4xf32>
    %cst_25 = arith.constant dense<0xFF800000> : vector<16xf32>
    %64 = vector.multi_reduction <maximumf>, %63, %cst_25 [1] : vector<16x4xf32> to vector<16xf32>
    %65 = vector.shape_cast %64 : vector<16xf32> to vector<16x1xf32>
    %66 = vector.broadcast %65 : vector<16x1xf32> to vector<16x4xf32>
    %67 = arith.subf %63, %66 : vector<16x4xf32>
    %68 = math.exp %67 : vector<16x4xf32>
    %cst_26 = arith.constant dense<0.000000e+00> : vector<16xf32>
    %69 = vector.multi_reduction <add>, %68, %cst_26 [1] : vector<16x4xf32> to vector<16xf32>
    %70 = vector.shape_cast %69 : vector<16xf32> to vector<16x1xf32>
    %71 = vector.broadcast %70 : vector<16x1xf32> to vector<16x4xf32>
    %72 = arith.divf %68, %71 : vector<16x4xf32>
    %73 = vector.shape_cast %72 : vector<16x4xf32> to vector<16x4x1xf32>
    %74 = vector.broadcast %73 : vector<16x4x1xf32> to vector<16x4x12xf32>
    %75 = arith.mulf %74, %50 : vector<16x4x12xf32>
    %cst_27 = arith.constant dense<0.000000e+00> : vector<16x12xf32>
    %76 = vector.multi_reduction <add>, %75, %cst_27 [1] : vector<16x4x12xf32> to vector<16x12xf32>
    %77 = vector.broadcast %7 : vector<1x12xf32> to vector<16x12xf32>
    %78 = arith.mulf %76, %77 : vector<16x12xf32>
    %cst_28 = arith.constant dense<0.000000e+00> : vector<16xf32>
    %79 = vector.multi_reduction <add>, %78, %cst_28 [1] : vector<16x12xf32> to vector<16xf32>
    %80 = vector.shape_cast %79 : vector<16xf32> to vector<16x1xf32>
    %cst_29 = arith.constant 0.000000e+00 : f32
    %81 = vector.broadcast %cst_29 : f32 to vector<16x1xf32>
    %82 = arith.maximumf %80, %81 : vector<16x1xf32>
    %c0_30 = arith.constant 0 : index
    %c0_31 = arith.constant 0 : index
    %83 = vector.load %arg7[%c0_30, %c0_31] : memref<16x1xf32, #tpu.memory_space<vmem>>, vector<16x1xf32>
    %84 = arith.addf %82, %83 : vector<16x1xf32>
    %85 = arith.negf %84 : vector<16x1xf32>
    %86 = math.exp %85 : vector<16x1xf32>
    %cst_32 = arith.constant 1.000000e+00 : f32
    %87 = vector.broadcast %cst_32 : f32 to vector<16x1xf32>
    %88 = arith.addf %87, %86 : vector<16x1xf32>
    %89 = arith.divf %87, %88 : vector<16x1xf32>
    %90 = tpu.concatenate %72, %89 in 1 : vector<16x4xf32>, vector<16x1xf32> -> vector<16x5xf32>
    %c0_33 = arith.constant 0 : index
    %c0_34 = arith.constant 0 : index
    %91 = vector.load %arg9[%c0_33, %c0_34] : memref<16x5xf32, #tpu.memory_space<vmem>>, vector<16x5xf32>
    tpu.vector_store %arg9[%c0_33, %c0_34], %90 {strides = array<i32>} : memref<16x5xf32, #tpu.memory_space<vmem>>, vector<16x5xf32>,
    return
  }
  func.func @transform_0(%arg0: i32) -> (i32, i32) {
    %c0_i32 = arith.constant 0 : i32
    %c0_i32_0 = arith.constant 0 : i32
    %c0_i32_1 = arith.constant 0 : i32
    return %c0_i32, %c0_i32_0 : i32, i32
  }
  func.func @transform_1(%arg0: i32) -> (i32, i32, i32) {
    %c0_i32 = arith.constant 0 : i32
    %c0_i32_0 = arith.constant 0 : i32
    %c0_i32_1 = arith.constant 0 : i32
    return %arg0, %c0_i32, %c0_i32_0 : i32, i32, i32
  }
  func.func @transform_2(%arg0: i32) -> (i32, i32, i32) {
    %c0_i32 = arith.constant 0 : i32
    %c0_i32_0 = arith.constant 0 : i32
    %c0_i32_1 = arith.constant 0 : i32
    %c0_i32_2 = arith.constant 0 : i32
    return %c0_i32, %c0_i32_0, %c0_i32_1 : i32, i32, i32
  }
  func.func @transform_3(%arg0: i32) -> (i32, i32) {
    %c0_i32 = arith.constant 0 : i32
    %c0_i32_0 = arith.constant 0 : i32
    %c0_i32_1 = arith.constant 0 : i32
    return %c0_i32, %c0_i32_0 : i32, i32
  }
  func.func @transform_4(%arg0: i32) -> (i32, i32) {
    %c0_i32 = arith.constant 0 : i32
    %c0_i32_0 = arith.constant 0 : i32
    %c0_i32_1 = arith.constant 0 : i32
    return %c0_i32, %c0_i32_0 : i32, i32
  }
  func.func @transform_5(%arg0: i32) -> (i32, i32) {
    %c0_i32 = arith.constant 0 : i32
    %c0_i32_0 = arith.constant 0 : i32
    %c0_i32_1 = arith.constant 0 : i32
    return %c0_i32, %c0_i32_0 : i32, i32
  }
  func.func @transform_6(%arg0: i32) -> (i32, i32) {
    %c0_i32 = arith.constant 0 : i32
    %c0_i32_0 = arith.constant 0 : i32
    return %arg0, %c0_i32 : i32, i32
  }
  func.func @transform_7(%arg0: i32) -> (i32, i32, i32) {
    %c0_i32 = arith.constant 0 : i32
    %c0_i32_0 = arith.constant 0 : i32
    %c0_i32_1 = arith.constant 0 : i32
    return %arg0, %c0_i32, %c0_i32_0 : i32, i32, i32
  }
  func.func @transform_8(%arg0: i32) -> (i32, i32) {
    %c0_i32 = arith.constant 0 : i32
    %c0_i32_0 = arith.constant 0 : i32
    return %arg0, %c0_i32 : i32, i32
  }
}

</mosaic_0001>

<bundles_post_ra>
// kernel: tpu_custom_call.1
= control target key start
LH: loop header
LB: loop body
LE: loop exit
PB: predicated region body
PF: predicated region fallthrough
CT: control target
= control target key end

     0   :  { %vm151_vm0 = vcmask 1043456   ;;  %vm102_vm1 = vcmask 97280   ;;  %v5605_v62 = vlaneseq  ;;  %vm336_vm2 = vcmask 195584   ;;  %s4240_s25 = smov 104   ;;  %s4241_s26 = smov 80   ;;  %s5596_s3 = inlined_call_operand.vmem [shape: f32[12,96], index: 3, kind: input, shape index: {}]   ;;  %s5597_s0 = inlined_call_operand.<no memory space> [shape: f32[1,1], index: 0, kind: input, shape index: {}]   ;;  %s5598_s1 = inlined_call_operand.vmem [shape: f32[16,8,12], index: 1, kind: input, shape index: {}]   ;;  %s5599_s2 = inlined_call_operand.vmem [shape: f32[16,8,12], index: 2, kind: input, shape index: {}]   ;;  %s5600_s5 = inlined_call_operand.vmem [shape: f32[7,128], index: 5, kind: input, shape index: {}]   ;;  %s5601_s7 = inlined_call_operand.vmem [shape: f32[16,4,8], index: 7, kind: output, shape index: {0}]   ;;  %s5602_s4 = inlined_call_operand.vmem [shape: f32[12,24], index: 4, kind: input, shape index: {}]   ;;  %s5603_s6 = inlined_call_operand.vmem [shape: f32[16,1], index: 6, kind: input, shape index: {}]   ;;  %s5604_s8 = inlined_call_operand.vmem [shape: f32[16,5], index: 8, kind: output, shape index: {1}]  }
   0x1   :  { %v97_v0 = vld [vmem:[%s5596_s3 + $0x8] sm:$0xf]  ;;  %v96_v1 = vld [vmem:[%s5596_s3] sm:$0xff]  ;;  %v4304_v3 = vstv %s5597_s0  ;;  %v33_v9 = vld [vmem:[%s5599_s2 + $0x10] sm:$0xff]  ;;  %s4242_s27 = smov 56   ;;  %vm689_vm3 = vcmask 7168  }
   0x2   :  { %v31_v2 = vld [vmem:[%s5599_s2] sm:$0xff]  ;;  %3920 = vmatprep.subr.msk.mxu0 %vm151_vm0, %v97_v0  ;;  %v32_v6 = vld [vmem:[%s5599_s2 + $0x8] sm:$0xff]  ;;  %v49_v10 = vld [vmem:[%s5598_s1 + $0x10] sm:$0xff]  ;;  %v66_v13 = vmul.f32 %v4304_v3, %v33_v9  ;;  %vm706_vm4 = vcmask 15360   ;;  %vm723_vm5 = vcmask 23552   ;;  %vm1272_vm6 = vcmask 60416  }
   0x3   :  { %v47_v4 = vld [vmem:[%s5598_s1] sm:$0xff]  ;;  %v64_v5 = vmul.f32 %v4304_v3, %v31_v2  ;;  %v48_v7 = vld [vmem:[%s5598_s1 + $0x8] sm:$0xff]  ;;  %3921 = vmatpush3.msk.msra.mxu0 %vm151_vm0, %v97_v0  ;;  %v65_v8 = vmul.f32 %v4304_v3, %v32_v6  ;;  %v34_v11 = vld [vmem:[%s5599_s2 + $0x18] sm:$0xff]  ;;  %vm4244_vm7 = vmmov 0   ;;  %vm1465_vm8 = vcmask 64512   ;;  %s4246_s18 = smov 4  }
   0x4   :  { %3922 = vmatprep.subr.mxu0 %v96_v1  ;;  %v50_v14 = vld [vmem:[%s5598_s1 + $0x18] sm:$0xff]  ;;  %v67_v15 = vmul.f32 %v4304_v3, %v34_v11  ;;  %v35_v16 = vld [vmem:[%s5599_s2 + $0x20] sm:$0xff]  ;;  %v36_v20 = vld [vmem:[%s5599_s2 + $0x28] sm:$0xff]  ;;  %v4352_v22 = vadd.f32 %v66_v13, %v49_v10  ;;  %vm2840_vm9 = vcmask 191488   ;;  %vm2992_vm10 = vcmask 1041409  }
   0x5   :  { %v4328_v12 = vadd.f32 %v64_v5, %v47_v4  ;;  %3923 = vmatpush3.msra.mxu0 %v96_v1  ;;  %v4338_v17 = vadd.f32 %v65_v8, %v48_v7  ;;  %v51_v18 = vld [vmem:[%s5598_s1 + $0x20] sm:$0xff]  ;;  %v68_v19 = vmul.f32 %v4304_v3, %v35_v16  ;;  %v37_v21 = vld [vmem:[%s5599_s2 + $0x30] sm:$0xff]  ;;  %v69_v24 = vmul.f32 %v4304_v3, %v36_v20  ;;  %v52_v26 = vld [vmem:[%s5598_s1 + $0x28] sm:$0xff] }
   0x6   :  { %v4356_v23 = vadd.f32 %v67_v15, %v50_v14  ;;  %v70_v27 = vmul.f32 %v4304_v3, %v37_v21  ;;  %v38_v28 = vld [vmem:[%s5599_s2 + $0x38] sm:$0xff]  ;;  %v53_v29 = vld [vmem:[%s5598_s1 + $0x30] sm:$0xff]  ;;  %v39_v30 = vld [vmem:[%s5599_s2 + $0x40] sm:$0xff]  ;;  %v4478_v5 = vshrl.u32 %v5605_v62, 7  ;;  %vm2994_vm11 = vcmask 1042434  }
   0x7   :  { %3924 = vmatprep.mubr.msk.f32.mxu0 %vm102_vm1, %v4328_v12  ;;  %v4361_v25 = vadd.f32 %v68_v19, %v51_v18  ;;  %v4378_v31 = vadd.f32 %v69_v24, %v52_v26  ;;  %v71_v32 = vmul.f32 %v4304_v3, %v38_v28  ;;  %v54_v34 = vld [vmem:[%s5598_s1 + $0x38] sm:$0xff]  ;;  %v72_v35 = vmul.f32 %v4304_v3, %v39_v30  ;;  %v40_v36 = vld [vmem:[%s5599_s2 + $0x48] sm:$0xff]  ;;  %v55_v37 = vld [vmem:[%s5598_s1 + $0x40] sm:$0xff] }
   0x8   :  { %3925 = vmatmul.mubr.msk.f32.vlgmr.msra.gmra.mxu0 %vm102_vm1, %v4338_v17  ;;  %v4383_v33 = vadd.f32 %v70_v27, %v53_v29  ;;  %v41_v38 = vld [vmem:[%s5599_s2 + $0x50] sm:$0xff]  ;;  %v73_v40 = vmul.f32 %v4304_v3, %v40_v36  ;;  %v56_v42 = vld [vmem:[%s5598_s1 + $0x48] sm:$0xff]  ;;  %v42_v47 = vld [vmem:[%s5599_s2 + $0x58] sm:$0xff]  ;;  %v4485_v6 = vsub.s32 0, %v4478_v5  ;;  %v4499_v13 = vsub.s32 2, %v4478_v5 }
   0x9   :  { %3927 = vmatprep.mubr.msk.f32.mxu0 %vm102_vm1, %v4352_v22  ;;  %v4400_v39 = vadd.f32 %v71_v32, %v54_v34  ;;  %v4405_v41 = vadd.f32 %v72_v35, %v55_v37  ;;  %v74_v43 = vmul.f32 %v4304_v3, %v41_v38  ;;  %v57_v44 = vld [vmem:[%s5598_s1 + $0x50] sm:$0xff]  ;;  %v75_v48 = vmul.f32 %v4304_v3, %v42_v47  ;;  %v58_v49 = vld [vmem:[%s5598_s1 + $0x58] sm:$0xff]  ;;  %v43_v51 = vld [vmem:[%s5599_s2 + $0x60] sm:$0xff] }
   0xa   :  { %v4416_v45 = vadd.f32 %v73_v40, %v56_v42  ;;  %v59_v52 = vld [vmem:[%s5598_s1 + $0x60] sm:$0xff]  ;;  %v44_v53 = vld [vmem:[%s5599_s2 + $0x68] sm:$0xff]  ;;  %v76_v54 = vmul.f32 %v4304_v3, %v43_v51  ;;  %v45_v59 = vld [vmem:[%s5599_s2 + $0x70] sm:$0xff]  ;;  %5610 = vst [vmem:[#allocation3_spill] sm:$0xff] %v4499_v13  ;;  %vm2996_vm12 = vcmask 1043459   ;;  %vm2998_vm13 = vcmask 1044484  }
   0xb   :  { %v4420_v46 = vadd.f32 %v74_v43, %v57_v44  ;;  %v4433_v50 = vadd.f32 %v75_v48, %v58_v49  ;;  %v60_v55 = vld [vmem:[%s5598_s1 + $0x68] sm:$0xff]  ;;  %v77_v56 = vmul.f32 %v4304_v3, %v44_v53  ;;  %v61_v60 = vld [vmem:[%s5598_s1 + $0x70] sm:$0xff]  ;;  %v46_v61 = vld [vmem:[%s5599_s2 + $0x78] sm:$0xff]  ;;  %v78_v63 = vmul.f32 %v4304_v3, %v45_v59 }
   0xc   :  { %3928 = vmatmul.mubr.msk.f32.gmra.mxu0 %vm102_vm1, %v4356_v23  ;;  %v4451_v57 = vadd.f32 %v76_v54, %v59_v52  ;;  %v62_v0 = vld [vmem:[%s5598_s1 + $0x78] sm:$0xff]  ;;  %v79_v1 = vmul.f32 %v4304_v3, %v46_v61  ;;  %v4490_v3 = vld [vmem:[%s5600_s5] sm:$0x7f]  ;;  %vm3000_vm14 = vcmask 1045509   ;;  %vm3002_vm15 = vcmask 1046534  }
   0xd   :  { %3930 = vmatprep.mubr.msk.f32.mxu0 %vm102_vm1, %v4361_v25  ;;  %v4453_v58 = vadd.f32 %v77_v56, %v60_v55  ;;  %v4473_v2 = vadd.f32 %v78_v63, %v61_v60  ;;  %v4494_v7 = vrot.slane %v4490_v3, %v4485_v6  ;;  %v4503_v14 = vrot.slane %v4490_v3, %v4499_v13 }
   0xe   :  { %v4475_v4 = vadd.f32 %v79_v1, %v62_v0 }
  0x10   :  { %3931 = vmatmul.mubr.msk.f32.gmra.mxu0 %vm102_vm1, %v4378_v31 }
  0x11   :  { %3933 = vmatprep.mubr.msk.f32.mxu0 %vm102_vm1, %v4383_v33 }
  0x14   :  { %3934 = vmatmul.mubr.msk.f32.gmra.mxu0 %vm102_vm1, %v4400_v39 }
  0x15   :  { %3936 = vmatprep.mubr.msk.f32.mxu0 %vm102_vm1, %v4405_v41 }
  0x18   :  { %3937 = vmatmul.mubr.msk.f32.gmra.mxu0 %vm102_vm1, %v4416_v45 }
  0x19   :  { %3939 = vmatprep.mubr.msk.f32.mxu0 %vm102_vm1, %v4420_v46 }
  0x1c   :  { %3940 = vmatmul.mubr.msk.f32.gmra.mxu0 %vm102_vm1, %v4433_v50 }
  0x1d   :  { %3942 = vmatprep.mubr.msk.f32.mxu0 %vm102_vm1, %v4451_v57 }
  0x20   :  { %3943 = vmatmul.mubr.msk.f32.gmra.mxu0 %vm102_vm1, %v4453_v58 }
  0x21   :  { %3945 = vmatprep.mubr.msk.f32.mxu0 %vm102_vm1, %v4473_v2 }
  0x24   :  { %3946 = vmatmul.mubr.msk.f32.gmra.mxu0 %vm102_vm1, %v4475_v4 }
  0xc8   :  { %v3926_v8 = vpop.f32.mrf.mxu0 }
  0xc9   :  { %v227_v9 = vadd.f32 %v3926_v8, %v4494_v7 }
  0xca   :  { %v221_v10 = vpop.f32.mrf.mxu0 }
  0xcb   :  { %4055 = vtanh.f32 %v227_v9  ;;  %v222_v11 = vadd.f32 %v221_v10, %v4494_v7 }
  0xcc   :  { %v3929_v16 = vpop.f32.mrf.mxu0 }
  0xcd   :  { %4057 = vtanh.f32 %v222_v11  ;;  %v237_v19 = vadd.f32 %v3929_v16, %v4494_v7 }
  0xce   :  { %v231_v26 = vpop.f32.mrf.mxu0 }
  0xcf   :  { %4059 = vtanh.f32 %v237_v19  ;;  %v232_v28 = vadd.f32 %v231_v26, %v4494_v7 }
  0xd0   :  { %v3932_v35 = vpop.f32.mrf.mxu0 }
  0xd1   :  { %4061 = vtanh.f32 %v232_v28  ;;  %v247_v36 = vadd.f32 %v3932_v35, %v4494_v7 }
  0xd2   :  { %v241_v40 = vpop.f32.mrf.mxu0 }
  0xd3   :  { %4063 = vtanh.f32 %v247_v36  ;;  %v242_v42 = vadd.f32 %v241_v40, %v4494_v7 }
  0xd4   :  { %v3935_v49 = vpop.f32.mrf.mxu0 }
  0xd5   :  { %4065 = vtanh.f32 %v242_v42  ;;  %v257_v51 = vadd.f32 %v3935_v49, %v4494_v7 }
  0xd6   :  { %v251_v52 = vpop.f32.mrf.mxu0 }
  0xd7   :  { %4067 = vtanh.f32 %v257_v51  ;;  %v252_v53 = vadd.f32 %v251_v52, %v4494_v7 }
  0xd8   :  { %v4056_v15 = vpop.eup %4055  ;;  %v3938_v54 = vpop.f32.mrf.mxu0 }
  0xd9   :  { %v321_v18 = vmul.f32 %v4056_v15, %v4503_v14  ;;  %4069 = vtanh.f32 %v252_v53  ;;  %v267_v55 = vadd.f32 %v3938_v54, %v4494_v7 }
  0xda   :  { %v4058_v20 = vpop.eup %4057  ;;  %v261_v10 = vpop.f32.mrf.mxu0 }
  0xdb   :  { %403 = vrot.lane.b32.xlu0 %v321_v18, %s4240_s25  ;;  %v340_v21 = vsel %vm336_vm2, %v321_v18, 0.0  ;;  %v320_v24 = vmul.f32 %v4058_v20, %v4503_v14  ;;  %4071 = vtanh.f32 %v267_v55  ;;  %v262_v15 = vadd.f32 %v261_v10, %v4494_v7 }
  0xdc   :  { %341 = vadd.xlane.f32.xlu1 %v340_v21  ;;  %v4060_v29 = vpop.eup %4059  ;;  %v3941_v19 = vpop.f32.mrf.mxu0 }
  0xdd   :  { %v337_v27 = vsel %vm336_vm2, %v320_v24, 0.0  ;;  %v323_v30 = vmul.f32 %v4060_v29, %v4503_v14  ;;  %4073 = vtanh.f32 %v262_v15  ;;  %v277_v20 = vadd.f32 %v3941_v19, %v4494_v7 }
  0xde   :  { %v4062_v32 = vpop.eup %4061 }
  0xdf   :  { %499 = vrot.lane.b32.xlu0 %v321_v18, %s4241_s26  ;;  %v322_v34 = vmul.f32 %v4062_v32, %v4503_v14  ;;  %v346_v37 = vsel %vm336_vm2, %v323_v30, 0.0  ;;  %4075 = vtanh.f32 %v277_v20 }
  0xe0   :  { %338 = vadd.xlane.f32.xlu1 %v337_v27  ;;  %v4064_v43 = vpop.eup %4063  ;;  %v271_v27 = vpop.f32.mrf.mxu0 }
  0xe1   :  { %v343_v38 = vsel %vm336_vm2, %v322_v34, 0.0  ;;  %v325_v44 = vmul.f32 %v4064_v43, %v4503_v14  ;;  %v272_v29 = vadd.f32 %v271_v27, %v4494_v7 }
  0xe2   :  { %v4066_v47 = vpop.eup %4065 }
  0xe3   :  { %595 = vrot.lane.b32.xlu0 %v321_v18, %s4242_s27  ;;  %v324_v48 = vmul.f32 %v4066_v47, %v4503_v14  ;;  %v352_v1 = vsel %vm336_vm2, %v325_v44, 0.0  ;;  %4077 = vtanh.f32 %v272_v29 }
  0xe4   :  { %v4068_v56 = vpop.eup %4067 }
  0xe5   :  { %v327_v59 = vmul.f32 %v4068_v56, %v4503_v14  ;;  %v349_v21 = vsel %vm336_vm2, %v324_v48, 0.0 }
  0xe6   :  { %v4070_v60 = vpop.eup %4069 }
  0xe7   :  { %401 = vrot.lane.b32.xlu0 %v320_v24, %s4240_s25  ;;  %v358_v61 = vsel %vm336_vm2, %v327_v59, 0.0  ;;  %v326_v63 = vmul.f32 %v4070_v60, %v4503_v14 }
  0xe8   :  { %v4072_v0 = vpop.eup %4071 }
  0xe9   :  { %v355_v8 = vsel %vm336_vm2, %v326_v63, 0.0  ;;  %v329_v9 = vmul.f32 %v4072_v0, %v4503_v14 }
  0xea   :  { %v4074_v16 = vpop.eup %4073 }
  0xeb   :  { %497 = vrot.lane.b32.xlu0 %v320_v24, %s4241_s26  ;;  %v364_v11 = vsel %vm336_vm2, %v329_v9, 0.0  ;;  %v328_v18 = vmul.f32 %v4074_v16, %v4503_v14 }
  0xed   :  { %v361_v43 = vsel %vm336_vm2, %v328_v18, 0.0 }
  0xef   :  { %593 = vrot.lane.b32.xlu0 %v320_v24, %s4242_s27  ;;  %v4076_v24 = vpop.eup %4075 }
  0xf0   :  { %v331_v26 = vmul.f32 %v4076_v24, %v4503_v14 }
  0xf1   :  { %407 = vrot.lane.b32.xlu1 %v323_v30, %s4240_s25 }
  0xf2   :  { %v370_v28 = vsel %vm336_vm2, %v331_v26, 0.0 }
  0xf3   :  { %503 = vrot.lane.b32.xlu0 %v323_v30, %s4241_s26 }
  0xf5   :  { %599 = vrot.lane.b32.xlu1 %v323_v30, %s4242_s27  ;;  %v4078_v30 = vpop.eup %4077 }
  0xf6   :  { %v330_v32 = vmul.f32 %v4078_v30, %v4503_v14 }
  0xf7   :  { %405 = vrot.lane.b32.xlu0 %v322_v34, %s4240_s25 }
  0xfb   :  { %501 = vrot.lane.b32.xlu0 %v322_v34, %s4241_s26 }
 0x119   :  { %347 = vadd.xlane.f32.xlu1 %v346_v37 }
 0x11a   :  { %344 = vadd.xlane.f32.xlu0 %v343_v38 }
 0x12a   :  { %597 = vrot.lane.b32.xlu1 %v322_v34, %s4242_s27  ;;  %v3944_v34 = vpop.f32.mrf.mxu0 }
 0x12b   :  { %v287_v35 = vadd.f32 %v3944_v34, %v4494_v7 }
 0x12c   :  { %v281_v38 = vpop.f32.mrf.mxu0 }
 0x12d   :  { %4079 = vtanh.f32 %v287_v35  ;;  %v282_v42 = vadd.f32 %v281_v38, %v4494_v7 }
 0x12e   :  { %411 = vrot.lane.b32.xlu1 %v325_v44, %s4240_s25 }
 0x12f   :  { %4081 = vtanh.f32 %v282_v42 }
 0x130   :  { %507 = vrot.lane.b32.xlu0 %v325_v44, %s4241_s26 }
 0x132   :  { %603 = vrot.lane.b32.xlu1 %v325_v44, %s4242_s27 }
 0x134   :  { %409 = vrot.lane.b32.xlu0 %v324_v48, %s4240_s25 }
 0x138   :  { %601 = vrot.lane.b32.xlu0 %v324_v48, %s4242_s27 }
 0x13a   :  { %v4080_v36 = vpop.eup %4079 }
 0x13b   :  { %v333_v37 = vmul.f32 %v4080_v36, %v4503_v14 }
 0x13c   :  { %v4082_v44 = vpop.eup %4081 }
 0x13d   :  { %v376_v40 = vsel %vm336_vm2, %v333_v37, 0.0  ;;  %v332_v47 = vmul.f32 %v4082_v44, %v4503_v14 }
 0x13f   :  { %v373_v35 = vsel %vm336_vm2, %v332_v47, 0.0 }
 0x156   :  { %353 = vadd.xlane.f32.xlu1 %v352_v1 }
 0x157   :  { %359 = vadd.xlane.f32.xlu0 %v358_v61 }
 0x15b   :  { %356 = vadd.xlane.f32.xlu0 %v355_v8 }
 0x15f   :  { %365 = vadd.xlane.f32.xlu0 %v364_v11 }
 0x165   :  { %v4589_v56 = vpop.xlane.xlu1 %341 }
 0x167   :  { %505 = vrot.lane.b32.xlu1 %v324_v48, %s4241_s26  ;;  %v3947_v48 = vpop.f32.mrf.mxu0 }
 0x168   :  { %v297_v49 = vadd.f32 %v3947_v48, %v4494_v7 }
 0x169   :  { %v291_v53 = vpop.f32.mrf.mxu0  ;;  %v4592_v60 = vpop.xlane.xlu1 %338 }
 0x16a   :  { %4083 = vtanh.f32 %v297_v49  ;;  %v292_v55 = vadd.f32 %v291_v53, %v4494_v7 }
 0x16c   :  { %4085 = vtanh.f32 %v292_v55 }
 0x16d   :  { %v408_v0 = vpop.permute.xlu1 %407 }
 0x175   :  { %417 = vrot.lane.b32.xlu0 %v328_v18, %s4240_s25 }
 0x177   :  { %v4084_v51 = vpop.eup %4083 }
 0x178   :  { %v4584_v52 = vmul.f32 %v4084_v51, %v4503_v14 }
 0x179   :  { %513 = vrot.lane.b32.xlu0 %v328_v18, %s4241_s26  ;;  %v4086_v61 = vpop.eup %4085 }
 0x17a   :  { %v382_v54 = vsel %vm336_vm2, %v4584_v52, 0.0  ;;  %v4597_v1 = vmul.f32 %v4086_v61, %v4503_v14 }
 0x17d   :  { %609 = vrot.lane.b32.xlu0 %v328_v18, %s4242_s27 }
 0x18b   :  { %350 = vadd.xlane.f32.xlu1 %v349_v21 }
 0x19c   :  { %371 = vadd.xlane.f32.xlu0 %v370_v28  ;;  %415 = vrot.lane.b32.xlu1 %v327_v59, %s4240_s25  ;;  %v458_v28 = vsel %vm336_vm2, %v408_v0, 0.0 }
 0x1a0   :  { %511 = vrot.lane.b32.xlu1 %v327_v59, %s4241_s26 }
 0x1a4   :  { %607 = vrot.lane.b32.xlu1 %v327_v59, %s4242_s27  ;;  %v367_v59 = vsel %vm336_vm2, %v330_v32, 0.0 }
 0x1a8   :  { %413 = vrot.lane.b32.xlu1 %v326_v63, %s4240_s25 }
 0x1ac   :  { %509 = vrot.lane.b32.xlu1 %v326_v63, %s4241_s26 }
 0x1b0   :  { %605 = vrot.lane.b32.xlu1 %v326_v63, %s4242_s27  ;;  %v4594_v63 = vpop.permute.xlu0 %403 }
 0x1b2   :  { %421 = vrot.lane.b32.xlu0 %v330_v32, %s4240_s25 }
 0x1b4   :  { %419 = vrot.lane.b32.xlu1 %v329_v9, %s4240_s25  ;;  %v4599_v8 = vpop.permute.xlu0 %499 }
 0x1b6   :  { %517 = vrot.lane.b32.xlu0 %v330_v32, %s4241_s26 }
 0x1b8   :  { %515 = vrot.lane.b32.xlu1 %v329_v9, %s4241_s26  ;;  %v4608_v10 = vpop.permute.xlu0 %595 }
 0x1ba   :  { %613 = vrot.lane.b32.xlu0 %v330_v32, %s4242_s27 }
 0x1bc   :  { %611 = vrot.lane.b32.xlu1 %v329_v9, %s4242_s27  ;;  %v600_v9 = vpop.permute.xlu1 %599  ;;  %v4614_v11 = vpop.permute.xlu0 %401 }
 0x1bd   :  { %v650_v32 = vsel %vm336_vm2, %v600_v9, 0.0 }
 0x1c0   :  { %v4604_v7 = vpop.xlane.xlu1 %347  ;;  %v4616_v16 = vpop.permute.xlu0 %497 }
 0x1c4   :  { %v598_v14 = vpop.permute.xlu1 %597  ;;  %v4618_v19 = vpop.permute.xlu0 %593 }
 0x1c5   :  { %v647_v38 = vsel %vm336_vm2, %v598_v14, 0.0 }
 0x1c8   :  { %v412_v15 = vpop.permute.xlu1 %411  ;;  %v4622_v21 = vpop.permute.xlu0 %503 }
 0x1cc   :  { %v604_v18 = vpop.permute.xlu1 %603 }
 0x1cd   :  { %v656_v48 = vsel %vm336_vm2, %v604_v18, 0.0 }
 0x1d9   :  { %377 = vadd.xlane.f32.xlu0 %v376_v40 }
 0x1df   :  { %v4620_v20 = vpop.xlane.xlu1 %353 }
 0x1e0   :  { %362 = vadd.xlane.f32.xlu1 %v361_v43  ;;  %v464_v43 = vsel %vm336_vm2, %v412_v15, 0.0 }
 0x1e3   :  { %v4624_v24 = vpop.permute.xlu1 %505 }
 0x1ef   :  { %425 = vrot.lane.b32.xlu0 %v332_v47, %s4240_s25 }
 0x1f1   :  { %423 = vrot.lane.b32.xlu1 %v331_v26, %s4240_s25 }
 0x1f3   :  { %521 = vrot.lane.b32.xlu0 %v332_v47, %s4241_s26 }
 0x1f5   :  { %519 = vrot.lane.b32.xlu1 %v331_v26, %s4241_s26 }
 0x1f7   :  { %617 = vrot.lane.b32.xlu0 %v332_v47, %s4242_s27 }
 0x1f9   :  { %615 = vrot.lane.b32.xlu1 %v331_v26, %s4242_s27  ;;  %v4626_v26 = vpop.permute.xlu0 %405 }
 0x1fd   :  { %v502_v29 = vpop.permute.xlu0 %501 }
 0x1fe   :  { %v551_v36 = vsel %vm336_vm2, %v502_v29, 0.0 }
 0x201   :  { %v4632_v34 = vpop.xlane.xlu0 %344 }
 0x205   :  { %v4637_v40 = vpop.permute.xlu0 %507 }
 0x209   :  { %v410_v44 = vpop.permute.xlu0 %409 }
 0x20a   :  { %v461_v47 = vsel %vm336_vm2, %v410_v44, 0.0 }
 0x20d   :  { %v602_v51 = vpop.permute.xlu0 %601 }
 0x211   :  { %v4651_v0 = vpop.xlane.xlu0 %359 }
 0x214   :  { %v4628_v27 = vpop.xlane.xlu1 %350 }
 0x215   :  { %v4654_v15 = vpop.xlane.xlu0 %356 }
 0x216   :  { %383 = vadd.xlane.f32.xlu0 %v382_v54  ;;  %v653_v54 = vsel %vm336_vm2, %v602_v51, 0.0 }
 0x218   :  { %v416_v30 = vpop.permute.xlu1 %415 }
 0x219   :  { %v470_v55 = vsel %vm336_vm2, %v416_v30, 0.0 }
 0x21d   :  { %368 = vadd.xlane.f32.xlu1 %v367_v59 }
 0x22c   :  { %429 = vrot.lane.b32.xlu0 %v4597_v1, %s4240_s25 }
 0x22e   :  { %427 = vrot.lane.b32.xlu1 %v333_v37, %s4240_s25 }
 0x230   :  { %525 = vrot.lane.b32.xlu0 %v4597_v1, %s4241_s26 }
 0x232   :  { %523 = vrot.lane.b32.xlu1 %v333_v37, %s4241_s26 }
 0x234   :  { %621 = vrot.lane.b32.xlu0 %v4597_v1, %s4242_s27 }
 0x236   :  { %619 = vrot.lane.b32.xlu1 %v333_v37, %s4242_s27  ;;  %v512_v37 = vpop.permute.xlu1 %511 }
 0x237   :  { %v566_v61 = vsel %vm336_vm2, %v512_v37, 0.0 }
 0x23a   :  { %v608_v42 = vpop.permute.xlu1 %607 }
 0x23b   :  { %v662_v14 = vsel %vm336_vm2, %v608_v42, 0.0 }
 0x23e   :  { %v414_v49 = vpop.permute.xlu1 %413 }
 0x23f   :  { %v467_v18 = vsel %vm336_vm2, %v414_v49, 0.0 }
 0x242   :  { %v510_v53 = vpop.permute.xlu1 %509 }
 0x243   :  { %v563_v29 = vsel %vm336_vm2, %v510_v53, 0.0 }
 0x246   :  { %v606_v59 = vpop.permute.xlu1 %605 }
 0x24a   :  { %v420_v9 = vpop.permute.xlu1 %419 }
 0x24b   :  { %v476_v37 = vsel %vm336_vm2, %v420_v9, 0.0 }
 0x253   :  { %459 = vadd.xlane.f32.xlu0 %v458_v28  ;;  %v516_v28 = vpop.permute.xlu1 %515 }
 0x257   :  { %651 = vadd.xlane.f32.xlu0 %v650_v32  ;;  %v612_v30 = vpop.permute.xlu1 %611  ;;  %v659_v32 = vsel %vm336_vm2, %v606_v59, 0.0 }
 0x258   :  { %v668_v44 = vsel %vm336_vm2, %v612_v30, 0.0 }
 0x25a   :  { %374 = vadd.xlane.f32.xlu1 %v373_v35 }
 0x25b   :  { %552 = vadd.xlane.f32.xlu0 %v551_v36 }
 0x25f   :  { %648 = vadd.xlane.f32.xlu0 %v647_v38  ;;  %v572_v38 = vsel %vm336_vm2, %v516_v28, 0.0 }
 0x263   :  { %465 = vadd.xlane.f32.xlu0 %v464_v43 }
 0x267   :  { %657 = vadd.xlane.f32.xlu0 %v656_v48 }
 0x269   :  { %v4661_v35 = vpop.xlane.xlu1 %362 }
 0x26b   :  { %431 = vrot.lane.b32.xlu1 %v4584_v52, %s4240_s25  ;;  %462 = vadd.xlane.f32.xlu0 %v461_v47  ;;  %v379_v47 = vsel %vm336_vm2, %v4597_v1, 0.0 }
 0x26d   :  { %v424_v42 = vpop.permute.xlu1 %423 }
 0x26e   :  { %v482_v51 = vsel %vm336_vm2, %v424_v42, 0.0 }
 0x26f   :  { %527 = vrot.lane.b32.xlu1 %v4584_v52, %s4241_s26  ;;  %654 = vadd.xlane.f32.xlu0 %v653_v54  ;;  %v452_v54 = vsel %vm336_vm2, %v4594_v63, 0.0  ;;  %v449_v63 = vsel %vm336_vm2, %v4614_v11, 0.0 }
 0x271   :  { %v520_v48 = vpop.permute.xlu1 %519 }
 0x273   :  { %623 = vrot.lane.b32.xlu1 %v4584_v52, %s4242_s27  ;;  %471 = vadd.xlane.f32.xlu0 %v470_v55  ;;  %v4658_v52 = vpop.xlane.xlu0 %365  ;;  %v578_v55 = vsel %vm336_vm2, %v520_v48, 0.0 }
 0x275   :  { %v616_v59 = vpop.permute.xlu1 %615 }
 0x276   :  { %v674_v9 = vsel %vm336_vm2, %v616_v59, 0.0 }
 0x277   :  { %567 = vadd.xlane.f32.xlu0 %v566_v61  ;;  %v418_v36 = vpop.permute.xlu0 %417  ;;  %v548_v61 = vsel %vm336_vm2, %v4599_v8, 0.0  ;;  %v545_v8 = vsel %vm336_vm2, %v4616_v16, 0.0 }
 0x27b   :  { %663 = vadd.xlane.f32.xlu0 %v662_v14  ;;  %v514_v43 = vpop.permute.xlu0 %513  ;;  %v644_v14 = vsel %vm336_vm2, %v4608_v10, 0.0  ;;  %v641_v10 = vsel %vm336_vm2, %v4618_v19, 0.0  ;;  %v560_v19 = vsel %vm336_vm2, %v4637_v40, 0.0 }
 0x27f   :  { %468 = vadd.xlane.f32.xlu0 %v467_v18  ;;  %v610_v49 = vpop.permute.xlu0 %609 }
 0x283   :  { %564 = vadd.xlane.f32.xlu0 %v563_v29  ;;  %v4669_v53 = vpop.xlane.xlu0 %371 }
 0x287   :  { %660 = vadd.xlane.f32.xlu0 %v659_v32  ;;  %v422_v1 = vpop.permute.xlu0 %421 }
 0x288   :  { %v479_v40 = vsel %vm336_vm2, %v422_v1, 0.0 }
 0x28b   :  { %477 = vadd.xlane.f32.xlu0 %v476_v37  ;;  %v518_v18 = vpop.permute.xlu0 %517 }
 0x28f   :  { %573 = vadd.xlane.f32.xlu0 %v572_v38  ;;  %v614_v32 = vpop.permute.xlu0 %613 }
 0x293   :  { %669 = vadd.xlane.f32.xlu0 %v668_v44  ;;  %v4689_v42 = vpop.xlane.xlu0 %377  ;;  %v554_v44 = vsel %vm336_vm2, %v4622_v21, 0.0  ;;  %v473_v21 = vsel %vm336_vm2, %v418_v36, 0.0 }
 0x297   :  { %380 = vadd.xlane.f32.xlu1 %v379_v47  ;;  %483 = vadd.xlane.f32.xlu0 %v482_v51  ;;  %v426_v48 = vpop.permute.xlu0 %425  ;;  %v455_v47 = vsel %vm336_vm2, %v4626_v26, 0.0  ;;  %v665_v26 = vsel %vm336_vm2, %v610_v49, 0.0 }
 0x29b   :  { %453 = vadd.xlane.f32.xlu1 %v452_v54  ;;  %579 = vadd.xlane.f32.xlu0 %v578_v55  ;;  %v522_v51 = vpop.permute.xlu0 %521  ;;  %v557_v54 = vsel %vm336_vm2, %v4624_v24, 0.0  ;;  %v575_v24 = vsel %vm336_vm2, %v518_v18, 0.0 }
 0x29f   :  { %549 = vadd.xlane.f32.xlu1 %v548_v61  ;;  %675 = vadd.xlane.f32.xlu0 %v674_v9  ;;  %v618_v55 = vpop.permute.xlu0 %617  ;;  %v569_v61 = vsel %vm336_vm2, %v514_v43, 0.0 }
 0x2a3   :  { %645 = vadd.xlane.f32.xlu1 %v644_v14  ;;  %v4701_v59 = vpop.xlane.xlu0 %383 }
 0x2a6   :  { %v4679_v28 = vpop.xlane.xlu1 %368 }
 0x2a7   :  { %450 = vadd.xlane.f32.xlu1 %v449_v63  ;;  %v430_v9 = vpop.permute.xlu0 %429  ;;  %v671_v63 = vsel %vm336_vm2, %v614_v32, 0.0 }
 0x2a8   :  { %v491_v18 = vsel %vm336_vm2, %v430_v9, 0.0 }
 0x2aa   :  { %v428_v29 = vpop.permute.xlu1 %427 }
 0x2ab   :  { %546 = vadd.xlane.f32.xlu1 %v545_v8  ;;  %v488_v30 = vsel %vm336_vm2, %v428_v29, 0.0  ;;  %v526_v14 = vpop.permute.xlu0 %525  ;;  %v485_v29 = vsel %vm336_vm2, %v426_v48, 0.0  ;;  %v581_v8 = vsel %vm336_vm2, %v522_v51, 0.0 }
 0x2ac   :  { %489 = vadd.xlane.f32.xlu0 %v488_v30  ;;  %v677_v30 = vsel %vm336_vm2, %v618_v55, 0.0 }
 0x2ae   :  { %v524_v37 = vpop.permute.xlu1 %523 }
 0x2af   :  { %642 = vadd.xlane.f32.xlu1 %v641_v10  ;;  %v584_v38 = vsel %vm336_vm2, %v524_v37, 0.0  ;;  %v622_v36 = vpop.permute.xlu0 %621 }
 0x2b0   :  { %585 = vadd.xlane.f32.xlu0 %v584_v38 }
 0x2b2   :  { %v620_v11 = vpop.permute.xlu1 %619 }
 0x2b3   :  { %555 = vadd.xlane.f32.xlu1 %v554_v44  ;;  %v680_v16 = vsel %vm336_vm2, %v620_v11, 0.0  ;;  %v587_v11 = vsel %vm336_vm2, %v526_v14, 0.0 }
 0x2b4   :  { %681 = vadd.xlane.f32.xlu0 %v680_v16 }
 0x2b7   :  { %456 = vadd.xlane.f32.xlu1 %v455_v47  ;;  %v683_v47 = vsel %vm336_vm2, %v622_v36, 0.0 }
 0x2bb   :  { %561 = vadd.xlane.f32.xlu1 %v560_v19 }
 0x2bf   :  { %558 = vadd.xlane.f32.xlu1 %v557_v54 }
 0x2c3   :  { %474 = vadd.xlane.f32.xlu1 %v473_v21 }
 0x2c7   :  { %570 = vadd.xlane.f32.xlu1 %v569_v61 }
 0x2cb   :  { %666 = vadd.xlane.f32.xlu1 %v665_v26 }
 0x2cf   :  { %480 = vadd.xlane.f32.xlu1 %v479_v40 }
 0x2d3   :  { %576 = vadd.xlane.f32.xlu1 %v575_v24 }
 0x2d7   :  { %672 = vadd.xlane.f32.xlu1 %v671_v63 }
 0x2db   :  { %486 = vadd.xlane.f32.xlu1 %v485_v29 }
 0x2dc   :  { %v460_v43 = vpop.xlane.xlu0 %459 }
 0x2df   :  { %582 = vadd.xlane.f32.xlu1 %v581_v8  ;;  %v4724_v8 = vsub.s32 1, %v4478_v5 }
 0x2e0   :  { %v652_v49 = vpop.xlane.xlu0 %651 }
 0x2e1   :  { %5611 = vst [vmem:[#allocation4_spill] sm:$0xff] %v4724_v8 }
 0x2e3   :  { %678 = vadd.xlane.f32.xlu1 %v677_v30  ;;  %v4711_v1 = vpop.xlane.xlu1 %374 }
 0x2e4   :  { %v4713_v37 = vpop.xlane.xlu0 %552 }
 0x2e7   :  { %492 = vadd.xlane.f32.xlu1 %v491_v18  ;;  %v432_v32 = vpop.permute.xlu1 %431 }
 0x2e8   :  { %v649_v10 = vpop.xlane.xlu0 %648  ;;  %v494_v38 = vsel %vm336_vm2, %v432_v32, 0.0  ;;  %v4730_v32 = vrot.slane %v4490_v3, %v4724_v8 }
 0x2e9   :  { %495 = vadd.xlane.f32.xlu0 %v494_v38 }
 0x2eb   :  { %588 = vadd.xlane.f32.xlu1 %v587_v11  ;;  %v528_v44 = vpop.permute.xlu1 %527 }
 0x2ec   :  { %v466_v16 = vpop.xlane.xlu0 %465  ;;  %v590_v48 = vsel %vm336_vm2, %v528_v44, 0.0 }
 0x2ed   :  { %591 = vadd.xlane.f32.xlu0 %v590_v48 }
 0x2ef   :  { %684 = vadd.xlane.f32.xlu1 %v683_v47  ;;  %v624_v19 = vpop.permute.xlu1 %623 }
 0x2f0   :  { %v686_v51 = vsel %vm336_vm2, %v624_v19, 0.0  ;;  %v658_v54 = vpop.xlane.xlu0 %657  ;;  %vm3015_vm2 = vcmask 31744  }
 0x2f1   :  { %687 = vadd.xlane.f32.xlu0 %v686_v51 }
 0x2f4   :  { %v463_v55 = vpop.xlane.xlu0 %462 }
 0x2f8   :  { %v655_v21 = vpop.xlane.xlu0 %654 }
 0x2fc   :  { %v472_v61 = vpop.xlane.xlu0 %471 }
 0x300   :  { %v568_v26 = vpop.xlane.xlu0 %567 }
 0x304   :  { %v664_v9 = vpop.xlane.xlu0 %663 }
 0x308   :  { %v469_v40 = vpop.xlane.xlu0 %468 }
 0x30c   :  { %v565_v14 = vpop.xlane.xlu0 %564 }
 0x310   :  { %v661_v63 = vpop.xlane.xlu0 %660 }
 0x314   :  { %v478_v36 = vpop.xlane.xlu0 %477 }
 0x318   :  { %v574_v48 = vpop.xlane.xlu0 %573 }
 0x31c   :  { %v670_v51 = vpop.xlane.xlu0 %669 }
 0x320   :  { %v4721_v24 = vpop.xlane.xlu1 %380  ;;  %v484_v8 = vpop.xlane.xlu0 %483 }
 0x324   :  { %v454_v29 = vpop.xlane.xlu1 %453 }
 0x325   :  { %v691_v18 = vsel %vm689_vm3, %v4589_v56, %v454_v29 }
 0x328   :  { %v550_v30 = vpop.xlane.xlu1 %549 }
 0x329   :  { %v708_v38 = vsel %vm706_vm4, %v691_v18, %v550_v30  ;;  %v693_v18 = vsel %vm689_vm3, %v4604_v7, %v460_v43  ;;  %v695_v7 = vsel %vm689_vm3, %v4620_v20, %v466_v16 }
 0x32c   :  { %v646_v11 = vpop.xlane.xlu1 %645 }
 0x32d   :  { %v725_v44 = vsel %vm723_vm5, %v708_v38, %v646_v11 }
 0x32e   :  { %v745_v47 = vadd.f32 %v4730_v32, %v725_v44 }
 0x330   :  { %792 = vxpose.xlu0.b32.start.end [1/1] (short) (narrow) %v745_v47, 8  ;;  %v451_v19 = vpop.xlane.xlu1 %450 }
 0x331   :  { %v690_v56 = vsel %vm689_vm3, %v4592_v60, %v451_v19  ;;  %v580_v60 = vpop.xlane.xlu0 %579 }
 0x334   :  { %v547_v62 = vpop.xlane.xlu1 %546 }
 0x335   :  { %v707_v29 = vsel %vm706_vm4, %v690_v56, %v547_v62 }
 0x338   :  { %v643_v13 = vpop.xlane.xlu1 %642 }
 0x339   :  { %v724_v3 = vsel %vm723_vm5, %v707_v29, %v643_v13 }
 0x33a   :  { %v744_v30 = vadd.f32 %v4730_v32, %v724_v3  ;;  %v676_v3 = vpop.xlane.xlu0 %675 }
 0x33c   :  { %760 = vxpose.xlu0.b32.start.end [1/1] (short) (narrow) %v744_v30, 8  ;;  %v556_v38 = vpop.xlane.xlu1 %555 }
 0x33d   :  { %v710_v11 = vsel %vm706_vm4, %v693_v18, %v556_v38 }
 0x33e   :  { %v727_v44 = vsel %vm723_vm5, %v710_v11, %v652_v49  ;;  %v490_v11 = vpop.xlane.xlu0 %489 }
 0x33f   :  { %v747_v47 = vadd.f32 %v4730_v32, %v727_v44 }
 0x340   :  { %v457_v19 = vpop.xlane.xlu1 %456 }
 0x341   :  { %v692_v62 = vsel %vm689_vm3, %v4632_v34, %v457_v19  ;;  %856 = vxpose.xlu0.b32.start.end [1/1] (short) (narrow) %v747_v47, 8  ;;  %v697_v34 = vsel %vm689_vm3, %v4651_v0, %v472_v61 }
 0x342   :  { %v709_v13 = vsel %vm706_vm4, %v692_v62, %v4713_v37  ;;  %v694_v37 = vsel %vm689_vm3, %v4628_v27, %v463_v55  ;;  %v586_v19 = vpop.xlane.xlu0 %585 }
 0x343   :  { %v726_v56 = vsel %vm723_vm5, %v709_v13, %v649_v10  ;;  %v714_v10 = vsel %vm706_vm4, %v697_v34, %v568_v26 }
 0x344   :  { %v562_v43 = vpop.xlane.xlu1 %561  ;;  %v746_v29 = vadd.f32 %v4730_v32, %v726_v56  ;;  %v731_v16 = vsel %vm723_vm5, %v714_v10, %v664_v9  ;;  %v699_v9 = vsel %vm689_vm3, %v4658_v52, %v478_v36 }
 0x345   :  { %v712_v49 = vsel %vm706_vm4, %v695_v7, %v562_v43  ;;  %v751_v61 = vadd.f32 %v4730_v32, %v731_v16  ;;  %v716_v47 = vsel %vm706_vm4, %v699_v9, %v574_v48 }
 0x346   :  { %v729_v30 = vsel %vm723_vm5, %v712_v49, %v658_v54  ;;  %824 = vxpose.xlu1.b32.start.end [1/1] (short) (narrow) %v746_v29, 8  ;;  %v696_v54 = vsel %vm689_vm3, %v4654_v15, %v469_v40  ;;  %v733_v40 = vsel %vm723_vm5, %v716_v47, %v670_v51  ;;  %v682_v7 = vpop.xlane.xlu0 %681 }
 0x347   :  { %v749_v18 = vadd.f32 %v4730_v32, %v729_v30  ;;  %v713_v27 = vsel %vm706_vm4, %v696_v54, %v565_v14  ;;  %v701_v14 = vsel %vm689_vm3, %v4669_v53, %v484_v8  ;;  %v753_v62 = vadd.f32 %v4730_v32, %v733_v40 }
 0x348   :  { %v559_v20 = vpop.xlane.xlu1 %558  ;;  %v730_v26 = vsel %vm723_vm5, %v713_v27, %v661_v63  ;;  %v718_v13 = vsel %vm706_vm4, %v701_v14, %v580_v60  ;;  %v703_v53 = vsel %vm689_vm3, %v4689_v42, %v490_v11 }
 0x349   :  { %v711_v38 = vsel %vm706_vm4, %v694_v37, %v559_v20  ;;  %v735_v48 = vsel %vm723_vm5, %v718_v13, %v676_v3  ;;  %v720_v8 = vsel %vm706_vm4, %v703_v53, %v586_v19 }
 0x34a   :  { %v728_v44 = vsel %vm723_vm5, %v711_v38, %v655_v21  ;;  %920 = vxpose.xlu1.b32.start.end [1/1] (short) (narrow) %v749_v18, 8  ;;  %v750_v21 = vadd.f32 %v4730_v32, %v730_v26  ;;  %v737_v43 = vsel %vm723_vm5, %v720_v8, %v682_v7 }
 0x34b   :  { %v748_v0 = vadd.f32 %v4730_v32, %v728_v44  ;;  %v757_v29 = vadd.f32 %v4730_v32, %v737_v43 }
 0x34c   :  { %v475_v55 = vpop.xlane.xlu1 %474 }
 0x34d   :  { %888 = vxpose.xlu0.b32.start.end [1/1] (short) (narrow) %v748_v0, 8  ;;  %v698_v63 = vsel %vm689_vm3, %v4661_v35, %v475_v55  ;;  %v755_v35 = vadd.f32 %v4730_v32, %v735_v48 }
 0x34e   :  { %984 = vxpose.xlu1.b32.start.end [1/1] (short) (narrow) %v751_v61, 8 }
 0x350   :  { %v571_v15 = vpop.xlane.xlu1 %570 }
 0x351   :  { %v715_v52 = vsel %vm706_vm4, %v698_v63, %v571_v15 }
 0x352   :  { %952 = vxpose.xlu1.b32.start.end [1/1] (short) (narrow) %v750_v21, 8 }
 0x354   :  { %v667_v36 = vpop.xlane.xlu1 %666 }
 0x355   :  { %v732_v56 = vsel %vm723_vm5, %v715_v52, %v667_v36 }
 0x356   :  { %v752_v51 = vadd.f32 %v4730_v32, %v732_v56  ;;  %1048 = vxpose.xlu1.b32.start.end [1/1] (short) (narrow) %v753_v62, 8 }
 0x358   :  { %1016 = vxpose.xlu0.b32.start.end [1/1] (short) (narrow) %v752_v51, 8  ;;  %v481_v60 = vpop.xlane.xlu1 %480 }
 0x359   :  { %v700_v3 = vsel %vm689_vm3, %v4679_v28, %v481_v60 }
 0x35a   :  { %1112 = vxpose.xlu1.b32.start.end [1/1] (short) (narrow) %v755_v35, 8 }
 0x35c   :  { %v577_v49 = vpop.xlane.xlu1 %576 }
 0x35d   :  { %v717_v30 = vsel %vm706_vm4, %v700_v3, %v577_v49 }
 0x35e   :  { %1176 = vxpose.xlu1.b32.start.end [1/1] (short) (narrow) %v757_v29, 8 }
 0x360   :  { %v673_v34 = vpop.xlane.xlu1 %672 }
 0x361   :  { %v734_v42 = vsel %vm723_vm5, %v717_v30, %v673_v34 }
 0x362   :  { %v754_v18 = vadd.f32 %v4730_v32, %v734_v42 }
 0x364   :  { %1080 = vxpose.xlu0.b32.start.end [1/1] (short) (narrow) %v754_v18, 8  ;;  %v487_v37 = vpop.xlane.xlu1 %486 }
 0x365   :  { %v702_v20 = vsel %vm689_vm3, %v4711_v1, %v487_v37 }
 0x368   :  { %v583_v10 = vpop.xlane.xlu1 %582 }
 0x369   :  { %v719_v16 = vsel %vm706_vm4, %v702_v20, %v583_v10 }
 0x36c   :  { %v679_v38 = vpop.xlane.xlu1 %678 }
 0x36d   :  { %v736_v11 = vsel %vm723_vm5, %v719_v16, %v679_v38 }
 0x36e   :  { %v756_v28 = vadd.f32 %v4730_v32, %v736_v11 }
 0x370   :  { %1144 = vxpose.xlu0.b32.start.end [1/1] (short) (narrow) %v756_v28, 8  ;;  %v493_v44 = vpop.xlane.xlu1 %492 }
 0x371   :  { %v704_v27 = vsel %vm689_vm3, %v4721_v24, %v493_v44 }
 0x372   :  { %v496_v54 = vpop.xlane.xlu0 %495 }
 0x373   :  { %v705_v1 = vsel %vm689_vm3, %v4701_v59, %v496_v54  ;;  %vm3512_vm3 = vcmask 93184  }
 0x374   :  { %v589_v0 = vpop.xlane.xlu1 %588 }
 0x375   :  { %v721_v55 = vsel %vm706_vm4, %v704_v27, %v589_v0 }
 0x376   :  { %v592_v61 = vpop.xlane.xlu0 %591 }
 0x377   :  { %v722_v21 = vsel %vm706_vm4, %v705_v1, %v592_v61 }
 0x378   :  { %v685_v26 = vpop.xlane.xlu1 %684 }
 0x379   :  { %v738_v9 = vsel %vm723_vm5, %v721_v55, %v685_v26 }
 0x37a   :  { %v758_v47 = vadd.f32 %v4730_v32, %v738_v9  ;;  %v688_v19 = vpop.xlane.xlu0 %687 }
 0x37b   :  { %v739_v15 = vsel %vm723_vm5, %v722_v21, %v688_v19 }
 0x37c   :  { %1208 = vxpose.xlu1.b32.start.end [1/1] (short) (narrow) %v758_v47, 8  ;;  %v759_v40 = vadd.f32 %v4730_v32, %v739_v15 }
 0x380   :  { %1240 = vxpose.xlu1.b32.start.end [1/1] (short) (narrow) %v759_v40, 8 }
 0x3ac   :  { %v4811_v24 = vpop.trf.xlu0 }
 0x3ad   :  { %v1276_v36 = vsel %vm1272_vm6, %v4811_v24, -inf }
 0x3b8   :  { %v776_v14 = vpop.trf.xlu0 }
 0x3b9   :  { %v1273_v62 = vsel %vm1272_vm6, %v776_v14, -inf }
 0x3bd   :  { %v872_v63 = vpop.trf.xlu0 }
 0x3be   :  { %v1282_v59 = vsel %vm1272_vm6, %v872_v63, -inf }
 0x3bf   :  { %1283 = vmax.xlane.f32.xlu1 %v1282_v59 }
 0x3c2   :  { %v840_v13 = vpop.trf.xlu1 }
 0x3c3   :  { %1274 = vmax.xlane.f32.xlu1 %v1273_v62  ;;  %v1279_v52 = vsel %vm1272_vm6, %v840_v13, -inf }
 0x3c4   :  { %1280 = vmax.xlane.f32.xlu0 %v1279_v52 }
 0x3c6   :  { %v936_v32 = vpop.trf.xlu1 }
 0x3c7   :  { %1277 = vmax.xlane.f32.xlu1 %v1276_v36  ;;  %v1288_v51 = vsel %vm1272_vm6, %v936_v32, -inf }
 0x3c9   :  { %v904_v48 = vpop.trf.xlu0 }
 0x3ca   :  { %v1285_v56 = vsel %vm1272_vm6, %v904_v48, -inf  ;;  %v4819_v7 = vpop.trf.xlu1 }
 0x3cb   :  { %1286 = vmax.xlane.f32.xlu0 %v1285_v56  ;;  %v1294_v43 = vsel %vm1272_vm6, %v4819_v7, -inf }
 0x3ce   :  { %v968_v53 = vpop.trf.xlu1 }
 0x3cf   :  { %1289 = vmax.xlane.f32.xlu0 %v1288_v51  ;;  %v1291_v35 = vsel %vm1272_vm6, %v968_v53, -inf }
 0x3d2   :  { %v4823_v8 = vpop.trf.xlu1 }
 0x3d3   :  { %1292 = vmax.xlane.f32.xlu0 %v1291_v35  ;;  %v1300_v3 = vsel %vm1272_vm6, %v4823_v8, -inf }
 0x3d4   :  { %v4825_v60 = vpop.trf.xlu0 }
 0x3d5   :  { %v1297_v29 = vsel %vm1272_vm6, %v4825_v60, -inf }
 0x3d6   :  { %1298 = vmax.xlane.f32.xlu1 %v1297_v29  ;;  %v4831_v49 = vpop.trf.xlu1 }
 0x3d7   :  { %1295 = vmax.xlane.f32.xlu0 %v1294_v43  ;;  %v1306_v30 = vsel %vm1272_vm6, %v4831_v49, -inf }
 0x3da   :  { %v4837_v34 = vpop.trf.xlu1 }
 0x3db   :  { %1301 = vmax.xlane.f32.xlu0 %v1300_v3  ;;  %v1312_v18 = vsel %vm1272_vm6, %v4837_v34, -inf }
 0x3df   :  { %1307 = vmax.xlane.f32.xlu0 %v1306_v30 }
 0x3e0   :  { %v4839_v42 = vpop.trf.xlu0 }
 0x3e1   :  { %v1303_v37 = vsel %vm1272_vm6, %v4839_v42, -inf }
 0x3e2   :  { %1304 = vmax.xlane.f32.xlu1 %v1303_v37 }
 0x3e3   :  { %1313 = vmax.xlane.f32.xlu0 %v1312_v18 }
 0x3ec   :  { %v4845_v10 = vpop.trf.xlu0 }
 0x3ed   :  { %v1309_v20 = vsel %vm1272_vm6, %v4845_v10, -inf }
 0x3ee   :  { %1310 = vmax.xlane.f32.xlu1 %v1309_v20 }
 0x3f8   :  { %v4849_v16 = vpop.trf.xlu1 }
 0x3f9   :  { %v1315_v38 = vsel %vm1272_vm6, %v4849_v16, -inf }
 0x3fa   :  { %1316 = vmax.xlane.f32.xlu1 %v1315_v38 }
 0x3fc   :  { %v4853_v11 = vpop.trf.xlu1 }
 0x3fd   :  { %v1318_v28 = vsel %vm1272_vm6, %v4853_v11, -inf }
 0x3fe   :  { %1319 = vmax.xlane.f32.xlu0 %v1318_v28 }
 0x448   :  { %v1284_v44 = vpop.xlane.xlu1 %1283 }
 0x449   :  { %v1324_v54 = vsub.f32 %v872_v63, %v1284_v44 }
 0x44b   :  { %v1343_v0 = vmul.f32 1.442695, %v1324_v54 }
 0x44c   :  { %v1275_v27 = vpop.xlane.xlu1 %1274 }
 0x44d   :  { %4087 = vpow2.f32 %v1343_v0  ;;  %v1281_v61 = vpop.xlane.xlu0 %1280  ;;  %v1321_v1 = vsub.f32 %v776_v14, %v1275_v27 }
 0x44e   :  { %v1323_v55 = vsub.f32 %v840_v13, %v1281_v61 }
 0x44f   :  { %v1337_v19 = vmul.f32 1.442695, %v1321_v1  ;;  %v4243_v1 = vmov 0.0  }
 0x450   :  { %v1341_v26 = vmul.f32 1.442695, %v1323_v55  ;;  %v1278_v9 = vpop.xlane.xlu1 %1277  ;;  %3948 = vmatprep.subr.mxu0 %v4243_v1  ;;  %3958 = vmatprep.subr.mxu1 %v4243_v1 }
 0x451   :  { %v1322_v15 = vsub.f32 %v4811_v24, %v1278_v9  ;;  %3949 = vmatpush3.msra.mxu0 %v4328_v12  ;;  %3959 = vmatpush3.msra.mxu1 %v4352_v22 }
 0x452   :  { %4089 = vpow2.f32 %v1341_v26  ;;  %3963 = vmatprep.subr.mxu1 %v4243_v1  ;;  %3953 = vmatprep.subr.mxu0 %v4243_v1 }
 0x453   :  { %v1339_v63 = vmul.f32 1.442695, %v1322_v15  ;;  %3960 = vmatprep.mubr.msk.f32.mxu1 %vm4244_vm7, %v4243_v1  ;;  %3950 = vmatprep.mubr.msk.f32.mxu0 %vm4244_vm7, %v4243_v1 }
 0x454   :  { %v1287_v21 = vpop.xlane.xlu0 %1286 }
 0x455   :  { %v1325_v47 = vsub.f32 %v904_v48, %v1287_v21 }
 0x457   :  { %v1345_v40 = vmul.f32 1.442695, %v1325_v47 }
 0x458   :  { %v1290_v59 = vpop.xlane.xlu0 %1289 }
 0x459   :  { %4091 = vpow2.f32 %v1345_v40  ;;  %v1326_v62 = vsub.f32 %v936_v32, %v1290_v59 }
 0x45a   :  { %v4858_v52 = vpop.eup %4087  ;;  %4093 = vpow2.f32 %v1337_v19 }
 0x45b   :  { %v1347_v36 = vmul.f32 1.442695, %v1326_v62  ;;  %v1378_v13 = vsel %vm1272_vm6, %v4858_v52, 0.0 }
 0x45c   :  { %v1293_v56 = vpop.xlane.xlu0 %1292  ;;  %1379 = vadd.xlane.f32.xlu0 %v1378_v13 }
 0x45d   :  { %4095 = vpow2.f32 %v1347_v36  ;;  %v1327_v14 = vsub.f32 %v968_v53, %v1293_v56 }
 0x45e   :  { %4097 = vpow2.f32 %v1339_v63 }
 0x45f   :  { %v4862_v48 = vpop.eup %4089  ;;  %v1349_v24 = vmul.f32 1.442695, %v1327_v14  ;;  %v1299_v51 = vpop.xlane.xlu1 %1298 }
 0x460   :  { %v1329_v35 = vsub.f32 %v4825_v60, %v1299_v51  ;;  %v1296_v32 = vpop.xlane.xlu0 %1295  ;;  %v1375_v43 = vsel %vm1272_vm6, %v4862_v48, 0.0 }
 0x461   :  { %4099 = vpow2.f32 %v1349_v24  ;;  %v1328_v29 = vsub.f32 %v4819_v7, %v1296_v32  ;;  %1376 = vadd.xlane.f32.xlu1 %v1375_v43 }
 0x462   :  { %v1353_v3 = vmul.f32 1.442695, %v1329_v35 }
 0x463   :  { %v1351_v30 = vmul.f32 1.442695, %v1328_v29 }
 0x464   :  { %4101 = vpow2.f32 %v1353_v3  ;;  %v1302_v18 = vpop.xlane.xlu0 %1301 }
 0x465   :  { %4103 = vpow2.f32 %v1351_v30  ;;  %v1330_v53 = vsub.f32 %v4823_v8, %v1302_v18 }
 0x466   :  { %v4869_v37 = vpop.eup %4091 }
 0x467   :  { %v1355_v20 = vmul.f32 1.442695, %v1330_v53  ;;  %v1381_v60 = vsel %vm1272_vm6, %v4869_v37, 0.0  ;;  %v4873_v38 = vpop.eup %4093 }
 0x468   :  { %v1308_v28 = vpop.xlane.xlu0 %1307  ;;  %1382 = vadd.xlane.f32.xlu1 %v1381_v60  ;;  %v1369_v61 = vsel %vm1272_vm6, %v4873_v38, 0.0 }
 0x469   :  { %4105 = vpow2.f32 %v1355_v20  ;;  %v1332_v7 = vsub.f32 %v4831_v49, %v1308_v28 }
 0x46a   :  { %v4876_v44 = vpop.eup %4095 }
 0x46b   :  { %v1359_v54 = vmul.f32 1.442695, %v1332_v7  ;;  %v1305_v0 = vpop.xlane.xlu1 %1304  ;;  %v1384_v8 = vsel %vm1272_vm6, %v4876_v44, 0.0  ;;  %v4882_v27 = vpop.eup %4097 }
 0x46c   :  { %v1331_v55 = vsub.f32 %v4839_v42, %v1305_v0  ;;  %v1314_v26 = vpop.xlane.xlu0 %1313  ;;  %1385 = vadd.xlane.f32.xlu0 %v1384_v8  ;;  %1370 = vadd.xlane.f32.xlu1 %v1369_v61  ;;  %v1372_v19 = vsel %vm1272_vm6, %v4882_v27, 0.0 }
 0x46d   :  { %4107 = vpow2.f32 %v1359_v54  ;;  %v1334_v49 = vsub.f32 %v4837_v34, %v1314_v26 }
 0x46e   :  { %v4888_v9 = vpop.eup %4099  ;;  %v1357_v21 = vmul.f32 1.442695, %v1331_v55 }
 0x46f   :  { %v1363_v47 = vmul.f32 1.442695, %v1334_v49  ;;  %v1387_v42 = vsel %vm1272_vm6, %v4888_v9, 0.0 }
 0x470   :  { %4109 = vpow2.f32 %v1357_v21  ;;  %1388 = vadd.xlane.f32.xlu0 %v1387_v42  ;;  %1373 = vadd.xlane.f32.xlu1 %v1372_v19 }
 0x471   :  { %v4898_v34 = vpop.eup %4101  ;;  %4111 = vpow2.f32 %v1363_v47 }
 0x472   :  { %v4900_v12 = vpop.eup %4103  ;;  %v1393_v22 = vsel %vm1272_vm6, %v4898_v34, 0.0 }
 0x473   :  { %v1390_v15 = vsel %vm1272_vm6, %v4900_v12, 0.0 }
 0x474   :  { %1391 = vadd.xlane.f32.xlu0 %v1390_v15  ;;  %1394 = vadd.xlane.f32.xlu1 %v1393_v22 }
 0x476   :  { %v4906_v40 = vpop.eup %4105 }
 0x477   :  { %v1311_v59 = vpop.xlane.xlu1 %1310  ;;  %v1396_v62 = vsel %vm1272_vm6, %v4906_v40, 0.0 }
 0x478   :  { %v1333_v63 = vsub.f32 %v4845_v10, %v1311_v59  ;;  %1397 = vadd.xlane.f32.xlu0 %v1396_v62 }
 0x47a   :  { %v4911_v36 = vpop.eup %4107  ;;  %v1361_v13 = vmul.f32 1.442695, %v1333_v63 }
 0x47b   :  { %v1402_v56 = vsel %vm1272_vm6, %v4911_v36, 0.0 }
 0x47c   :  { %4113 = vpow2.f32 %v1361_v13  ;;  %1403 = vadd.xlane.f32.xlu0 %v1402_v56 }
 0x47d   :  { %v4919_v14 = vpop.eup %4109 }
 0x47e   :  { %v4921_v24 = vpop.eup %4111  ;;  %v1399_v10 = vsel %vm1272_vm6, %v4919_v14, 0.0 }
 0x47f   :  { %1400 = vadd.xlane.f32.xlu1 %v1399_v10  ;;  %v1408_v51 = vsel %vm1272_vm6, %v4921_v24, 0.0 }
 0x480   :  { %1409 = vadd.xlane.f32.xlu0 %v1408_v51 }
 0x483   :  { %v1317_v35 = vpop.xlane.xlu1 %1316 }
 0x484   :  { %v1335_v32 = vsub.f32 %v4849_v16, %v1317_v35 }
 0x486   :  { %v1365_v43 = vmul.f32 1.442695, %v1335_v32 }
 0x487   :  { %v1320_v29 = vpop.xlane.xlu0 %1319 }
 0x488   :  { %4115 = vpow2.f32 %v1365_v43  ;;  %v1336_v3 = vsub.f32 %v4853_v11, %v1320_v29 }
 0x489   :  { %v4929_v30 = vpop.eup %4113 }
 0x48a   :  { %v1367_v18 = vmul.f32 1.442695, %v1336_v3  ;;  %v1405_v53 = vsel %vm1272_vm6, %v4929_v30, 0.0 }
 0x48b   :  { %1406 = vadd.xlane.f32.xlu1 %v1405_v53 }
 0x48c   :  { %4117 = vpow2.f32 %v1367_v18 }
 0x495   :  { %v4933_v20 = vpop.eup %4115 }
 0x496   :  { %v1411_v60 = vsel %vm1272_vm6, %v4933_v20, 0.0 }
 0x497   :  { %1412 = vadd.xlane.f32.xlu1 %v1411_v60 }
 0x499   :  { %v4937_v16 = vpop.eup %4117 }
 0x49a   :  { %v1414_v28 = vsel %vm1272_vm6, %v4937_v16, 0.0 }
 0x49b   :  { %1415 = vadd.xlane.f32.xlu0 %v1414_v28 }
 0x4e5   :  { %v1380_v11 = vpop.xlane.xlu0 %1379 }
 0x4e6   :  { %4119 = vrcp.f32 %v1380_v11 }
 0x4ea   :  { %v1377_v7 = vpop.xlane.xlu1 %1376 }
 0x4eb   :  { %4121 = vrcp.f32 %v1377_v7 }
 0x4f1   :  { %v1383_v54 = vpop.xlane.xlu1 %1382 }
 0x4f2   :  { %4123 = vrcp.f32 %v1383_v54 }
 0x4f3   :  { %v4120_v0 = vpop.eup %4119 }
 0x4f4   :  { %v1436_v8 = vmul.f32 %v4120_v0, %v4858_v52 }
 0x4f5   :  { %v1386_v61 = vpop.xlane.xlu0 %1385  ;;  %v1371_v55 = vpop.xlane.xlu1 %1370 }
 0x4f6   :  { %4125 = vrcp.f32 %v1386_v61  ;;  %1452 = vst.msk [vmem:[%s5601_s7 + $0xc] sm:$0xf] %vm1272_vm6, %v1436_v8 }
 0x4f7   :  { %4127 = vrcp.f32 %v1371_v55 }
 0x4f8   :  { %v4122_v26 = vpop.eup %4121 }
 0x4f9   :  { %v1389_v49 = vpop.xlane.xlu0 %1388  ;;  %v1374_v21 = vpop.xlane.xlu1 %1373  ;;  %v1435_v47 = vmul.f32 %v4122_v26, %v4862_v48 }
 0x4fa   :  { %4129 = vrcp.f32 %v1389_v49 }
 0x4fb   :  { %4131 = vrcp.f32 %v1374_v21  ;;  %1451 = vst.msk [vmem:[%s5601_s7 + $0x8] sm:$0xf] %vm1272_vm6, %v1435_v47  ;;  %3961 = vmatmul.mubr.msk.f32.vlgmr.msra.gmra.mxu1 %vm1465_vm8, %v1435_v47 }
 0x4fc   :  { %3964 = vmatpush3.msra.mxu1 %v4356_v23  ;;  %3965 = vmatprep.mubr.msk.f32.mxu1 %vm4244_vm7, %v4243_v1 }
 0x4fd   :  { %v1392_v52 = vpop.xlane.xlu0 %1391  ;;  %v1395_v42 = vpop.xlane.xlu1 %1394  ;;  %3968 = vmatprep.subr.mxu1 %v4243_v1 }
 0x4fe   :  { %4133 = vrcp.f32 %v1392_v52 }
 0x4ff   :  { %v4124_v48 = vpop.eup %4123  ;;  %4135 = vrcp.f32 %v1395_v42  ;;  %3966 = vmatmul.mubr.msk.f32.vlgmr.msra.gmra.mxu1 %vm1465_vm8, %v1436_v8 }
 0x500   :  { %3969 = vmatpush3.msra.mxu1 %v4361_v25  ;;  %3970 = vmatprep.mubr.msk.f32.mxu1 %vm4244_vm7, %v4243_v1  ;;  %v1437_v19 = vmul.f32 %v4124_v48, %v4869_v37 }
 0x501   :  { %v1398_v23 = vpop.xlane.xlu0 %1397  ;;  %3973 = vmatprep.subr.mxu1 %v4243_v1 }
 0x502   :  { %4137 = vrcp.f32 %v1398_v23  ;;  %1453 = vst.msk [vmem:[%s5601_s7 + $0x10] sm:$0xf] %vm1272_vm6, %v1437_v19 }
 0x503   :  { %v4126_v22 = vpop.eup %4125  ;;  %3971 = vmatmul.mubr.msk.f32.vlgmr.msra.gmra.mxu1 %vm1465_vm8, %v1437_v19 }
 0x504   :  { %v4128_v15 = vpop.eup %4127  ;;  %3974 = vmatpush3.msra.mxu1 %v4378_v31  ;;  %3975 = vmatprep.mubr.msk.f32.mxu1 %vm4244_vm7, %v4243_v1  ;;  %v1438_v25 = vmul.f32 %v4126_v22, %v4876_v44 }
 0x505   :  { %v1433_v37 = vmul.f32 %v4128_v15, %v4873_v38  ;;  %v1404_v59 = vpop.xlane.xlu0 %1403  ;;  %3978 = vmatprep.subr.mxu1 %v4243_v1 }
 0x506   :  { %4139 = vrcp.f32 %v1404_v59  ;;  %1454 = vst.msk [vmem:[%s5601_s7 + $0x14] sm:$0xf] %vm1272_vm6, %v1438_v25 }
 0x507   :  { %v4130_v62 = vpop.eup %4129  ;;  %1449 = vst.msk [vmem:[%s5601_s7] sm:$0xf] %vm1272_vm6, %v1433_v37  ;;  %3951 = vmatmul.mubr.msk.f32.vlgmr.msra.gmra.mxu0 %vm1465_vm8, %v1433_v37  ;;  %3976 = vmatmul.mubr.msk.f32.vlgmr.msra.gmra.mxu1 %vm1465_vm8, %v1438_v25 }
 0x508   :  { %v4132_v31 = vpop.eup %4131  ;;  %v1401_v38 = vpop.xlane.xlu1 %1400  ;;  %3954 = vmatpush3.msra.mxu0 %v4338_v17  ;;  %3955 = vmatprep.mubr.msk.f32.mxu0 %vm4244_vm7, %v4243_v1  ;;  %v1439_v44 = vmul.f32 %v4130_v62, %v4888_v9 }
 0x509   :  { %4141 = vrcp.f32 %v1401_v38  ;;  %v1410_v63 = vpop.xlane.xlu0 %1409  ;;  %v1434_v13 = vmul.f32 %v4132_v31, %v4882_v27  ;;  %3979 = vmatpush3.msra.mxu1 %v4383_v33  ;;  %3980 = vmatprep.mubr.msk.f32.mxu1 %vm4244_vm7, %v4243_v1 }
 0x50a   :  { %4143 = vrcp.f32 %v1410_v63  ;;  %1455 = vst.msk [vmem:[%s5601_s7 + $0x18] sm:$0xf] %vm1272_vm6, %v1439_v44  ;;  %3983 = vmatprep.subr.mxu1 %v4243_v1  ;;  %3993 = vmatprep.subr.mxu0 %v4243_v1 }
 0x50b   :  { %v4134_v17 = vpop.eup %4133  ;;  %1450 = vst.msk [vmem:[%s5601_s7 + $0x4] sm:$0xf] %vm1272_vm6, %v1434_v13  ;;  %3956 = vmatmul.mubr.msk.f32.vlgmr.msra.gmra.mxu0 %vm1465_vm8, %v1434_v13  ;;  %3981 = vmatmul.mubr.msk.f32.vlgmr.msra.gmra.mxu1 %vm1465_vm8, %v1439_v44 }
 0x50c   :  { %v4136_v33 = vpop.eup %4135  ;;  %3984 = vmatpush3.msra.mxu1 %v4400_v39  ;;  %3985 = vmatprep.mubr.msk.f32.mxu1 %vm4244_vm7, %v4243_v1  ;;  %v1440_v27 = vmul.f32 %v4134_v17, %v4900_v12 }
 0x50d   :  { %3988 = vmatprep.subr.mxu1 %v4243_v1  ;;  %3994 = vmatpush3.msra.mxu0 %v4416_v45  ;;  %v1441_v9 = vmul.f32 %v4136_v33, %v4898_v34  ;;  %v5158_v33 = vld [vmem:[%s5600_s5] sm:$0x7f] }
 0x50e   :  { %1456 = vst.msk [vmem:[%s5601_s7 + $0x1c] sm:$0xf] %vm1272_vm6, %v1440_v27  ;;  %3995 = vmatprep.mubr.msk.f32.mxu0 %vm4244_vm7, %v4243_v1  ;;  %4003 = vmatprep.subr.mxu0 %v4243_v1 }
 0x50f   :  { %v4138_v39 = vpop.eup %4137  ;;  %3986 = vmatmul.mubr.msk.f32.vlgmr.msra.gmra.mxu1 %vm1465_vm8, %v1440_v27  ;;  %1457 = vst.msk [vmem:[%s5601_s7 + $0x20] sm:$0xf] %vm1272_vm6, %v1441_v9  ;;  %v2890_v27 = vrot.slane %v5158_v33, 5 }
 0x510   :  { %3989 = vmatpush3.msra.mxu1 %v4405_v41  ;;  %3990 = vmatprep.mubr.msk.f32.mxu1 %vm4244_vm7, %v4243_v1  ;;  %v1442_v45 = vmul.f32 %v4138_v39, %v4906_v40 }
 0x511   :  { %3998 = vmatprep.subr.mxu1 %v4243_v1  ;;  %4044 = vpush %v2890_v27 }
 0x512   :  { %1458 = vst.msk [vmem:[%s5601_s7 + $0x24] sm:$0xf] %vm1272_vm6, %v1442_v45  ;;  %3996 = vmatmul.mubr.msk.f32.vlgmr.msra.gmra.mxu0 %vm1465_vm8, %v1442_v45 }
 0x513   :  { %v4140_v34 = vpop.eup %4139  ;;  %3991 = vmatmul.mubr.msk.f32.vlgmr.msra.gmra.mxu1 %vm1465_vm8, %v1441_v9  ;;  %4004 = vmatpush3.msra.mxu0 %v4433_v50  ;;  %v5162_v9 = vsub.s32 3, %v4478_v5 }
 0x514   :  { %v1407_v41 = vpop.xlane.xlu1 %1406  ;;  %4005 = vmatprep.mubr.msk.f32.mxu0 %vm4244_vm7, %v4243_v1  ;;  %v1444_v12 = vmul.f32 %v4140_v34, %v4911_v36  ;;  %3999 = vmatpush3.msra.mxu1 %v4420_v46 }
 0x515   :  { %4145 = vrcp.f32 %v1407_v41  ;;  %4000 = vmatprep.mubr.msk.f32.mxu1 %vm4244_vm7, %v4243_v1  ;;  %4013 = vmatprep.subr.mxu0 %v4243_v1  ;;  %v5166_v39 = vrot.slane %v5158_v33, %v5162_v9 }
 0x516   :  { %v4142_v40 = vpop.eup %4141  ;;  %1460 = vst.msk [vmem:[%s5601_s7 + $0x2c] sm:$0xf] %vm1272_vm6, %v1444_v12  ;;  %4006 = vmatmul.mubr.msk.f32.vlgmr.msra.gmra.mxu0 %vm1465_vm8, %v1444_v12  ;;  %4008 = vmatprep.subr.mxu1 %v4243_v1 }
 0x517   :  { %v4144_v50 = vpop.eup %4143  ;;  %v1443_v36 = vmul.f32 %v4142_v40, %v4919_v14  ;;  %4014 = vmatpush3.msra.mxu0 %v4453_v58  ;;  %4015 = vmatprep.mubr.msk.f32.mxu0 %vm4244_vm7, %v4243_v1 }
 0x518   :  { %v1446_v46 = vmul.f32 %v4144_v50, %v4921_v24  ;;  %4023 = vmatprep.subr.mxu0 %v4243_v1 }
 0x519   :  { %1459 = vst.msk [vmem:[%s5601_s7 + $0x28] sm:$0xf] %vm1272_vm6, %v1443_v36  ;;  %4001 = vmatmul.mubr.msk.f32.vlgmr.msra.gmra.mxu1 %vm1465_vm8, %v1443_v36 }
 0x51a   :  { %1462 = vst.msk [vmem:[%s5601_s7 + $0x34] sm:$0xf] %vm1272_vm6, %v1446_v46  ;;  %4016 = vmatmul.mubr.msk.f32.vlgmr.msra.gmra.mxu0 %vm1465_vm8, %v1446_v46  ;;  %4009 = vmatpush3.msra.mxu1 %v4451_v57  ;;  %v5172_v46 = vsub.s32 4, %v4478_v5 }
 0x51b   :  { %4010 = vmatprep.mubr.msk.f32.mxu1 %vm4244_vm7, %v4243_v1  ;;  %4018 = vmatprep.subr.mxu1 %v4243_v1 }
 0x51c   :  { %4024 = vmatpush3.msra.mxu0 %v4475_v4  ;;  %4025 = vmatprep.mubr.msk.f32.mxu0 %vm4244_vm7, %v4243_v1 }
 0x520   :  { %v1413_v58 = vpop.xlane.xlu1 %1412 }
 0x521   :  { %4147 = vrcp.f32 %v1413_v58 }
 0x522   :  { %v4146_v56 = vpop.eup %4145 }
 0x523   :  { %v1445_v14 = vmul.f32 %v4146_v56, %v4929_v30  ;;  %v5176_v56 = vrot.slane %v5158_v33, %v5172_v46 }
 0x524   :  { %v1416_v24 = vpop.xlane.xlu0 %1415 }
 0x525   :  { %4149 = vrcp.f32 %v1416_v24  ;;  %1461 = vst.msk [vmem:[%s5601_s7 + $0x30] sm:$0xf] %vm1272_vm6, %v1445_v14  ;;  %4011 = vmatmul.mubr.msk.f32.vlgmr.msra.gmra.mxu1 %vm1465_vm8, %v1445_v14 }
 0x526   :  { %4019 = vmatpush3.msra.mxu1 %v4473_v2  ;;  %4020 = vmatprep.mubr.msk.f32.mxu1 %vm4244_vm7, %v4243_v1  ;;  %v2635_v2 = vld [vmem:[%s5602_s4 + $0x8] sm:$0xf]  ;;  %v2634_v1 = vld [vmem:[%s5602_s4] sm:$0xff] }
 0x527   :  { %4028 = vmatprep.subr.msk.mxu1 %vm151_vm0, %v2635_v2 }
 0x52e   :  { %v4148_v57 = vpop.eup %4147 }
 0x52f   :  { %v1447_v4 = vmul.f32 %v4148_v57, %v4933_v20 }
 0x531   :  { %1463 = vst.msk [vmem:[%s5601_s7 + $0x38] sm:$0xf] %vm1272_vm6, %v1447_v4  ;;  %4021 = vmatmul.mubr.msk.f32.vlgmr.msra.gmra.mxu1 %vm1465_vm8, %v1447_v4 }
 0x532   :  { %v4150_v10 = vpop.eup %4149  ;;  %4029 = vmatpush3.msk.msra.mxu1 %vm151_vm0, %v2635_v2  ;;  %vm3004_vm0 = vcmask 1047559  }
 0x533   :  { %v1448_v51 = vmul.f32 %v4150_v10, %v4937_v16  ;;  %4030 = vmatprep.subr.mxu1 %v2634_v1 }
 0x534   :  { %4031 = vmatpush3.msra.mxu1 %v2634_v1 }
 0x535   :  { %1464 = vst.msk [vmem:[%s5601_s7 + $0x3c] sm:$0xf] %vm1272_vm6, %v1448_v51  ;;  %4026 = vmatmul.mubr.msk.f32.vlgmr.msra.gmra.mxu0 %vm1465_vm8, %v1448_v51 }
 0x542   :  { %s4045_s5 = spop %4044 }
 0x5bb   :  { %v5099_v35 = vpop.f32.mrf.mxu1 }
 0x5bd   :  { %v3962_v32 = vpop.f32.mrf.mxu1 }
 0x5bf   :  { %v5101_v43 = vpop.f32.mrf.mxu1 }
 0x5c0   :  { %v2657_v7 = vcombine.low %v5099_v35, %v5101_v43 }
 0x5c1   :  { %v3967_v29 = vpop.f32.mrf.mxu1 }
 0x5c3   :  { %v5103_v3 = vpop.f32.mrf.mxu1 }
 0x5c5   :  { %v3972_v30 = vpop.f32.mrf.mxu1 }
 0x5c7   :  { %v5105_v18 = vpop.f32.mrf.mxu0  ;;  %v5107_v53 = vpop.f32.mrf.mxu1 }
 0x5c8   :  { %v2658_v8 = vcombine.low %v5103_v3, %v5107_v53 }
 0x5c9   :  { %v3952_v20 = vpop.f32.mrf.mxu0  ;;  %v3977_v60 = vpop.f32.mrf.mxu1 }
 0x5cb   :  { %v5109_v16 = vpop.f32.mrf.mxu0  ;;  %v5111_v28 = vpop.f32.mrf.mxu1 }
 0x5cc   :  { %v2656_v11 = vcombine.low %v5105_v18, %v5109_v16 }
 0x5cd   :  { %v3957_v54 = vpop.f32.mrf.mxu0  ;;  %v3982_v0 = vpop.f32.mrf.mxu1 }
 0x5ce   :  { %4032 = vmatprep.mubr.msk.f32.mxu1 %vm102_vm1, %v2656_v11 }
 0x5cf   :  { %4033 = vmatmul.mubr.msk.f32.vlgmr.msra.gmra.mxu1 %vm102_vm1, %v2657_v7  ;;  %v5121_v61 = vpop.f32.mrf.mxu1 }
 0x5d0   :  { %v2659_v55 = vcombine.low %v5111_v28, %v5121_v61  ;;  %4035 = vmatprep.mubr.msk.f32.mxu1 %vm102_vm1, %v2658_v8 }
 0x5d1   :  { %v3987_v26 = vpop.f32.mrf.mxu1 }
 0x5d2   :  { %v5126_v49 = vpop.f32.mrf.mxu0 }
 0x5d3   :  { %4036 = vmatmul.mubr.msk.f32.gmra.mxu1 %vm102_vm1, %v2659_v55  ;;  %v5129_v21 = vpop.f32.mrf.mxu1 }
 0x5d4   :  { %v2660_v47 = vcombine.low %v5129_v21, %v5126_v49  ;;  %v3997_v52 = vpop.f32.mrf.mxu0 }
 0x5d5   :  { %v3992_v42 = vpop.f32.mrf.mxu1 }
 0x5d6   :  { %v5133_v48 = vpop.f32.mrf.mxu0  ;;  %4038 = vmatprep.mubr.msk.f32.mxu1 %vm102_vm1, %v2660_v47 }
 0x5d8   :  { %v4007_v19 = vpop.f32.mrf.mxu0 }
 0x5d9   :  { %v5136_v23 = vpop.f32.mrf.mxu1 }
 0x5da   :  { %v2661_v22 = vcombine.low %v5136_v23, %v5133_v48  ;;  %v5140_v15 = vpop.f32.mrf.mxu0 }
 0x5db   :  { %v4002_v25 = vpop.f32.mrf.mxu1 }
 0x5dc   :  { %v4017_v37 = vpop.f32.mrf.mxu0  ;;  %4039 = vmatmul.mubr.msk.f32.gmra.mxu1 %vm102_vm1, %v2661_v22 }
 0x5e5   :  { %v5143_v59 = vpop.f32.mrf.mxu1 }
 0x5e6   :  { %v2662_v62 = vcombine.low %v5143_v59, %v5140_v15 }
 0x5e7   :  { %v4012_v31 = vpop.f32.mrf.mxu1 }
 0x5e8   :  { %4041 = vmatprep.mubr.msk.f32.mxu1 %vm102_vm1, %v2662_v62 }
 0x5f1   :  { %v5148_v38 = vpop.f32.mrf.mxu1 }
 0x5f3   :  { %v4022_v44 = vpop.f32.mrf.mxu1 }
 0x5f5   :  { %v5150_v63 = vpop.f32.mrf.mxu0 }
 0x5f6   :  { %v2663_v13 = vcombine.low %v5148_v38, %v5150_v63 }
 0x5f7   :  { %v4027_v17 = vpop.f32.mrf.mxu0 }
 0x5f8   :  { %4042 = vmatmul.mubr.msk.f32.gmra.mxu1 %vm102_vm1, %v2663_v13 }
 0x68f   :  { %v4034_v45 = vpop.f32.mrf.mxu1 }
 0x690   :  { %v2755_v34 = vadd.f32 %v4034_v45, %v5166_v39 }
 0x691   :  { %v2749_v41 = vpop.f32.mrf.mxu1 }
 0x692   :  { %4151 = vtanh.f32 %v2755_v34  ;;  %v2750_v12 = vadd.f32 %v2749_v41, %v5166_v39 }
 0x693   :  { %v4037_v40 = vpop.f32.mrf.mxu1 }
 0x694   :  { %4153 = vtanh.f32 %v2750_v12  ;;  %v2765_v2 = vadd.f32 %v4037_v40, %v5166_v39 }
 0x695   :  { %v2759_v50 = vpop.f32.mrf.mxu1 }
 0x696   :  { %v2760_v36 = vadd.f32 %v2759_v50, %v5166_v39 }
 0x698   :  { %4155 = vtanh.f32 %v2760_v36 }
 0x69c   :  { %v4040_v58 = vpop.f32.mrf.mxu1 }
 0x69d   :  { %v2775_v14 = vadd.f32 %v4040_v58, %v5166_v39 }
 0x69e   :  { %v2769_v24 = vpop.f32.mrf.mxu1 }
 0x69f   :  { %v4152_v57 = vpop.eup %4151  ;;  %4157 = vtanh.f32 %v2775_v14  ;;  %v2770_v4 = vadd.f32 %v2769_v24, %v5166_v39 }
 0x6a0   :  { %v2826_v10 = vmul.f32 %v4152_v57, %v5176_v56  ;;  %v2805_v30 = vcombine.high %v4152_v57, %v4152_v57 }
 0x6a1   :  { %v4154_v51 = vpop.eup %4153  ;;  %4159 = vtanh.f32 %v2770_v4 }
 0x6a2   :  { %v2847_v1 = vsel %vm2840_vm9, %v2826_v10, 0.0  ;;  %v2824_v32 = vmul.f32 %v4154_v51, %v5176_v56  ;;  %v2804_v29 = vcombine.high %v4154_v51, %v4154_v51  ;;  %4161 = vtanh.f32 %v2765_v2 }
 0x6a3   :  { %2848 = vadd.xlane.f32.xlu1 %v2847_v1  ;;  %v2827_v7 = vmul.f32 %v5176_v56, %v2805_v30 }
 0x6a4   :  { %v2825_v20 = vmul.f32 %v5176_v56, %v2804_v29  ;;  %v2841_v60 = vsel %vm2840_vm9, %v2824_v32, 0.0 }
 0x6a5   :  { %v4156_v54 = vpop.eup %4155  ;;  %v2850_v0 = vsel %vm2840_vm9, %v2827_v7, 0.0 }
 0x6a6   :  { %v2844_v11 = vsel %vm2840_vm9, %v2825_v20, 0.0  ;;  %v2828_v8 = vmul.f32 %v4156_v54, %v5176_v56  ;;  %v2806_v55 = vcombine.high %v4156_v54, %v4156_v54 }
 0x6a7   :  { %2842 = vadd.xlane.f32.xlu1 %v2841_v60  ;;  %2845 = vadd.xlane.f32.xlu0 %v2844_v11 }
 0x6a8   :  { %v2853_v19 = vsel %vm2840_vm9, %v2828_v8, 0.0  ;;  %v2829_v22 = vmul.f32 %v5176_v56, %v2806_v55 }
 0x6aa   :  { %v2856_v31 = vsel %vm2840_vm9, %v2829_v22, 0.0 }
 0x6ab   :  { %2851 = vadd.xlane.f32.xlu1 %v2850_v0 }
 0x6ac   :  { %v4158_v26 = vpop.eup %4157 }
 0x6ad   :  { %v2834_v47 = vmul.f32 %v4158_v26, %v5176_v56  ;;  %v2809_v52 = vcombine.high %v4158_v26, %v4158_v26  ;;  %v5612_v26 = vlaneseq }
 0x6ae   :  { %v4160_v42 = vpop.eup %4159 }
 0x6af   :  { %2854 = vadd.xlane.f32.xlu1 %v2853_v19  ;;  %v2871_v25 = vsel %vm2840_vm9, %v2834_v47, 0.0  ;;  %v2835_v37 = vmul.f32 %v5176_v56, %v2809_v52  ;;  %v2808_v62 = vcombine.high %v4160_v42, %v4160_v42  ;;  %v2832_v44 = vmul.f32 %v4160_v42, %v5176_v56  ;;  %v4162_v13 = vpop.eup %4161 }
 0x6b0   :  { %2872 = vadd.xlane.f32.xlu0 %v2871_v25  ;;  %v2830_v34 = vmul.f32 %v4162_v13, %v5176_v56  ;;  %v2807_v41 = vcombine.high %v4162_v13, %v4162_v13  ;;  %v2927_v47 = vand.u32 127, %v5612_v26  ;;  %v5216_v52 = vstv %s4045_s5 }
 0x6b1   :  { %v2874_v17 = vsel %vm2840_vm9, %v2835_v37, 0.0  ;;  %v2833_v27 = vmul.f32 %v5176_v56, %v2808_v62  ;;  %v2865_v45 = vsel %vm2840_vm9, %v2832_v44, 0.0 }
 0x6b2   :  { %v2859_v58 = vsel %vm2840_vm9, %v2830_v34, 0.0  ;;  %v2831_v14 = vmul.f32 %v5176_v56, %v2807_v41  ;;  %v5225_v22 = vsub.s32 %v2927_v47, %v4478_v5 }
 0x6b3   :  { %2857 = vadd.xlane.f32.xlu1 %v2856_v31  ;;  %v2868_v12 = vsel %vm2840_vm9, %v2833_v27, 0.0 }
 0x6b4   :  { %2875 = vadd.xlane.f32.xlu0 %v2874_v17  ;;  %v2862_v57 = vsel %vm2840_vm9, %v2831_v14, 0.0 }
 0x6b7   :  { %2866 = vadd.xlane.f32.xlu1 %v2865_v45 }
 0x6b8   :  { %v4043_v40 = vpop.f32.mrf.mxu1  ;;  %2869 = vadd.xlane.f32.xlu0 %v2868_v12 }
 0x6b9   :  { %v2785_v50 = vadd.f32 %v4043_v40, %v5166_v39 }
 0x6ba   :  { %v2779_v36 = vpop.f32.mrf.mxu1 }
 0x6bb   :  { %4163 = vtanh.f32 %v2785_v50  ;;  %v2780_v24 = vadd.f32 %v2779_v36, %v5166_v39  ;;  %2860 = vadd.xlane.f32.xlu1 %v2859_v58 }
 0x6bd   :  { %4165 = vtanh.f32 %v2780_v24 }
 0x6bf   :  { %2863 = vadd.xlane.f32.xlu1 %v2862_v57 }
 0x6c8   :  { %v4164_v4 = vpop.eup %4163 }
 0x6c9   :  { %v2838_v10 = vmul.f32 %v4164_v4, %v5176_v56  ;;  %v2811_v39 = vcombine.high %v4164_v4, %v4164_v4 }
 0x6ca   :  { %v4166_v51 = vpop.eup %4165 }
 0x6cb   :  { %v2883_v2 = vsel %vm2840_vm9, %v2838_v10, 0.0  ;;  %v2836_v1 = vmul.f32 %v4166_v51, %v5176_v56  ;;  %v2810_v32 = vcombine.high %v4166_v51, %v4166_v51  ;;  %v2839_v60 = vmul.f32 %v5176_v56, %v2811_v39 }
 0x6cc   :  { %2884 = vadd.xlane.f32.xlu0 %v2883_v2 }
 0x6cd   :  { %v2877_v29 = vsel %vm2840_vm9, %v2836_v1, 0.0  ;;  %v2837_v30 = vmul.f32 %v5176_v56, %v2810_v32  ;;  %v2886_v11 = vsel %vm2840_vm9, %v2839_v60, 0.0 }
 0x6cf   :  { %v2880_v20 = vsel %vm2840_vm9, %v2837_v30, 0.0 }
 0x6d0   :  { %2878 = vadd.xlane.f32.xlu0 %v2877_v29 }
 0x6d4   :  { %2881 = vadd.xlane.f32.xlu0 %v2880_v20 }
 0x6d8   :  { %2887 = vadd.xlane.f32.xlu0 %v2886_v11 }
 0x72c   :  { %v2849_v7 = vpop.xlane.xlu1 %2848 }
 0x72d   :  { %v5235_v44 = vadd.f32 %v5216_v52, %v2849_v7 }
 0x72f   :  { %v2939_v40 = vrot.slane %v5235_v44, %v5225_v22 }
 0x730   :  { %v2843_v54 = vpop.xlane.xlu1 %2842  ;;  %v2846_v55 = vpop.xlane.xlu0 %2845 }
 0x731   :  { %v5219_v19 = vadd.f32 %v5216_v52, %v2843_v54  ;;  %v5222_v56 = vadd.f32 %v5216_v52, %v2846_v55 }
 0x733   :  { %v2931_v37 = vrot.slane %v5219_v19, %v5225_v22  ;;  %v2935_v62 = vrot.slane %v5222_v56, %v5225_v22 }
 0x734   :  { %v2852_v0 = vpop.xlane.xlu1 %2851 }
 0x735   :  { %v5232_v31 = vadd.f32 %v5216_v52, %v2852_v0  ;;  %v2993_v34 = vsel %vm2992_vm10, %v2935_v62, %v2931_v37 }
 0x736   :  { %v2995_v58 = vsel %vm2994_vm11, %v2939_v40, %v2993_v34 }
 0x737   :  { %v2943_v41 = vrot.slane %v5232_v31, %v5225_v22 }
 0x738   :  { %v2855_v8 = vpop.xlane.xlu1 %2854 }
 0x739   :  { %v5238_v13 = vadd.f32 %v5216_v52, %v2855_v8  ;;  %v2873_v17 = vpop.xlane.xlu0 %2872  ;;  %v2997_v57 = vsel %vm2996_vm12, %v2943_v41, %v2995_v58 }
 0x73a   :  { %v5278_v54 = vadd.f32 %v5216_v52, %v2873_v17 }
 0x73b   :  { %v2947_v50 = vrot.slane %v5238_v13, %v5225_v22 }
 0x73c   :  { %v2858_v42 = vpop.xlane.xlu1 %2857 }
 0x73d   :  { %v5241_v27 = vadd.f32 %v5216_v52, %v2858_v42  ;;  %v2876_v4 = vpop.xlane.xlu0 %2875  ;;  %v2999_v51 = vsel %vm2998_vm13, %v2947_v50, %v2997_v57  ;;  %v2971_v42 = vrot.slane %v5278_v54, %v5225_v22 }
 0x73e   :  { %v5283_v55 = vadd.f32 %v5216_v52, %v2876_v4 }
 0x73f   :  { %v2951_v36 = vrot.slane %v5241_v27, %v5225_v22 }
 0x740   :  { %v2867_v25 = vpop.xlane.xlu1 %2866  ;;  %v2975_v17 = vrot.slane %v5283_v55, %v5225_v22 }
 0x741   :  { %v3001_v2 = vsel %vm3000_vm14, %v2951_v36, %v2999_v51  ;;  %v2870_v39 = vpop.xlane.xlu0 %2869  ;;  %v5273_v60 = vadd.f32 %v5216_v52, %v2867_v25 }
 0x742   :  { %v5270_v20 = vadd.f32 %v5216_v52, %v2870_v39  ;;  %v5613_v39 = vld [vmem:[#allocation4_spill] sm:$0xff] }
 0x743   :  { %v2963_v0 = vrot.slane %v5273_v60, %v5225_v22 }
 0x744   :  { %v2861_v45 = vpop.xlane.xlu1 %2860  ;;  %v2967_v7 = vrot.slane %v5270_v20, %v5225_v22 }
 0x745   :  { %v5247_v12 = vadd.f32 %v5216_v52, %v2861_v45 }
 0x746   :  { %v3006_v26 = vsel %vm2992_vm10, %v2967_v7, %v2963_v0  ;;  %v5614_v7 = vld [vmem:[#allocation3_spill] sm:$0xff] }
 0x747   :  { %v2955_v14 = vrot.slane %v5247_v12, %v5225_v22  ;;  %v3007_v25 = vsel %vm2994_vm11, %v2971_v42, %v3006_v26 }
 0x748   :  { %v2864_v24 = vpop.xlane.xlu1 %2863  ;;  %v3008_v41 = vsel %vm2996_vm12, %v2975_v17, %v3007_v25 }
 0x749   :  { %v5260_v10 = vadd.f32 %v5216_v52, %v2864_v24  ;;  %v3003_v32 = vsel %vm3002_vm15, %v2955_v14, %v3001_v2 }
 0x74b   :  { %v2959_v1 = vrot.slane %v5260_v10, %v5225_v22 }
 0x74d   :  { %v3005_v29 = vsel %vm3004_vm0, %v2959_v1, %v3003_v32  ;;  %v4245_v1 = vmov 0   ;;  %v5318_v32 = vsub.s32 5, %v4478_v5 }
 0x74e   :  { %v3016_v30 = vsel %vm3015_vm2, %v3005_v29, -inf  ;;  %4054 = vset.pattern.permute.xlu0 %v4245_v1  ;;  %4053 = vset.pattern.permute.xlu1 %v4245_v1 }
 0x74f   :  { %3017 = vmax.xlane.f32.xlu1 %v3016_v30 }
 0x755   :  { %v2885_v11 = vpop.xlane.xlu0 %2884 }
 0x756   :  { %v5300_v34 = vadd.f32 %v5216_v52, %v2885_v11 }
 0x758   :  { %v2987_v24 = vrot.slane %v5300_v34, %v5225_v22 }
 0x759   :  { %v2879_v8 = vpop.xlane.xlu0 %2878 }
 0x75a   :  { %v5287_v47 = vadd.f32 %v5216_v52, %v2879_v8 }
 0x75c   :  { %v2979_v37 = vrot.slane %v5287_v47, %v5225_v22 }
 0x75d   :  { %v2882_v62 = vpop.xlane.xlu0 %2881 }
 0x75e   :  { %v5297_v45 = vadd.f32 %v5216_v52, %v2882_v62  ;;  %v3009_v50 = vsel %vm2998_vm13, %v2979_v37, %v3008_v41  ;;  %v5332_v62 = vsub.s32 7, %v4478_v5 }
 0x760   :  { %v2983_v40 = vrot.slane %v5297_v45, %v5225_v22 }
 0x761   :  { %v2888_v36 = vpop.xlane.xlu0 %2887 }
 0x762   :  { %v3010_v58 = vsel %vm3000_vm14, %v2983_v40, %v3009_v50  ;;  %v5308_v14 = vadd.f32 %v5216_v52, %v2888_v36  ;;  %v5321_v52 = vsub.s32 6, %v4478_v5 }
 0x763   :  { %v3011_v4 = vsel %vm3002_vm15, %v2987_v24, %v3010_v58 }
 0x764   :  { %v2991_v57 = vrot.slane %v5308_v14, %v5225_v22 }
 0x766   :  { %v3012_v51 = vsel %vm3004_vm0, %v2991_v57, %v3011_v4 }
 0x767   :  { %v3019_v2 = vsel %vm3015_vm2, %v3012_v51, -inf }
 0x768   :  { %3020 = vmax.xlane.f32.xlu0 %v3019_v2 }
 0x7d8   :  { %v3018_v29 = vpop.xlane.xlu1 %3017 }
 0x7d9   :  { %v3027_v30 = vrot.slane %v3018_v29, %v4485_v6  ;;  %v3031_v11 = vrot.slane %v3018_v29, %v5613_v39  ;;  %v3035_v0 = vrot.slane %v3018_v29, %v5614_v7  ;;  %v3047_v8 = vrot.slane %v3018_v29, %v5318_v32 }
 0x7da   :  { %v3039_v26 = vrot.slane %v3018_v29, %v5162_v9  ;;  %v3051_v17 = vrot.slane %v3018_v29, %v5321_v52  ;;  %v3043_v36 = vrot.slane %v3018_v29, %v5172_v46 }
 0x7db   :  { %v3104_v42 = vsub.f32 %v5219_v19, %v3027_v30  ;;  %v3105_v25 = vsub.f32 %v5222_v56, %v3031_v11  ;;  %v3106_v37 = vsub.f32 %v5235_v44, %v3035_v0  ;;  %v3109_v41 = vsub.f32 %v5241_v27, %v3047_v8 }
 0x7dc   :  { %v3107_v58 = vsub.f32 %v5232_v31, %v3039_v26  ;;  %v3055_v19 = vrot.slane %v3018_v29, %v5332_v62  ;;  %v3110_v56 = vsub.f32 %v5247_v12, %v3051_v17  ;;  %v3108_v5 = vsub.f32 %v5238_v13, %v3043_v36 }
 0x7dd   :  { %v3120_v40 = vmul.f32 1.442695, %v3104_v42  ;;  %v3122_v50 = vmul.f32 1.442695, %v3105_v25  ;;  %v3124_v24 = vmul.f32 1.442695, %v3106_v37 }
 0x7de   :  { %v3130_v44 = vmul.f32 1.442695, %v3109_v41  ;;  %v3126_v57 = vmul.f32 1.442695, %v3107_v58  ;;  %v3111_v27 = vsub.f32 %v5260_v10, %v3055_v19  ;;  %v3132_v4 = vmul.f32 1.442695, %v3110_v56 }
 0x7df   :  { %4167 = vpow2.f32 %v3120_v40  ;;  %v3128_v51 = vmul.f32 1.442695, %v3108_v5 }
 0x7e0   :  { %4169 = vpow2.f32 %v3122_v50  ;;  %v3134_v31 = vmul.f32 1.442695, %v3111_v27 }
 0x7e1   :  { %4171 = vpow2.f32 %v3124_v24 }
 0x7e2   :  { %4173 = vpow2.f32 %v3130_v44 }
 0x7e3   :  { %4175 = vpow2.f32 %v3126_v57 }
 0x7e4   :  { %4177 = vpow2.f32 %v3132_v4 }
 0x7e5   :  { %4179 = vpow2.f32 %v3128_v51 }
 0x7e6   :  { %4181 = vpow2.f32 %v3134_v31 }
 0x7ec   :  { %v5342_v2 = vpop.eup %4167 }
 0x7ed   :  { %v5344_v1 = vpop.eup %4169  ;;  %3169 = vperm.xlu1 %4053, %v5342_v2  }
 0x7ee   :  { %3172 = vperm.xlu0 %4054, %v5344_v1   ;;  %v5348_v13 = vpop.eup %4171 }
 0x7ef   :  { %v5350_v12 = vpop.eup %4173 }
 0x7f0   :  { %v5356_v11 = vpop.eup %4175 }
 0x7f1   :  { %3175 = vperm.xlu1 %4053, %v5348_v13   ;;  %v3021_v10 = vpop.xlane.xlu0 %3020  ;;  %v5361_v42 = vpop.eup %4177 }
 0x7f2   :  { %3184 = vperm.xlu0 %4054, %v5350_v12   ;;  %v3059_v29 = vrot.slane %v3021_v10, %v4485_v6  ;;  %v3063_v30 = vrot.slane %v3021_v10, %v5613_v39  ;;  %v3067_v0 = vrot.slane %v3021_v10, %v5614_v7  ;;  %v5365_v37 = vpop.eup %4179  ;;  %v3071_v17 = vrot.slane %v3021_v10, %v5162_v9 }
 0x7f3   :  { %v5369_v50 = vpop.eup %4181  ;;  %v3079_v58 = vrot.slane %v3021_v10, %v5318_v32  ;;  %v3083_v19 = vrot.slane %v3021_v10, %v5321_v52 }
 0x7f4   :  { %v3112_v8 = vsub.f32 %v5273_v60, %v3059_v29  ;;  %v3113_v26 = vsub.f32 %v5270_v20, %v3063_v30  ;;  %v3114_v41 = vsub.f32 %v5278_v54, %v3067_v0  ;;  %v3075_v20 = vrot.slane %v3021_v10, %v5172_v46 }
 0x7f5   :  { %3178 = vperm.xlu1 %4053, %v5356_v11   ;;  %v3115_v60 = vsub.f32 %v5283_v55, %v3071_v17  ;;  %v3117_v56 = vsub.f32 %v5297_v45, %v3079_v58  ;;  %v3087_v55 = vrot.slane %v3021_v10, %v5332_v62  ;;  %v3118_v57 = vsub.f32 %v5300_v34, %v3083_v19 }
 0x7f6   :  { %v3136_v25 = vmul.f32 1.442695, %v3112_v8  ;;  %3187 = vperm.xlu0 %4054, %v5361_v42   ;;  %v3138_v40 = vmul.f32 1.442695, %v3113_v26  ;;  %v3140_v36 = vmul.f32 1.442695, %v3114_v41  ;;  %v3116_v24 = vsub.f32 %v5287_v47, %v3075_v20 }
 0x7f7   :  { %v3142_v54 = vmul.f32 1.442695, %v3115_v60  ;;  %v3146_v27 = vmul.f32 1.442695, %v3117_v56  ;;  %v3119_v47 = vsub.f32 %v5308_v14, %v3087_v55  ;;  %v3148_v45 = vmul.f32 1.442695, %v3118_v57 }
 0x7f8   :  { %4183 = vpow2.f32 %v3136_v25  ;;  %v3144_v44 = vmul.f32 1.442695, %v3116_v24 }
 0x7f9   :  { %3181 = vperm.xlu1 %4053, %v5365_v37   ;;  %4185 = vpow2.f32 %v3138_v40  ;;  %v3150_v31 = vmul.f32 1.442695, %v3119_v47 }
 0x7fa   :  { %3190 = vperm.xlu0 %4054, %v5369_v50   ;;  %4187 = vpow2.f32 %v3140_v36 }
 0x7fb   :  { %4189 = vpow2.f32 %v3142_v54 }
 0x7fc   :  { %4191 = vpow2.f32 %v3144_v44 }
 0x7fd   :  { %4193 = vpow2.f32 %v3146_v27 }
 0x7fe   :  { %4195 = vpow2.f32 %v3148_v45 }
 0x7ff   :  { %4197 = vpow2.f32 %v3150_v31 }
 0x805   :  { %v5379_v5 = vpop.eup %4183 }
 0x806   :  { %3193 = vperm.xlu1 %4053, %v5379_v5   ;;  %v5384_v4 = vpop.eup %4185 }
 0x807   :  { %v5388_v51 = vpop.eup %4187 }
 0x808   :  { %v5391_v29 = vpop.eup %4189 }
 0x809   :  { %v5394_v34 = vpop.eup %4191 }
 0x80a   :  { %3196 = vperm.xlu1 %4053, %v5384_v4   ;;  %v5397_v10 = vpop.eup %4193 }
 0x80b   :  { %v5400_v14 = vpop.eup %4195 }
 0x80c   :  { %v5403_v30 = vpop.eup %4197 }
 0x80e   :  { %3199 = vperm.xlu1 %4053, %v5388_v51  }
 0x812   :  { %3202 = vperm.xlu1 %4053, %v5391_v29  }
 0x816   :  { %3205 = vperm.xlu1 %4053, %v5394_v34  }
 0x81a   :  { %3208 = vperm.xlu1 %4053, %v5397_v10  }
 0x81e   :  { %3211 = vperm.xlu1 %4053, %v5400_v14  }
 0x822   :  { %3214 = vperm.xlu1 %4053, %v5403_v30  }
 0x868   :  { %v3170_v0 = vpop.permute.xlu1 %3169 }
 0x869   :  { %v3173_v8 = vpop.permute.xlu0 %3172  ;;  %v3219_v17 = vrot.slane %v3170_v0, %v5225_v22 }
 0x86a   :  { %v3223_v41 = vrot.slane %v3173_v8, %v5225_v22 }
 0x86c   :  { %v3176_v26 = vpop.permute.xlu1 %3175  ;;  %v3280_v58 = vsel %vm2992_vm10, %v3223_v41, %v3219_v17 }
 0x86d   :  { %v3185_v25 = vpop.permute.xlu0 %3184  ;;  %v3227_v20 = vrot.slane %v3176_v26, %v5225_v22 }
 0x86e   :  { %v3239_v44 = vrot.slane %v3185_v25, %v5225_v22 }
 0x86f   :  { %v3281_v54 = vsel %vm2994_vm11, %v3227_v20, %v3280_v58 }
 0x870   :  { %v3179_v40 = vpop.permute.xlu1 %3178 }
 0x871   :  { %v3188_v60 = vpop.permute.xlu0 %3187  ;;  %v3231_v36 = vrot.slane %v3179_v40, %v5225_v22 }
 0x872   :  { %v3243_v57 = vrot.slane %v3188_v60, %v5225_v22 }
 0x873   :  { %v3282_v55 = vsel %vm2996_vm12, %v3231_v36, %v3281_v54 }
 0x874   :  { %v3182_v24 = vpop.permute.xlu1 %3181 }
 0x875   :  { %v3235_v19 = vrot.slane %v3182_v24, %v5225_v22  ;;  %v3191_v56 = vpop.permute.xlu0 %3190 }
 0x876   :  { %v3247_v47 = vrot.slane %v3191_v56, %v5225_v22 }
 0x877   :  { %v3283_v27 = vsel %vm2998_vm13, %v3235_v19, %v3282_v55 }
 0x878   :  { %v3284_v45 = vsel %vm3000_vm14, %v3239_v44, %v3283_v27 }
 0x879   :  { %v3285_v31 = vsel %vm3002_vm15, %v3243_v57, %v3284_v45 }
 0x87a   :  { %v3286_v0 = vsel %vm3004_vm0, %v3247_v47, %v3285_v31 }
 0x87b   :  { %v3296_v8 = vsel %vm3015_vm2, %v3286_v0, 0.0 }
 0x87c   :  { %3297 = vadd.xlane.f32.xlu0 %v3296_v8 }
 0x881   :  { %v3194_v26 = vpop.permute.xlu1 %3193 }
 0x882   :  { %v3251_v58 = vrot.slane %v3194_v26, %v5225_v22 }
 0x885   :  { %v3197_v17 = vpop.permute.xlu1 %3196 }
 0x886   :  { %v3255_v60 = vrot.slane %v3197_v17, %v5225_v22 }
 0x888   :  { %v3287_v56 = vsel %vm2992_vm10, %v3255_v60, %v3251_v58 }
 0x889   :  { %v3200_v25 = vpop.permute.xlu1 %3199 }
 0x88a   :  { %v3259_v36 = vrot.slane %v3200_v25, %v5225_v22 }
 0x88c   :  { %v3288_v55 = vsel %vm2994_vm11, %v3259_v36, %v3287_v56 }
 0x88d   :  { %v3203_v41 = vpop.permute.xlu1 %3202 }
 0x88e   :  { %v3263_v24 = vrot.slane %v3203_v41, %v5225_v22 }
 0x890   :  { %v3289_v27 = vsel %vm2996_vm12, %v3263_v24, %v3288_v55 }
 0x891   :  { %v3206_v40 = vpop.permute.xlu1 %3205 }
 0x892   :  { %v3267_v54 = vrot.slane %v3206_v40, %v5225_v22 }
 0x894   :  { %v3290_v47 = vsel %vm2998_vm13, %v3267_v54, %v3289_v27 }
 0x895   :  { %v3209_v20 = vpop.permute.xlu1 %3208 }
 0x896   :  { %v3271_v44 = vrot.slane %v3209_v20, %v5225_v22 }
 0x898   :  { %v3291_v31 = vsel %vm3000_vm14, %v3271_v44, %v3290_v47 }
 0x899   :  { %v3212_v19 = vpop.permute.xlu1 %3211 }
 0x89a   :  { %v3275_v57 = vrot.slane %v3212_v19, %v5225_v22 }
 0x89c   :  { %v3292_v8 = vsel %vm3002_vm15, %v3275_v57, %v3291_v31 }
 0x89d   :  { %v3215_v45 = vpop.permute.xlu1 %3214 }
 0x89e   :  { %v3279_v0 = vrot.slane %v3215_v45, %v5225_v22 }
 0x8a0   :  { %v3293_v26 = vsel %vm3004_vm0, %v3279_v0, %v3292_v8 }
 0x8a1   :  { %v3299_v17 = vsel %vm3015_vm2, %v3293_v26, 0.0 }
 0x8a2   :  { %3300 = vadd.xlane.f32.xlu1 %v3299_v17 }
 0x905   :  { %v3298_v25 = vpop.xlane.xlu0 %3297 }
 0x906   :  { %v3311_v41 = vrot.slane %v3298_v25, %v5613_v39  ;;  %v3315_v40 = vrot.slane %v3298_v25, %v5614_v7  ;;  %v3319_v20 = vrot.slane %v3298_v25, %v5162_v9  ;;  %v3307_v60 = vrot.slane %v3298_v25, %v4485_v6 }
 0x907   :  { %v3323_v36 = vrot.slane %v3298_v25, %v5172_v46  ;;  %v3327_v58 = vrot.slane %v3298_v25, %v5318_v32  ;;  %v3331_v19 = vrot.slane %v3298_v25, %v5321_v52  ;;  %v3335_v17 = vrot.slane %v3298_v25, %v5332_v62 }
 0x908   :  { %4199 = vrcp.f32 %v3311_v41 }
 0x909   :  { %4201 = vrcp.f32 %v3315_v40 }
 0x90a   :  { %4203 = vrcp.f32 %v3319_v20 }
 0x90b   :  { %4205 = vrcp.f32 %v3307_v60 }
 0x90c   :  { %4207 = vrcp.f32 %v3323_v36 }
 0x90d   :  { %4209 = vrcp.f32 %v3327_v58 }
 0x90e   :  { %4211 = vrcp.f32 %v3331_v19 }
 0x915   :  { %v4200_v24 = vpop.eup %4199 }
 0x916   :  { %v4202_v54 = vpop.eup %4201  ;;  %v3387_v56 = vmul.f32 %v4200_v24, %v5344_v1 }
 0x917   :  { %v4204_v44 = vpop.eup %4203  ;;  %v3389_v57 = vmul.f32 %v4202_v54, %v5348_v13 }
 0x918   :  { %v3391_v55 = vmul.f32 %v4204_v44, %v5356_v11  ;;  %3423 = vperm.xlu0 %4054, %v3387_v56   ;;  %v4206_v27 = vpop.eup %4205 }
 0x919   :  { %v3385_v47 = vmul.f32 %v4206_v27, %v5342_v2  ;;  %v4208_v45 = vpop.eup %4207 }
 0x91a   :  { %3433 = vperm.xlu1 %4053, %v3391_v55   ;;  %v3393_v31 = vmul.f32 %v4208_v45, %v5365_v37  ;;  %v4210_v0 = vpop.eup %4209 }
 0x91b   :  { %v3395_v1 = vmul.f32 %v4210_v0, %v5350_v12  ;;  %v4212_v8 = vpop.eup %4211 }
 0x91c   :  { %3428 = vperm.xlu0 %4054, %v3389_v57   ;;  %v3397_v26 = vmul.f32 %v4212_v8, %v5361_v42 }
 0x920   :  { %3418 = vperm.xlu0 %4054, %v3385_v47  }
 0x924   :  { %3438 = vperm.xlu0 %4054, %v3393_v31  }
 0x928   :  { %3443 = vperm.xlu0 %4054, %v3395_v1  }
 0x92b   :  { %v3301_v11 = vpop.xlane.xlu1 %3300 }
 0x92c   :  { %v3339_v13 = vrot.slane %v3301_v11, %v4485_v6  ;;  %v3343_v41 = vrot.slane %v3301_v11, %v5613_v39  ;;  %v3347_v2 = vrot.slane %v3301_v11, %v5614_v7  ;;  %3448 = vperm.xlu0 %4054, %v3397_v26   ;;  %v3351_v37 = vrot.slane %v3301_v11, %v5162_v9 }
 0x92d   :  { %v3355_v12 = vrot.slane %v3301_v11, %v5172_v46  ;;  %v3359_v42 = vrot.slane %v3301_v11, %v5318_v32  ;;  %v3363_v7 = vrot.slane %v3301_v11, %v5321_v52  ;;  %v3367_v46 = vrot.slane %v3301_v11, %v5332_v62 }
 0x92e   :  { %4213 = vrcp.f32 %v3339_v13 }
 0x92f   :  { %4215 = vrcp.f32 %v3343_v41 }
 0x930   :  { %4217 = vrcp.f32 %v3335_v17 }
 0x931   :  { %4219 = vrcp.f32 %v3347_v2 }
 0x932   :  { %4221 = vrcp.f32 %v3351_v37 }
 0x933   :  { %4223 = vrcp.f32 %v3355_v12 }
 0x934   :  { %4225 = vrcp.f32 %v3359_v42 }
 0x935   :  { %4227 = vrcp.f32 %v3363_v7 }
 0x936   :  { %4229 = vrcp.f32 %v3367_v46 }
 0x93b   :  { %v4214_v25 = vpop.eup %4213 }
 0x93c   :  { %v4216_v40 = vpop.eup %4215  ;;  %v3401_v6 = vmul.f32 %v4214_v25, %v5379_v5 }
 0x93d   :  { %v4218_v39 = vpop.eup %4217  ;;  %v3403_v20 = vmul.f32 %v4216_v40, %v5384_v4 }
 0x93e   :  { %v4220_v60 = vpop.eup %4219  ;;  %3458 = vperm.xlu0 %4054, %v3401_v6   ;;  %v3399_v9 = vmul.f32 %v4218_v39, %v5369_v50 }
 0x93f   :  { %3463 = vperm.xlu1 %4053, %v3403_v20   ;;  %v3405_v32 = vmul.f32 %v4220_v60, %v5388_v51  ;;  %v4222_v36 = vpop.eup %4221 }
 0x940   :  { %v3407_v5 = vmul.f32 %v4222_v36, %v5391_v29  ;;  %v4224_v58 = vpop.eup %4223 }
 0x941   :  { %v3409_v4 = vmul.f32 %v4224_v58, %v5394_v34  ;;  %v4226_v24 = vpop.eup %4225 }
 0x942   :  { %3453 = vperm.xlu0 %4054, %v3399_v9   ;;  %v3411_v54 = vmul.f32 %v4226_v24, %v5397_v10  ;;  %v4228_v50 = vpop.eup %4227 }
 0x943   :  { %3468 = vperm.xlu1 %4053, %v3405_v32   ;;  %v3413_v62 = vmul.f32 %v4228_v50, %v5400_v14  ;;  %v4230_v19 = vpop.eup %4229 }
 0x944   :  { %v3415_v51 = vmul.f32 %v4230_v19, %v5403_v30 }
 0x947   :  { %3473 = vperm.xlu1 %4053, %v3407_v5  }
 0x94b   :  { %3478 = vperm.xlu1 %4053, %v3409_v4  }
 0x94f   :  { %3483 = vperm.xlu1 %4053, %v3411_v54  }
 0x953   :  { %3488 = vperm.xlu1 %4053, %v3413_v62  }
 0x957   :  { %3493 = vperm.xlu1 %4053, %v3415_v51  }
 0x993   :  { %v3424_v56 = vpop.permute.xlu0 %3423 }
 0x994   :  { %v3722_v57 = vrot.slane %v3424_v56, %v5225_v22  ;;  %v3497_v27 = vmul.f32 %v3424_v56, %v5109_v16 }
 0x995   :  { %v3434_v55 = vpop.permute.xlu1 %3433 }
 0x996   :  { %v3499_v30 = vmul.f32 %v3434_v55, %v5101_v43  ;;  %v3730_v31 = vrot.slane %v3434_v55, %v5225_v22  ;;  %v3520_v16 = vsel %vm3512_vm3, %v3497_v27, 0.0 }
 0x997   :  { %v3429_v44 = vpop.permute.xlu0 %3428 }
 0x998   :  { %v3498_v10 = vmul.f32 %v3429_v44, %v5099_v35  ;;  %v3726_v47 = vrot.slane %v3429_v44, %v5225_v22  ;;  %v3534_v26 = vsel %vm3512_vm3, %v3499_v30, 0.0 }
 0x999   :  { %v3535_v12 = vrot.slane %v3534_v26, 4 }
 0x99a   :  { %v3527_v35 = vsel %vm3512_vm3, %v3498_v10, 0.0 }
 0x99b   :  { %v3419_v29 = vpop.permute.xlu0 %3418  ;;  %v3528_v2 = vrot.slane %v3527_v35, 4  ;;  %v3536_v46 = vadd.f32 %v3535_v12, %v3534_v26 }
 0x99c   :  { %v3718_v34 = vrot.slane %v3419_v29, %v5225_v22  ;;  %v3496_v0 = vmul.f32 %v3419_v29, %v5105_v18  ;;  %v3521_v18 = vrot.slane %v3520_v16, 4 }
 0x99d   :  { %v3529_v60 = vadd.f32 %v3528_v2, %v3527_v35 }
 0x99e   :  { %v3779_v14 = vsel %vm2992_vm10, %v3722_v57, %v3718_v34  ;;  %v3513_v43 = vsel %vm3512_vm3, %v3496_v0, 0.0  ;;  %v3522_v20 = vadd.f32 %v3521_v18, %v3520_v16 }
 0x99f   :  { %v3439_v45 = vpop.permute.xlu0 %3438  ;;  %v3780_v1 = vsel %vm2994_vm11, %v3726_v47, %v3779_v14  ;;  %v3514_v40 = vrot.slane %v3513_v43, 4  ;;  %v3530_v4 = vrot.slane %v3529_v60, 2 }
 0x9a0   :  { %v3734_v8 = vrot.slane %v3439_v45, %v5225_v22  ;;  %v3781_v11 = vsel %vm2996_vm12, %v3730_v31, %v3780_v1  ;;  %v3500_v37 = vmul.f32 %v3439_v45, %v5103_v3  ;;  %v3523_v58 = vrot.slane %v3522_v20, 2 }
 0x9a1   :  { %v3515_v36 = vadd.f32 %v3514_v40, %v3513_v43  ;;  %v3531_v51 = vadd.f32 %v3530_v4, %v3529_v60  ;;  %v5501_v45 = vrot.slane %v5158_v33, %v5321_v52 }
 0x9a2   :  { %v3782_v13 = vsel %vm2998_vm13, %v3734_v8, %v3781_v11  ;;  %v3541_v9 = vsel %vm3512_vm3, %v3500_v37, 0.0  ;;  %v3524_v19 = vadd.f32 %v3523_v58, %v3522_v20 }
 0x9a3   :  { %v3444_v17 = vpop.permute.xlu0 %3443  ;;  %v3516_v54 = vrot.slane %v3515_v36, 2  ;;  %v3532_v27 = vrot.slane %v3531_v51, 1 }
 0x9a4   :  { %v3738_v41 = vrot.slane %v3444_v17, %v5225_v22  ;;  %v3501_v42 = vmul.f32 %v3444_v17, %v5107_v53  ;;  %v3542_v53 = vrot.slane %v3541_v9, 4  ;;  %v3525_v34 = vrot.slane %v3524_v19, 1 }
 0x9a5   :  { %v3517_v29 = vadd.f32 %v3516_v54, %v3515_v36  ;;  %v3533_v8 = vadd.f32 %v3532_v27, %v3531_v51 }
 0x9a6   :  { %v3783_v25 = vsel %vm3000_vm14, %v3738_v41, %v3782_v13  ;;  %v3548_v32 = vsel %vm3512_vm3, %v3501_v42, 0.0  ;;  %v3543_v62 = vadd.f32 %v3542_v53, %v3541_v9  ;;  %v3526_v1 = vadd.f32 %v3525_v34, %v3524_v19 }
 0x9a7   :  { %v3449_v6 = vpop.permute.xlu0 %3448  ;;  %v3549_v24 = vrot.slane %v3548_v32, 4  ;;  %v3518_v14 = vrot.slane %v3517_v29, 1  ;;  %v3631_v12 = vmul.f32 %v5501_v45, %v3533_v8 }
 0x9a8   :  { %v3502_v39 = vmul.f32 %v3449_v6, %v5111_v28  ;;  %v3742_v7 = vrot.slane %v3449_v6, %v5225_v22  ;;  %v3537_v28 = vrot.slane %v3536_v46, 2  ;;  %v3544_v57 = vrot.slane %v3543_v62, 2 }
 0x9a9   :  { %v3550_v56 = vadd.f32 %v3549_v24, %v3548_v32  ;;  %v3519_v13 = vadd.f32 %v3518_v14, %v3517_v29  ;;  %v3630_v37 = vmul.f32 %v5501_v45, %v3526_v1  ;;  %v3663_v58 = vrot.slane %v3631_v12, 6 }
 0x9aa   :  { %v5496_v3 = vsel %vm3002_vm15, %v3742_v7, %v3783_v25  ;;  %v3555_v5 = vsel %vm3512_vm3, %v3502_v39, 0.0  ;;  %v3538_v44 = vadd.f32 %v3537_v28, %v3536_v46  ;;  %v3545_v31 = vadd.f32 %v3544_v57, %v3543_v62 }
 0x9ab   :  { %v3556_v50 = vrot.slane %v3555_v5, 4  ;;  %v3551_v10 = vrot.slane %v3550_v56, 2  ;;  %v3629_v20 = vmul.f32 %v5501_v45, %v3519_v13 }
 0x9ac   :  { %v3539_v47 = vrot.slane %v3538_v44, 1  ;;  %v3546_v18 = vrot.slane %v3545_v31, 1 }
 0x9ad   :  { %v3557_v55 = vadd.f32 %v3556_v50, %v3555_v5  ;;  %v3552_v16 = vadd.f32 %v3551_v10, %v3550_v56  ;;  %v3661_v5 = vrot.slane %v3630_v37, 7 }
 0x9ae   :  { %v3540_v26 = vadd.f32 %v3539_v47, %v3538_v44  ;;  %v3547_v32 = vadd.f32 %v3546_v18, %v3545_v31 }
 0x9af   :  { %v3558_v30 = vrot.slane %v3557_v55, 2  ;;  %v3553_v42 = vrot.slane %v3552_v16, 1  ;;  %v3662_v62 = vsel %vm2992_vm10, %v3661_v5, %v3629_v20 }
 0x9b0   :  { %v3632_v40 = vmul.f32 %v5501_v45, %v3540_v26  ;;  %v3633_v44 = vmul.f32 %v5501_v45, %v3547_v32 }
 0x9b1   :  { %v3559_v41 = vadd.f32 %v3558_v30, %v3557_v55  ;;  %v3554_v4 = vadd.f32 %v3553_v42, %v3552_v16 }
 0x9b2   :  { %v3665_v34 = vrot.slane %v3632_v40, 5 }
 0x9b3   :  { %v3560_v60 = vrot.slane %v3559_v41, 1  ;;  %v3634_v27 = vmul.f32 %v5501_v45, %v3554_v4 }
 0x9b5   :  { %v3561_v19 = vadd.f32 %v3560_v60, %v3559_v41  ;;  %v3669_v13 = vrot.slane %v3634_v27, 3 }
 0x9b9   :  { %v3459_v0 = vpop.permute.xlu0 %3458 }
 0x9ba   :  { %v3464_v35 = vpop.permute.xlu1 %3463  ;;  %v3750_v11 = vrot.slane %v3459_v0, %v5225_v22  ;;  %v3504_v6 = vmul.f32 %v3459_v0, %v5129_v21  ;;  %v3664_v0 = vsel %vm2994_vm11, %v3663_v58, %v3662_v62 }
 0x9bb   :  { %v3505_v17 = vmul.f32 %v3464_v35, %v5126_v49  ;;  %v3754_v43 = vrot.slane %v3464_v35, %v5225_v22  ;;  %v3635_v35 = vmul.f32 %v5501_v45, %v3561_v19  ;;  %v3666_v42 = vsel %vm2996_vm12, %v3665_v34, %v3664_v0 }
 0x9bd   :  { %v3576_v2 = vsel %vm3512_vm3, %v3505_v17, 0.0  ;;  %v3786_v33 = vsel %vm2992_vm10, %v3754_v43, %v3750_v11  ;;  %v5508_v52 = vpop.permute.xlu0 %3453  ;;  %v3667_v11 = vrot.slane %v3633_v44, 4 }
 0x9be   :  { %v3469_v25 = vpop.permute.xlu1 %3468  ;;  %v3503_v49 = vmul.f32 %v5508_v52, %v5121_v61  ;;  %v3577_v9 = vrot.slane %v3576_v2, 4 }
 0x9bf   :  { %v3506_v39 = vmul.f32 %v3469_v25, %v5136_v23  ;;  %v3758_v7 = vrot.slane %v3469_v25, %v5225_v22  ;;  %v3569_v23 = vsel %vm3512_vm3, %v3504_v6, 0.0  ;;  %v3671_v6 = vrot.slane %v3635_v35, 2 }
 0x9c0   :  { %v3562_v46 = vsel %vm3512_vm3, %v3503_v49, 0.0  ;;  %v3578_v51 = vadd.f32 %v3577_v9, %v3576_v2  ;;  %v3570_v10 = vrot.slane %v3569_v23, 4  ;;  %v3668_v60 = vsel %vm2998_vm13, %v3667_v11, %v3666_v42 }
 0x9c1   :  { %v3583_v36 = vsel %vm3512_vm3, %v3506_v39, 0.0  ;;  %v3787_v53 = vsel %vm2994_vm11, %v3758_v7, %v3786_v33  ;;  %v3563_v61 = vrot.slane %v3562_v46, 4 }
 0x9c2   :  { %v3584_v21 = vrot.slane %v3583_v36, 4  ;;  %v3474_v24 = vpop.permute.xlu1 %3473  ;;  %v3579_v1 = vrot.slane %v3578_v51, 2  ;;  %v3571_v41 = vadd.f32 %v3570_v10, %v3569_v23 }
 0x9c3   :  { %v3564_v28 = vadd.f32 %v3563_v61, %v3562_v46  ;;  %v3507_v54 = vmul.f32 %v3474_v24, %v5133_v48  ;;  %v3762_v50 = vrot.slane %v3474_v24, %v5225_v22 }
 0x9c4   :  { %v3585_v56 = vadd.f32 %v3584_v21, %v3583_v36  ;;  %v3580_v25 = vadd.f32 %v3579_v1, %v3578_v51  ;;  %v3572_v9 = vrot.slane %v3571_v41, 2  ;;  %v3670_v36 = vsel %vm3000_vm14, %v3669_v13, %v3668_v60 }
 0x9c5   :  { %v3565_v29 = vrot.slane %v3564_v28, 2  ;;  %v3590_v55 = vsel %vm3512_vm3, %v3507_v54, 0.0  ;;  %v3788_v57 = vsel %vm2996_vm12, %v3762_v50, %v3787_v53  ;;  %v3672_v23 = vsel %vm3002_vm15, %v3671_v6, %v3670_v36 }
 0x9c6   :  { %v3591_v47 = vrot.slane %v3590_v55, 4  ;;  %v3479_v48 = vpop.permute.xlu1 %3478  ;;  %v3586_v8 = vrot.slane %v3585_v56, 2  ;;  %v3581_v4 = vrot.slane %v3580_v25, 1  ;;  %v3573_v19 = vadd.f32 %v3572_v9, %v3571_v41 }
 0x9c7   :  { %v3566_v14 = vadd.f32 %v3565_v29, %v3564_v28  ;;  %v3508_v30 = vmul.f32 %v3479_v48, %v5143_v59  ;;  %v3766_v31 = vrot.slane %v3479_v48, %v5225_v22 }
 0x9c8   :  { %v3592_v16 = vadd.f32 %v3591_v47, %v3590_v55  ;;  %v3587_v49 = vadd.f32 %v3586_v8, %v3585_v56  ;;  %v3582_v34 = vadd.f32 %v3581_v4, %v3580_v25  ;;  %v3699_v4 = vld [vmem:[%s5603_s6] sm:$0xff] }
 0x9c9   :  { %v3567_v26 = vrot.slane %v3566_v14, 1  ;;  %v3597_v17 = vsel %vm3512_vm3, %v3508_v30, 0.0  ;;  %v3789_v43 = vsel %vm2998_vm13, %v3766_v31, %v3788_v57 }
 0x9ca   :  { %v3593_v18 = vrot.slane %v3592_v16, 2  ;;  %v3598_v2 = vrot.slane %v3597_v17, 4  ;;  %v3484_v59 = vpop.permute.xlu1 %3483  ;;  %v3588_v21 = vrot.slane %v3587_v49, 1 }
 0x9cb   :  { %v3568_v33 = vadd.f32 %v3567_v26, %v3566_v14  ;;  %v3509_v37 = vmul.f32 %v3484_v59, %v5140_v15  ;;  %v3770_v12 = vrot.slane %v3484_v59, %v5225_v22  ;;  %v3574_v14 = vrot.slane %v3573_v19, 1 }
 0x9cc   :  { %v3599_v40 = vadd.f32 %v3598_v2, %v3597_v17  ;;  %v3594_v46 = vadd.f32 %v3593_v18, %v3592_v16  ;;  %v3589_v10 = vadd.f32 %v3588_v21, %v3587_v49  ;;  %v3638_v16 = vmul.f32 %v5501_v45, %v3582_v34 }
 0x9cd   :  { %v3604_v39 = vsel %vm3512_vm3, %v3509_v37, 0.0  ;;  %v3790_v7 = vsel %vm3000_vm14, %v3770_v12, %v3789_v43  ;;  %v3636_v20 = vmul.f32 %v5501_v45, %v3568_v33  ;;  %v3575_v17 = vadd.f32 %v3574_v14, %v3573_v19 }
 0x9ce   :  { %v3600_v32 = vrot.slane %v3599_v40, 2  ;;  %v3489_v15 = vpop.permute.xlu1 %3488  ;;  %v3605_v53 = vrot.slane %v3604_v39, 4  ;;  %v3595_v51 = vrot.slane %v3594_v46, 1  ;;  %v3639_v26 = vmul.f32 %v5501_v45, %v3589_v10 }
 0x9cf   :  { %v3510_v61 = vmul.f32 %v3489_v15, %v5148_v38  ;;  %v3774_v5 = vrot.slane %v3489_v15, %v5225_v22  ;;  %v3673_v58 = vrot.slane %v3636_v20, 1  ;;  %v3675_v2 = vrot.slane %v3638_v16, 7 }
 0x9d0   :  { %v3601_v24 = vadd.f32 %v3600_v32, %v3599_v40  ;;  %v3606_v28 = vadd.f32 %v3605_v53, %v3604_v39  ;;  %v3596_v30 = vadd.f32 %v3595_v51, %v3594_v46  ;;  %v3677_v12 = vrot.slane %v3639_v26, 6 }
 0x9d1   :  { %v3611_v54 = vsel %vm3512_vm3, %v3510_v61, 0.0  ;;  %v3674_v50 = vsel %vm3004_vm0, %v3673_v58, %v3672_v23  ;;  %v5550_v62 = vsel %vm3002_vm15, %v3774_v5, %v3790_v7  ;;  %v3637_v42 = vmul.f32 %v5501_v45, %v3575_v17 }
 0x9d2   :  { %v3612_v56 = vrot.slane %v3611_v54, 4  ;;  %v5552_v38 = vpop.permute.xlu1 %3493  ;;  %v3691_v44 = vsel %vm102_vm1, %v3674_v50, 0.0  ;;  %v3602_v29 = vrot.slane %v3601_v24, 1  ;;  %v3607_v55 = vrot.slane %v3606_v28, 2  ;;  %v3700_v50 = vld [vmem:[%s5603_s6 + $0x8] sm:$0xff] }
 0x9d3   :  { %v3511_v57 = vmul.f32 %v5552_v38, %v5150_v63  ;;  %3692 = vadd.xlane.f32.xlu0 %v3691_v44  ;;  %v3640_v43 = vmul.f32 %v5501_v45, %v3596_v30  ;;  %v3676_v39 = vsel %vm2992_vm10, %v3675_v2, %v3637_v42  ;;  %v3778_v14 = vrot.slane %v5552_v38, %v5225_v22 }
 0x9d4   :  { %v3613_v27 = vadd.f32 %v3612_v56, %v3611_v54  ;;  %v3608_v47 = vadd.f32 %v3607_v55, %v3606_v28  ;;  %v3603_v1 = vadd.f32 %v3602_v29, %v3601_v24  ;;  %v3678_v60 = vsel %vm2994_vm11, %v3677_v12, %v3676_v39 }
 0x9d5   :  { %v3618_v48 = vsel %vm3512_vm3, %v3511_v57, 0.0  ;;  %v3679_v25 = vrot.slane %v3640_v43, 5 }
 0x9d6   :  { %v3614_v31 = vrot.slane %v3613_v27, 2  ;;  %v3619_v0 = vrot.slane %v3618_v48, 4  ;;  %v3609_v8 = vrot.slane %v3608_v47, 1  ;;  %v3641_v18 = vmul.f32 %v5501_v45, %v3603_v1 }
 0x9d7   :  { %v3680_v32 = vsel %vm2996_vm12, %v3679_v25, %v3678_v60 }
 0x9d8   :  { %v3615_v35 = vadd.f32 %v3614_v31, %v3613_v27  ;;  %v3620_v11 = vadd.f32 %v3619_v0, %v3618_v48  ;;  %v3610_v63 = vadd.f32 %v3609_v8, %v3608_v47  ;;  %v3681_v6 = vrot.slane %v3641_v18, 4 }
 0x9d9   :  { %v3746_v27 = vrot.slane %v5508_v52, %v5225_v22  ;;  %v3792_v31 = vsel %vm3004_vm0, %v3778_v14, %v5550_v62 }
 0x9da   :  { %v3616_v13 = vrot.slane %v3615_v35, 1  ;;  %v3621_v41 = vrot.slane %v3620_v11, 2  ;;  %v3642_v59 = vmul.f32 %v5501_v45, %v3610_v63  ;;  %v3682_v15 = vsel %vm2998_vm13, %v3681_v6, %v3680_v32 }
 0x9db   :  { %v3785_v47 = vsel %vm3004_vm0, %v3746_v27, %v5496_v3 }
 0x9dc   :  { %v3617_v33 = vadd.f32 %v3616_v13, %v3615_v35  ;;  %v3622_v37 = vadd.f32 %v3621_v41, %v3620_v11  ;;  %v3683_v7 = vrot.slane %v3642_v59, 3 }
 0x9de   :  { %v3623_v49 = vrot.slane %v3622_v37, 1  ;;  %v3643_v40 = vmul.f32 %v5501_v45, %v3617_v33  ;;  %v3684_v36 = vsel %vm3000_vm14, %v3683_v7, %v3682_v15 }
 0x9e0   :  { %v3624_v20 = vadd.f32 %v3623_v49, %v3622_v37  ;;  %v3685_v9 = vrot.slane %v3643_v40, 2 }
 0x9e2   :  { %v3644_v46 = vmul.f32 %v5501_v45, %v3624_v20  ;;  %v3686_v61 = vsel %vm3002_vm15, %v3685_v9, %v3684_v36 }
 0x9e4   :  { %v3687_v53 = vrot.slane %v3644_v46, 1 }
 0x9e6   :  { %v3688_v5 = vsel %vm3004_vm0, %v3687_v53, %v3686_v61 }
 0x9e7   :  { %v3694_v58 = vsel %vm102_vm1, %v3688_v5, 0.0  ;;  %vm3805_vm1 = vcmask 39936  }
 0x9e8   :  { %3695 = vadd.xlane.f32.xlu1 %v3694_v58 }
 0xa5c   :  { %v3693_v21 = vpop.xlane.xlu0 %3692 }
 0xa5d   :  { %v3697_v45 = vmax.f32 %v3693_v21, 0.0 }
 0xa5f   :  { %v3701_v24 = vadd.f32 %v3699_v4, %v3697_v45 }
 0xa61   :  { %v3858_v23 = vmul.f32 -1.442695, %v3701_v24 }
 0xa63   :  { %4231 = vpow2.f32 %v3858_v23 }
 0xa70   :  { %v4232_v28 = vpop.eup %4231 }
 0xa71   :  { %v3709_v54 = vadd.f32 1.0, %v4232_v28  ;;  %v3696_v19 = vpop.xlane.xlu1 %3695 }
 0xa72   :  { %v3698_v51 = vmax.f32 %v3696_v19, 0.0 }
 0xa73   :  { %4233 = vrcp.f32 %v3709_v54 }
 0xa74   :  { %v3702_v56 = vadd.f32 %v3700_v50, %v3698_v51 }
 0xa76   :  { %v3859_v44 = vmul.f32 -1.442695, %v3702_v56 }
 0xa78   :  { %4235 = vpow2.f32 %v3859_v44 }
 0xa80   :  { %v4234_v29 = vpop.eup %4233 }
 0xa81   :  { %3797 = vrot.lane.b32.xlu0 %v4234_v29, %s4246_s18 }
 0xa85   :  { %v4236_v55 = vpop.eup %4235 }
 0xa86   :  { %v3710_v57 = vadd.f32 1.0, %v4236_v55 }
 0xa88   :  { %4237 = vrcp.f32 %v3710_v57 }
 0xa95   :  { %v4238_v34 = vpop.eup %4237 }
 0xa96   :  { %3799 = vrot.lane.b32.xlu1 %v4238_v34, %s4246_s18 }
 0xaf3   :  { %v3798_v10 = vpop.permute.xlu0 %3797 }
 0xaf4   :  { %v3803_v48 = vsel %vm3015_vm2, %v3785_v47, %v3798_v10 }
 0xaf5   :  { %3806 = vst.msk [vmem:[%s5604_s8] sm:$0xff] %vm3805_vm1, %v3803_v48 }
 0xb08   :  { %v3800_v30 = vpop.permute.xlu1 %3799 }
 0xb09   :  { %v3804_v52 = vsel %vm3015_vm2, %v3792_v31, %v3800_v30 }
 0xb0a   :  { %3807 = vst.msk [vmem:[%s5604_s8 + $0x8] sm:$0xff] %vm3805_vm1, %v3804_v52 }

// kernel: tpu_custom_call.1
= control target key start
LH: loop header
LB: loop body
LE: loop exit
PB: predicated region body
PF: predicated region fallthrough
CT: control target
= control target key end

     0   :  { %vm151_vm0 = vcmask 1043456   ;;  %vm102_vm1 = vcmask 97280   ;;  %v5605_v62 = vlaneseq  ;;  %vm336_vm2 = vcmask 195584   ;;  %s4240_s25 = smov 104   ;;  %s4241_s26 = smov 80   ;;  %s5596_s3 = inlined_call_operand.vmem [shape: f32[12,96], index: 3, kind: input, shape index: {}]   ;;  %s5597_s0 = inlined_call_operand.<no memory space> [shape: f32[1,1], index: 0, kind: input, shape index: {}]   ;;  %s5598_s1 = inlined_call_operand.vmem [shape: f32[16,8,12], index: 1, kind: input, shape index: {}]   ;;  %s5599_s2 = inlined_call_operand.vmem [shape: f32[16,8,12], index: 2, kind: input, shape index: {}]   ;;  %s5600_s5 = inlined_call_operand.vmem [shape: f32[7,128], index: 5, kind: input, shape index: {}]   ;;  %s5601_s7 = inlined_call_operand.vmem [shape: f32[16,4,8], index: 7, kind: output, shape index: {0}]   ;;  %s5602_s4 = inlined_call_operand.vmem [shape: f32[12,24], index: 4, kind: input, shape index: {}]   ;;  %s5603_s6 = inlined_call_operand.vmem [shape: f32[16,1], index: 6, kind: input, shape index: {}]   ;;  %s5604_s8 = inlined_call_operand.vmem [shape: f32[16,5], index: 8, kind: output, shape index: {1}]  }
   0x1   :  { %v97_v0 = vld [vmem:[%s5596_s3 + $0x8] sm:$0xf]  ;;  %v96_v1 = vld [vmem:[%s5596_s3] sm:$0xff]  ;;  %v4304_v3 = vstv %s5597_s0  ;;  %v33_v9 = vld [vmem:[%s5599_s2 + $0x10] sm:$0xff]  ;;  %s4242_s27 = smov 56   ;;  %vm689_vm3 = vcmask 7168  }
   0x2   :  { %v31_v2 = vld [vmem:[%s5599_s2] sm:$0xff]  ;;  %3920 = vmatprep.subr.msk.mxu0 %vm151_vm0, %v97_v0  ;;  %v32_v6 = vld [vmem:[%s5599_s2 + $0x8] sm:$0xff]  ;;  %v49_v10 = vld [vmem:[%s5598_s1 + $0x10] sm:$0xff]  ;;  %v66_v13 = vmul.f32 %v4304_v3, %v33_v9  ;;  %vm706_vm4 = vcmask 15360   ;;  %vm723_vm5 = vcmask 23552   ;;  %vm1272_vm6 = vcmask 60416  }
   0x3   :  { %v47_v4 = vld [vmem:[%s5598_s1] sm:$0xff]  ;;  %v64_v5 = vmul.f32 %v4304_v3, %v31_v2  ;;  %v48_v7 = vld [vmem:[%s5598_s1 + $0x8] sm:$0xff]  ;;  %3921 = vmatpush3.msk.msra.mxu0 %vm151_vm0, %v97_v0  ;;  %v65_v8 = vmul.f32 %v4304_v3, %v32_v6  ;;  %v34_v11 = vld [vmem:[%s5599_s2 + $0x18] sm:$0xff]  ;;  %vm4244_vm7 = vmmov 0   ;;  %vm1465_vm8 = vcmask 64512   ;;  %s4246_s18 = smov 4  }
   0x4   :  { %3922 = vmatprep.subr.mxu0 %v96_v1  ;;  %v50_v14 = vld [vmem:[%s5598_s1 + $0x18] sm:$0xff]  ;;  %v67_v15 = vmul.f32 %v4304_v3, %v34_v11  ;;  %v35_v16 = vld [vmem:[%s5599_s2 + $0x20] sm:$0xff]  ;;  %v36_v20 = vld [vmem:[%s5599_s2 + $0x28] sm:$0xff]  ;;  %v4352_v22 = vadd.f32 %v66_v13, %v49_v10  ;;  %vm2840_vm9 = vcmask 191488   ;;  %vm2992_vm10 = vcmask 1041409  }
   0x5   :  { %v4328_v12 = vadd.f32 %v64_v5, %v47_v4  ;;  %3923 = vmatpush3.msra.mxu0 %v96_v1  ;;  %v4338_v17 = vadd.f32 %v65_v8, %v48_v7  ;;  %v51_v18 = vld [vmem:[%s5598_s1 + $0x20] sm:$0xff]  ;;  %v68_v19 = vmul.f32 %v4304_v3, %v35_v16  ;;  %v37_v21 = vld [vmem:[%s5599_s2 + $0x30] sm:$0xff]  ;;  %v69_v24 = vmul.f32 %v4304_v3, %v36_v20  ;;  %v52_v26 = vld [vmem:[%s5598_s1 + $0x28] sm:$0xff] }
   0x6   :  { %v4356_v23 = vadd.f32 %v67_v15, %v50_v14  ;;  %v70_v27 = vmul.f32 %v4304_v3, %v37_v21  ;;  %v38_v28 = vld [vmem:[%s5599_s2 + $0x38] sm:$0xff]  ;;  %v53_v29 = vld [vmem:[%s5598_s1 + $0x30] sm:$0xff]  ;;  %v39_v30 = vld [vmem:[%s5599_s2 + $0x40] sm:$0xff]  ;;  %v4478_v5 = vshrl.u32 %v5605_v62, 7  ;;  %vm2994_vm11 = vcmask 1042434  }
   0x7   :  { %3924 = vmatprep.mubr.msk.f32.mxu0 %vm102_vm1, %v4328_v12  ;;  %v4361_v25 = vadd.f32 %v68_v19, %v51_v18  ;;  %v4378_v31 = vadd.f32 %v69_v24, %v52_v26  ;;  %v71_v32 = vmul.f32 %v4304_v3, %v38_v28  ;;  %v54_v34 = vld [vmem:[%s5598_s1 + $0x38] sm:$0xff]  ;;  %v72_v35 = vmul.f32 %v4304_v3, %v39_v30  ;;  %v40_v36 = vld [vmem:[%s5599_s2 + $0x48] sm:$0xff]  ;;  %v55_v37 = vld [vmem:[%s5598_s1 + $0x40] sm:$0xff] }
   0x8   :  { %3925 = vmatmul.mubr.msk.f32.vlgmr.msra.gmra.mxu0 %vm102_vm1, %v4338_v17  ;;  %v4383_v33 = vadd.f32 %v70_v27, %v53_v29  ;;  %v41_v38 = vld [vmem:[%s5599_s2 + $0x50] sm:$0xff]  ;;  %v73_v40 = vmul.f32 %v4304_v3, %v40_v36  ;;  %v56_v42 = vld [vmem:[%s5598_s1 + $0x48] sm:$0xff]  ;;  %v42_v47 = vld [vmem:[%s5599_s2 + $0x58] sm:$0xff]  ;;  %v4485_v6 = vsub.s32 0, %v4478_v5  ;;  %v4499_v13 = vsub.s32 2, %v4478_v5 }
   0x9   :  { %3927 = vmatprep.mubr.msk.f32.mxu0 %vm102_vm1, %v4352_v22  ;;  %v4400_v39 = vadd.f32 %v71_v32, %v54_v34  ;;  %v4405_v41 = vadd.f32 %v72_v35, %v55_v37  ;;  %v74_v43 = vmul.f32 %v4304_v3, %v41_v38  ;;  %v57_v44 = vld [vmem:[%s5598_s1 + $0x50] sm:$0xff]  ;;  %v75_v48 = vmul.f32 %v4304_v3, %v42_v47  ;;  %v58_v49 = vld [vmem:[%s5598_s1 + $0x58] sm:$0xff]  ;;  %v43_v51 = vld [vmem:[%s5599_s2 + $0x60] sm:$0xff] }
   0xa   :  { %v4416_v45 = vadd.f32 %v73_v40, %v56_v42  ;;  %v59_v52 = vld [vmem:[%s5598_s1 + $0x60] sm:$0xff]  ;;  %v44_v53 = vld [vmem:[%s5599_s2 + $0x68] sm:$0xff]  ;;  %v76_v54 = vmul.f32 %v4304_v3, %v43_v51  ;;  %v45_v59 = vld [vmem:[%s5599_s2 + $0x70] sm:$0xff]  ;;  %5610 = vst [vmem:[#allocation3_spill] sm:$0xff] %v4499_v13  ;;  %vm2996_vm12 = vcmask 1043459   ;;  %vm2998_vm13 = vcmask 1044484  }
   0xb   :  { %v4420_v46 = vadd.f32 %v74_v43, %v57_v44  ;;  %v4433_v50 = vadd.f32 %v75_v48, %v58_v49  ;;  %v60_v55 = vld [vmem:[%s5598_s1 + $0x68] sm:$0xff]  ;;  %v77_v56 = vmul.f32 %v4304_v3, %v44_v53  ;;  %v61_v60 = vld [vmem:[%s5598_s1 + $0x70] sm:$0xff]  ;;  %v46_v61 = vld [vmem:[%s5599_s2 + $0x78] sm:$0xff]  ;;  %v78_v63 = vmul.f32 %v4304_v3, %v45_v59 }
   0xc   :  { %3928 = vmatmul.mubr.msk.f32.gmra.mxu0 %vm102_vm1, %v4356_v23  ;;  %v4451_v57 = vadd.f32 %v76_v54, %v59_v52  ;;  %v62_v0 = vld [vmem:[%s5598_s1 + $0x78] sm:$0xff]  ;;  %v79_v1 = vmul.f32 %v4304_v3, %v46_v61  ;;  %v4490_v3 = vld [vmem:[%s5600_s5] sm:$0x7f]  ;;  %vm3000_vm14 = vcmask 1045509   ;;  %vm3002_vm15 = vcmask 1046534  }
   0xd   :  { %3930 = vmatprep.mubr.msk.f32.mxu0 %vm102_vm1, %v4361_v25  ;;  %v4453_v58 = vadd.f32 %v77_v56, %v60_v55  ;;  %v4473_v2 = vadd.f32 %v78_v63, %v61_v60  ;;  %v4494_v7 = vrot.slane %v4490_v3, %v4485_v6  ;;  %v4503_v14 = vrot.slane %v4490_v3, %v4499_v13 }
   0xe   :  { %v4475_v4 = vadd.f32 %v79_v1, %v62_v0 }
  0x10   :  { %3931 = vmatmul.mubr.msk.f32.gmra.mxu0 %vm102_vm1, %v4378_v31 }
  0x11   :  { %3933 = vmatprep.mubr.msk.f32.mxu0 %vm102_vm1, %v4383_v33 }
  0x14   :  { %3934 = vmatmul.mubr.msk.f32.gmra.mxu0 %vm102_vm1, %v4400_v39 }
  0x15   :  { %3936 = vmatprep.mubr.msk.f32.mxu0 %vm102_vm1, %v4405_v41 }
  0x18   :  { %3937 = vmatmul.mubr.msk.f32.gmra.mxu0 %vm102_vm1, %v4416_v45 }
  0x19   :  { %3939 = vmatprep.mubr.msk.f32.mxu0 %vm102_vm1, %v4420_v46 }
  0x1c   :  { %3940 = vmatmul.mubr.msk.f32.gmra.mxu0 %vm102_vm1, %v4433_v50 }
  0x1d   :  { %3942 = vmatprep.mubr.msk.f32.mxu0 %vm102_vm1, %v4451_v57 }
  0x20   :  { %3943 = vmatmul.mubr.msk.f32.gmra.mxu0 %vm102_vm1, %v4453_v58 }
  0x21   :  { %3945 = vmatprep.mubr.msk.f32.mxu0 %vm102_vm1, %v4473_v2 }
  0x24   :  { %3946 = vmatmul.mubr.msk.f32.gmra.mxu0 %vm102_vm1, %v4475_v4 }
  0xc8   :  { %v3926_v8 = vpop.f32.mrf.mxu0 }
  0xc9   :  { %v227_v9 = vadd.f32 %v3926_v8, %v4494_v7 }
  0xca   :  { %v221_v10 = vpop.f32.mrf.mxu0 }
  0xcb   :  { %4055 = vtanh.f32 %v227_v9  ;;  %v222_v11 = vadd.f32 %v221_v10, %v4494_v7 }
  0xcc   :  { %v3929_v16 = vpop.f32.mrf.mxu0 }
  0xcd   :  { %4057 = vtanh.f32 %v222_v11  ;;  %v237_v19 = vadd.f32 %v3929_v16, %v4494_v7 }
  0xce   :  { %v231_v26 = vpop.f32.mrf.mxu0 }
  0xcf   :  { %4059 = vtanh.f32 %v237_v19  ;;  %v232_v28 = vadd.f32 %v231_v26, %v4494_v7 }
  0xd0   :  { %v3932_v35 = vpop.f32.mrf.mxu0 }
  0xd1   :  { %4061 = vtanh.f32 %v232_v28  ;;  %v247_v36 = vadd.f32 %v3932_v35, %v4494_v7 }
  0xd2   :  { %v241_v40 = vpop.f32.mrf.mxu0 }
  0xd3   :  { %4063 = vtanh.f32 %v247_v36  ;;  %v242_v42 = vadd.f32 %v241_v40, %v4494_v7 }
  0xd4   :  { %v3935_v49 = vpop.f32.mrf.mxu0 }
  0xd5   :  { %4065 = vtanh.f32 %v242_v42  ;;  %v257_v51 = vadd.f32 %v3935_v49, %v4494_v7 }
  0xd6   :  { %v251_v52 = vpop.f32.mrf.mxu0 }
  0xd7   :  { %4067 = vtanh.f32 %v257_v51  ;;  %v252_v53 = vadd.f32 %v251_v52, %v4494_v7 }
  0xd8   :  { %v4056_v15 = vpop.eup %4055  ;;  %v3938_v54 = vpop.f32.mrf.mxu0 }
  0xd9   :  { %v321_v18 = vmul.f32 %v4056_v15, %v4503_v14  ;;  %4069 = vtanh.f32 %v252_v53  ;;  %v267_v55 = vadd.f32 %v3938_v54, %v4494_v7 }
  0xda   :  { %v4058_v20 = vpop.eup %4057  ;;  %v261_v10 = vpop.f32.mrf.mxu0 }
  0xdb   :  { %403 = vrot.lane.b32.xlu0 %v321_v18, %s4240_s25  ;;  %v340_v21 = vsel %vm336_vm2, %v321_v18, 0.0  ;;  %v320_v24 = vmul.f32 %v4058_v20, %v4503_v14  ;;  %4071 = vtanh.f32 %v267_v55  ;;  %v262_v15 = vadd.f32 %v261_v10, %v4494_v7 }
  0xdc   :  { %341 = vadd.xlane.f32.xlu1 %v340_v21  ;;  %v4060_v29 = vpop.eup %4059  ;;  %v3941_v19 = vpop.f32.mrf.mxu0 }
  0xdd   :  { %v337_v27 = vsel %vm336_vm2, %v320_v24, 0.0  ;;  %v323_v30 = vmul.f32 %v4060_v29, %v4503_v14  ;;  %4073 = vtanh.f32 %v262_v15  ;;  %v277_v20 = vadd.f32 %v3941_v19, %v4494_v7 }
  0xde   :  { %v4062_v32 = vpop.eup %4061 }
  0xdf   :  { %499 = vrot.lane.b32.xlu0 %v321_v18, %s4241_s26  ;;  %v322_v34 = vmul.f32 %v4062_v32, %v4503_v14  ;;  %v346_v37 = vsel %vm336_vm2, %v323_v30, 0.0  ;;  %4075 = vtanh.f32 %v277_v20 }
  0xe0   :  { %338 = vadd.xlane.f32.xlu1 %v337_v27  ;;  %v4064_v43 = vpop.eup %4063  ;;  %v271_v27 = vpop.f32.mrf.mxu0 }
  0xe1   :  { %v343_v38 = vsel %vm336_vm2, %v322_v34, 0.0  ;;  %v325_v44 = vmul.f32 %v4064_v43, %v4503_v14  ;;  %v272_v29 = vadd.f32 %v271_v27, %v4494_v7 }
  0xe2   :  { %v4066_v47 = vpop.eup %4065 }
  0xe3   :  { %595 = vrot.lane.b32.xlu0 %v321_v18, %s4242_s27  ;;  %v324_v48 = vmul.f32 %v4066_v47, %v4503_v14  ;;  %v352_v1 = vsel %vm336_vm2, %v325_v44, 0.0  ;;  %4077 = vtanh.f32 %v272_v29 }
  0xe4   :  { %v4068_v56 = vpop.eup %4067 }
  0xe5   :  { %v327_v59 = vmul.f32 %v4068_v56, %v4503_v14  ;;  %v349_v21 = vsel %vm336_vm2, %v324_v48, 0.0 }
  0xe6   :  { %v4070_v60 = vpop.eup %4069 }
  0xe7   :  { %401 = vrot.lane.b32.xlu0 %v320_v24, %s4240_s25  ;;  %v358_v61 = vsel %vm336_vm2, %v327_v59, 0.0  ;;  %v326_v63 = vmul.f32 %v4070_v60, %v4503_v14 }
  0xe8   :  { %v4072_v0 = vpop.eup %4071 }
  0xe9   :  { %v355_v8 = vsel %vm336_vm2, %v326_v63, 0.0  ;;  %v329_v9 = vmul.f32 %v4072_v0, %v4503_v14 }
  0xea   :  { %v4074_v16 = vpop.eup %4073 }
  0xeb   :  { %497 = vrot.lane.b32.xlu0 %v320_v24, %s4241_s26  ;;  %v364_v11 = vsel %vm336_vm2, %v329_v9, 0.0  ;;  %v328_v18 = vmul.f32 %v4074_v16, %v4503_v14 }
  0xed   :  { %v361_v43 = vsel %vm336_vm2, %v328_v18, 0.0 }
  0xef   :  { %593 = vrot.lane.b32.xlu0 %v320_v24, %s4242_s27  ;;  %v4076_v24 = vpop.eup %4075 }
  0xf0   :  { %v331_v26 = vmul.f32 %v4076_v24, %v4503_v14 }
  0xf1   :  { %407 = vrot.lane.b32.xlu1 %v323_v30, %s4240_s25 }
  0xf2   :  { %v370_v28 = vsel %vm336_vm2, %v331_v26, 0.0 }
  0xf3   :  { %503 = vrot.lane.b32.xlu0 %v323_v30, %s4241_s26 }
  0xf5   :  { %599 = vrot.lane.b32.xlu1 %v323_v30, %s4242_s27  ;;  %v4078_v30 = vpop.eup %4077 }
  0xf6   :  { %v330_v32 = vmul.f32 %v4078_v30, %v4503_v14 }
  0xf7   :  { %405 = vrot.lane.b32.xlu0 %v322_v34, %s4240_s25 }
  0xfb   :  { %501 = vrot.lane.b32.xlu0 %v322_v34, %s4241_s26 }
 0x119   :  { %347 = vadd.xlane.f32.xlu1 %v346_v37 }
 0x11a   :  { %344 = vadd.xlane.f32.xlu0 %v343_v38 }
 0x12a   :  { %597 = vrot.lane.b32.xlu1 %v322_v34, %s4242_s27  ;;  %v3944_v34 = vpop.f32.mrf.mxu0 }
 0x12b   :  { %v287_v35 = vadd.f32 %v3944_v34, %v4494_v7 }
 0x12c   :  { %v281_v38 = vpop.f32.mrf.mxu0 }
 0x12d   :  { %4079 = vtanh.f32 %v287_v35  ;;  %v282_v42 = vadd.f32 %v281_v38, %v4494_v7 }
 0x12e   :  { %411 = vrot.lane.b32.xlu1 %v325_v44, %s4240_s25 }
 0x12f   :  { %4081 = vtanh.f32 %v282_v42 }
 0x130   :  { %507 = vrot.lane.b32.xlu0 %v325_v44, %s4241_s26 }
 0x132   :  { %603 = vrot.lane.b32.xlu1 %v325_v44, %s4242_s27 }
 0x134   :  { %409 = vrot.lane.b32.xlu0 %v324_v48, %s4240_s25 }
 0x138   :  { %601 = vrot.lane.b32.xlu0 %v324_v48, %s4242_s27 }
 0x13a   :  { %v4080_v36 = vpop.eup %4079 }
 0x13b   :  { %v333_v37 = vmul.f32 %v4080_v36, %v4503_v14 }
 0x13c   :  { %v4082_v44 = vpop.eup %4081 }
 0x13d   :  { %v376_v40 = vsel %vm336_vm2, %v333_v37, 0.0  ;;  %v332_v47 = vmul.f32 %v4082_v44, %v4503_v14 }
 0x13f   :  { %v373_v35 = vsel %vm336_vm2, %v332_v47, 0.0 }
 0x156   :  { %353 = vadd.xlane.f32.xlu1 %v352_v1 }
 0x157   :  { %359 = vadd.xlane.f32.xlu0 %v358_v61 }
 0x15b   :  { %356 = vadd.xlane.f32.xlu0 %v355_v8 }
 0x15f   :  { %365 = vadd.xlane.f32.xlu0 %v364_v11 }
 0x165   :  { %v4589_v56 = vpop.xlane.xlu1 %341 }
 0x167   :  { %505 = vrot.lane.b32.xlu1 %v324_v48, %s4241_s26  ;;  %v3947_v48 = vpop.f32.mrf.mxu0 }
 0x168   :  { %v297_v49 = vadd.f32 %v3947_v48, %v4494_v7 }
 0x169   :  { %v291_v53 = vpop.f32.mrf.mxu0  ;;  %v4592_v60 = vpop.xlane.xlu1 %338 }
 0x16a   :  { %4083 = vtanh.f32 %v297_v49  ;;  %v292_v55 = vadd.f32 %v291_v53, %v4494_v7 }
 0x16c   :  { %4085 = vtanh.f32 %v292_v55 }
 0x16d   :  { %v408_v0 = vpop.permute.xlu1 %407 }
 0x175   :  { %417 = vrot.lane.b32.xlu0 %v328_v18, %s4240_s25 }
 0x177   :  { %v4084_v51 = vpop.eup %4083 }
 0x178   :  { %v4584_v52 = vmul.f32 %v4084_v51, %v4503_v14 }
 0x179   :  { %513 = vrot.lane.b32.xlu0 %v328_v18, %s4241_s26  ;;  %v4086_v61 = vpop.eup %4085 }
 0x17a   :  { %v382_v54 = vsel %vm336_vm2, %v4584_v52, 0.0  ;;  %v4597_v1 = vmul.f32 %v4086_v61, %v4503_v14 }
 0x17d   :  { %609 = vrot.lane.b32.xlu0 %v328_v18, %s4242_s27 }
 0x18b   :  { %350 = vadd.xlane.f32.xlu1 %v349_v21 }
 0x19c   :  { %371 = vadd.xlane.f32.xlu0 %v370_v28  ;;  %415 = vrot.lane.b32.xlu1 %v327_v59, %s4240_s25  ;;  %v458_v28 = vsel %vm336_vm2, %v408_v0, 0.0 }
 0x1a0   :  { %511 = vrot.lane.b32.xlu1 %v327_v59, %s4241_s26 }
 0x1a4   :  { %607 = vrot.lane.b32.xlu1 %v327_v59, %s4242_s27  ;;  %v367_v59 = vsel %vm336_vm2, %v330_v32, 0.0 }
 0x1a8   :  { %413 = vrot.lane.b32.xlu1 %v326_v63, %s4240_s25 }
 0x1ac   :  { %509 = vrot.lane.b32.xlu1 %v326_v63, %s4241_s26 }
 0x1b0   :  { %605 = vrot.lane.b32.xlu1 %v326_v63, %s4242_s27  ;;  %v4594_v63 = vpop.permute.xlu0 %403 }
 0x1b2   :  { %421 = vrot.lane.b32.xlu0 %v330_v32, %s4240_s25 }
 0x1b4   :  { %419 = vrot.lane.b32.xlu1 %v329_v9, %s4240_s25  ;;  %v4599_v8 = vpop.permute.xlu0 %499 }
 0x1b6   :  { %517 = vrot.lane.b32.xlu0 %v330_v32, %s4241_s26 }
 0x1b8   :  { %515 = vrot.lane.b32.xlu1 %v329_v9, %s4241_s26  ;;  %v4608_v10 = vpop.permute.xlu0 %595 }
 0x1ba   :  { %613 = vrot.lane.b32.xlu0 %v330_v32, %s4242_s27 }
 0x1bc   :  { %611 = vrot.lane.b32.xlu1 %v329_v9, %s4242_s27  ;;  %v600_v9 = vpop.permute.xlu1 %599  ;;  %v4614_v11 = vpop.permute.xlu0 %401 }
 0x1bd   :  { %v650_v32 = vsel %vm336_vm2, %v600_v9, 0.0 }
 0x1c0   :  { %v4604_v7 = vpop.xlane.xlu1 %347  ;;  %v4616_v16 = vpop.permute.xlu0 %497 }
 0x1c4   :  { %v598_v14 = vpop.permute.xlu1 %597  ;;  %v4618_v19 = vpop.permute.xlu0 %593 }
 0x1c5   :  { %v647_v38 = vsel %vm336_vm2, %v598_v14, 0.0 }
 0x1c8   :  { %v412_v15 = vpop.permute.xlu1 %411  ;;  %v4622_v21 = vpop.permute.xlu0 %503 }
 0x1cc   :  { %v604_v18 = vpop.permute.xlu1 %603 }
 0x1cd   :  { %v656_v48 = vsel %vm336_vm2, %v604_v18, 0.0 }
 0x1d9   :  { %377 = vadd.xlane.f32.xlu0 %v376_v40 }
 0x1df   :  { %v4620_v20 = vpop.xlane.xlu1 %353 }
 0x1e0   :  { %362 = vadd.xlane.f32.xlu1 %v361_v43  ;;  %v464_v43 = vsel %vm336_vm2, %v412_v15, 0.0 }
 0x1e3   :  { %v4624_v24 = vpop.permute.xlu1 %505 }
 0x1ef   :  { %425 = vrot.lane.b32.xlu0 %v332_v47, %s4240_s25 }
 0x1f1   :  { %423 = vrot.lane.b32.xlu1 %v331_v26, %s4240_s25 }
 0x1f3   :  { %521 = vrot.lane.b32.xlu0 %v332_v47, %s4241_s26 }
 0x1f5   :  { %519 = vrot.lane.b32.xlu1 %v331_v26, %s4241_s26 }
 0x1f7   :  { %617 = vrot.lane.b32.xlu0 %v332_v47, %s4242_s27 }
 0x1f9   :  { %615 = vrot.lane.b32.xlu1 %v331_v26, %s4242_s27  ;;  %v4626_v26 = vpop.permute.xlu0 %405 }
 0x1fd   :  { %v502_v29 = vpop.permute.xlu0 %501 }
 0x1fe   :  { %v551_v36 = vsel %vm336_vm2, %v502_v29, 0.0 }
 0x201   :  { %v4632_v34 = vpop.xlane.xlu0 %344 }
 0x205   :  { %v4637_v40 = vpop.permute.xlu0 %507 }
 0x209   :  { %v410_v44 = vpop.permute.xlu0 %409 }
 0x20a   :  { %v461_v47 = vsel %vm336_vm2, %v410_v44, 0.0 }
 0x20d   :  { %v602_v51 = vpop.permute.xlu0 %601 }
 0x211   :  { %v4651_v0 = vpop.xlane.xlu0 %359 }
 0x214   :  { %v4628_v27 = vpop.xlane.xlu1 %350 }
 0x215   :  { %v4654_v15 = vpop.xlane.xlu0 %356 }
 0x216   :  { %383 = vadd.xlane.f32.xlu0 %v382_v54  ;;  %v653_v54 = vsel %vm336_vm2, %v602_v51, 0.0 }
 0x218   :  { %v416_v30 = vpop.permute.xlu1 %415 }
 0x219   :  { %v470_v55 = vsel %vm336_vm2, %v416_v30, 0.0 }
 0x21d   :  { %368 = vadd.xlane.f32.xlu1 %v367_v59 }
 0x22c   :  { %429 = vrot.lane.b32.xlu0 %v4597_v1, %s4240_s25 }
 0x22e   :  { %427 = vrot.lane.b32.xlu1 %v333_v37, %s4240_s25 }
 0x230   :  { %525 = vrot.lane.b32.xlu0 %v4597_v1, %s4241_s26 }
 0x232   :  { %523 = vrot.lane.b32.xlu1 %v333_v37, %s4241_s26 }
 0x234   :  { %621 = vrot.lane.b32.xlu0 %v4597_v1, %s4242_s27 }
 0x236   :  { %619 = vrot.lane.b32.xlu1 %v333_v37, %s4242_s27  ;;  %v512_v37 = vpop.permute.xlu1 %511 }
 0x237   :  { %v566_v61 = vsel %vm336_vm2, %v512_v37, 0.0 }
 0x23a   :  { %v608_v42 = vpop.permute.xlu1 %607 }
 0x23b   :  { %v662_v14 = vsel %vm336_vm2, %v608_v42, 0.0 }
 0x23e   :  { %v414_v49 = vpop.permute.xlu1 %413 }
 0x23f   :  { %v467_v18 = vsel %vm336_vm2, %v414_v49, 0.0 }
 0x242   :  { %v510_v53 = vpop.permute.xlu1 %509 }
 0x243   :  { %v563_v29 = vsel %vm336_vm2, %v510_v53, 0.0 }
 0x246   :  { %v606_v59 = vpop.permute.xlu1 %605 }
 0x24a   :  { %v420_v9 = vpop.permute.xlu1 %419 }
 0x24b   :  { %v476_v37 = vsel %vm336_vm2, %v420_v9, 0.0 }
 0x253   :  { %459 = vadd.xlane.f32.xlu0 %v458_v28  ;;  %v516_v28 = vpop.permute.xlu1 %515 }
 0x257   :  { %651 = vadd.xlane.f32.xlu0 %v650_v32  ;;  %v612_v30 = vpop.permute.xlu1 %611  ;;  %v659_v32 = vsel %vm336_vm2, %v606_v59, 0.0 }
 0x258   :  { %v668_v44 = vsel %vm336_vm2, %v612_v30, 0.0 }
 0x25a   :  { %374 = vadd.xlane.f32.xlu1 %v373_v35 }
 0x25b   :  { %552 = vadd.xlane.f32.xlu0 %v551_v36 }
 0x25f   :  { %648 = vadd.xlane.f32.xlu0 %v647_v38  ;;  %v572_v38 = vsel %vm336_vm2, %v516_v28, 0.0 }
 0x263   :  { %465 = vadd.xlane.f32.xlu0 %v464_v43 }
 0x267   :  { %657 = vadd.xlane.f32.xlu0 %v656_v48 }
 0x269   :  { %v4661_v35 = vpop.xlane.xlu1 %362 }
 0x26b   :  { %431 = vrot.lane.b32.xlu1 %v4584_v52, %s4240_s25  ;;  %462 = vadd.xlane.f32.xlu0 %v461_v47  ;;  %v379_v47 = vsel %vm336_vm2, %v4597_v1, 0.0 }
 0x26d   :  { %v424_v42 = vpop.permute.xlu1 %423 }
 0x26e   :  { %v482_v51 = vsel %vm336_vm2, %v424_v42, 0.0 }
 0x26f   :  { %527 = vrot.lane.b32.xlu1 %v4584_v52, %s4241_s26  ;;  %654 = vadd.xlane.f32.xlu0 %v653_v54  ;;  %v452_v54 = vsel %vm336_vm2, %v4594_v63, 0.0  ;;  %v449_v63 = vsel %vm336_vm2, %v4614_v11, 0.0 }
 0x271   :  { %v520_v48 = vpop.permute.xlu1 %519 }
 0x273   :  { %623 = vrot.lane.b32.xlu1 %v4584_v52, %s4242_s27  ;;  %471 = vadd.xlane.f32.xlu0 %v470_v55  ;;  %v4658_v52 = vpop.xlane.xlu0 %365  ;;  %v578_v55 = vsel %vm336_vm2, %v520_v48, 0.0 }
 0x275   :  { %v616_v59 = vpop.permute.xlu1 %615 }
 0x276   :  { %v674_v9 = vsel %vm336_vm2, %v616_v59, 0.0 }
 0x277   :  { %567 = vadd.xlane.f32.xlu0 %v566_v61  ;;  %v418_v36 = vpop.permute.xlu0 %417  ;;  %v548_v61 = vsel %vm336_vm2, %v4599_v8, 0.0  ;;  %v545_v8 = vsel %vm336_vm2, %v4616_v16, 0.0 }
 0x27b   :  { %663 = vadd.xlane.f32.xlu0 %v662_v14  ;;  %v514_v43 = vpop.permute.xlu0 %513  ;;  %v644_v14 = vsel %vm336_vm2, %v4608_v10, 0.0  ;;  %v641_v10 = vsel %vm336_vm2, %v4618_v19, 0.0  ;;  %v560_v19 = vsel %vm336_vm2, %v4637_v40, 0.0 }
 0x27f   :  { %468 = vadd.xlane.f32.xlu0 %v467_v18  ;;  %v610_v49 = vpop.permute.xlu0 %609 }
 0x283   :  { %564 = vadd.xlane.f32.xlu0 %v563_v29  ;;  %v4669_v53 = vpop.xlane.xlu0 %371 }
 0x287   :  { %660 = vadd.xlane.f32.xlu0 %v659_v32  ;;  %v422_v1 = vpop.permute.xlu0 %421 }
 0x288   :  { %v479_v40 = vsel %vm336_vm2, %v422_v1, 0.0 }
 0x28b   :  { %477 = vadd.xlane.f32.xlu0 %v476_v37  ;;  %v518_v18 = vpop.permute.xlu0 %517 }
 0x28f   :  { %573 = vadd.xlane.f32.xlu0 %v572_v38  ;;  %v614_v32 = vpop.permute.xlu0 %613 }
 0x293   :  { %669 = vadd.xlane.f32.xlu0 %v668_v44  ;;  %v4689_v42 = vpop.xlane.xlu0 %377  ;;  %v554_v44 = vsel %vm336_vm2, %v4622_v21, 0.0  ;;  %v473_v21 = vsel %vm336_vm2, %v418_v36, 0.0 }
 0x297   :  { %380 = vadd.xlane.f32.xlu1 %v379_v47  ;;  %483 = vadd.xlane.f32.xlu0 %v482_v51  ;;  %v426_v48 = vpop.permute.xlu0 %425  ;;  %v455_v47 = vsel %vm336_vm2, %v4626_v26, 0.0  ;;  %v665_v26 = vsel %vm336_vm2, %v610_v49, 0.0 }
 0x29b   :  { %453 = vadd.xlane.f32.xlu1 %v452_v54  ;;  %579 = vadd.xlane.f32.xlu0 %v578_v55  ;;  %v522_v51 = vpop.permute.xlu0 %521  ;;  %v557_v54 = vsel %vm336_vm2, %v4624_v24, 0.0  ;;  %v575_v24 = vsel %vm336_vm2, %v518_v18, 0.0 }
 0x29f   :  { %549 = vadd.xlane.f32.xlu1 %v548_v61  ;;  %675 = vadd.xlane.f32.xlu0 %v674_v9  ;;  %v618_v55 = vpop.permute.xlu0 %617  ;;  %v569_v61 = vsel %vm336_vm2, %v514_v43, 0.0 }
 0x2a3   :  { %645 = vadd.xlane.f32.xlu1 %v644_v14  ;;  %v4701_v59 = vpop.xlane.xlu0 %383 }
 0x2a6   :  { %v4679_v28 = vpop.xlane.xlu1 %368 }
 0x2a7   :  { %450 = vadd.xlane.f32.xlu1 %v449_v63  ;;  %v430_v9 = vpop.permute.xlu0 %429  ;;  %v671_v63 = vsel %vm336_vm2, %v614_v32, 0.0 }
 0x2a8   :  { %v491_v18 = vsel %vm336_vm2, %v430_v9, 0.0 }
 0x2aa   :  { %v428_v29 = vpop.permute.xlu1 %427 }
 0x2ab   :  { %546 = vadd.xlane.f32.xlu1 %v545_v8  ;;  %v488_v30 = vsel %vm336_vm2, %v428_v29, 0.0  ;;  %v526_v14 = vpop.permute.xlu0 %525  ;;  %v485_v29 = vsel %vm336_vm2, %v426_v48, 0.0  ;;  %v581_v8 = vsel %vm336_vm2, %v522_v51, 0.0 }
 0x2ac   :  { %489 = vadd.xlane.f32.xlu0 %v488_v30  ;;  %v677_v30 = vsel %vm336_vm2, %v618_v55, 0.0 }
 0x2ae   :  { %v524_v37 = vpop.permute.xlu1 %523 }
 0x2af   :  { %642 = vadd.xlane.f32.xlu1 %v641_v10  ;;  %v584_v38 = vsel %vm336_vm2, %v524_v37, 0.0  ;;  %v622_v36 = vpop.permute.xlu0 %621 }
 0x2b0   :  { %585 = vadd.xlane.f32.xlu0 %v584_v38 }
 0x2b2   :  { %v620_v11 = vpop.permute.xlu1 %619 }
 0x2b3   :  { %555 = vadd.xlane.f32.xlu1 %v554_v44  ;;  %v680_v16 = vsel %vm336_vm2, %v620_v11, 0.0  ;;  %v587_v11 = vsel %vm336_vm2, %v526_v14, 0.0 }
 0x2b4   :  { %681 = vadd.xlane.f32.xlu0 %v680_v16 }
 0x2b7   :  { %456 = vadd.xlane.f32.xlu1 %v455_v47  ;;  %v683_v47 = vsel %vm336_vm2, %v622_v36, 0.0 }
 0x2bb   :  { %561 = vadd.xlane.f32.xlu1 %v560_v19 }
 0x2bf   :  { %558 = vadd.xlane.f32.xlu1 %v557_v54 }
 0x2c3   :  { %474 = vadd.xlane.f32.xlu1 %v473_v21 }
 0x2c7   :  { %570 = vadd.xlane.f32.xlu1 %v569_v61 }
 0x2cb   :  { %666 = vadd.xlane.f32.xlu1 %v665_v26 }
 0x2cf   :  { %480 = vadd.xlane.f32.xlu1 %v479_v40 }
 0x2d3   :  { %576 = vadd.xlane.f32.xlu1 %v575_v24 }
 0x2d7   :  { %672 = vadd.xlane.f32.xlu1 %v671_v63 }
 0x2db   :  { %486 = vadd.xlane.f32.xlu1 %v485_v29 }
 0x2dc   :  { %v460_v43 = vpop.xlane.xlu0 %459 }
 0x2df   :  { %582 = vadd.xlane.f32.xlu1 %v581_v8  ;;  %v4724_v8 = vsub.s32 1, %v4478_v5 }
 0x2e0   :  { %v652_v49 = vpop.xlane.xlu0 %651 }
 0x2e1   :  { %5611 = vst [vmem:[#allocation4_spill] sm:$0xff] %v4724_v8 }
 0x2e3   :  { %678 = vadd.xlane.f32.xlu1 %v677_v30  ;;  %v4711_v1 = vpop.xlane.xlu1 %374 }
 0x2e4   :  { %v4713_v37 = vpop.xlane.xlu0 %552 }
 0x2e7   :  { %492 = vadd.xlane.f32.xlu1 %v491_v18  ;;  %v432_v32 = vpop.permute.xlu1 %431 }
 0x2e8   :  { %v649_v10 = vpop.xlane.xlu0 %648  ;;  %v494_v38 = vsel %vm336_vm2, %v432_v32, 0.0  ;;  %v4730_v32 = vrot.slane %v4490_v3, %v4724_v8 }
 0x2e9   :  { %495 = vadd.xlane.f32.xlu0 %v494_v38 }
 0x2eb   :  { %588 = vadd.xlane.f32.xlu1 %v587_v11  ;;  %v528_v44 = vpop.permute.xlu1 %527 }
 0x2ec   :  { %v466_v16 = vpop.xlane.xlu0 %465  ;;  %v590_v48 = vsel %vm336_vm2, %v528_v44, 0.0 }
 0x2ed   :  { %591 = vadd.xlane.f32.xlu0 %v590_v48 }
 0x2ef   :  { %684 = vadd.xlane.f32.xlu1 %v683_v47  ;;  %v624_v19 = vpop.permute.xlu1 %623 }
 0x2f0   :  { %v686_v51 = vsel %vm336_vm2, %v624_v19, 0.0  ;;  %v658_v54 = vpop.xlane.xlu0 %657  ;;  %vm3015_vm2 = vcmask 31744  }
 0x2f1   :  { %687 = vadd.xlane.f32.xlu0 %v686_v51 }
 0x2f4   :  { %v463_v55 = vpop.xlane.xlu0 %462 }
 0x2f8   :  { %v655_v21 = vpop.xlane.xlu0 %654 }
 0x2fc   :  { %v472_v61 = vpop.xlane.xlu0 %471 }
 0x300   :  { %v568_v26 = vpop.xlane.xlu0 %567 }
 0x304   :  { %v664_v9 = vpop.xlane.xlu0 %663 }
 0x308   :  { %v469_v40 = vpop.xlane.xlu0 %468 }
 0x30c   :  { %v565_v14 = vpop.xlane.xlu0 %564 }
 0x310   :  { %v661_v63 = vpop.xlane.xlu0 %660 }
 0x314   :  { %v478_v36 = vpop.xlane.xlu0 %477 }
 0x318   :  { %v574_v48 = vpop.xlane.xlu0 %573 }
 0x31c   :  { %v670_v51 = vpop.xlane.xlu0 %669 }
 0x320   :  { %v4721_v24 = vpop.xlane.xlu1 %380  ;;  %v484_v8 = vpop.xlane.xlu0 %483 }
 0x324   :  { %v454_v29 = vpop.xlane.xlu1 %453 }
 0x325   :  { %v691_v18 = vsel %vm689_vm3, %v4589_v56, %v454_v29 }
 0x328   :  { %v550_v30 = vpop.xlane.xlu1 %549 }
 0x329   :  { %v708_v38 = vsel %vm706_vm4, %v691_v18, %v550_v30  ;;  %v693_v18 = vsel %vm689_vm3, %v4604_v7, %v460_v43  ;;  %v695_v7 = vsel %vm689_vm3, %v4620_v20, %v466_v16 }
 0x32c   :  { %v646_v11 = vpop.xlane.xlu1 %645 }
 0x32d   :  { %v725_v44 = vsel %vm723_vm5, %v708_v38, %v646_v11 }
 0x32e   :  { %v745_v47 = vadd.f32 %v4730_v32, %v725_v44 }
 0x330   :  { %792 = vxpose.xlu0.b32.start.end [1/1] (short) (narrow) %v745_v47, 8  ;;  %v451_v19 = vpop.xlane.xlu1 %450 }
 0x331   :  { %v690_v56 = vsel %vm689_vm3, %v4592_v60, %v451_v19  ;;  %v580_v60 = vpop.xlane.xlu0 %579 }
 0x334   :  { %v547_v62 = vpop.xlane.xlu1 %546 }
 0x335   :  { %v707_v29 = vsel %vm706_vm4, %v690_v56, %v547_v62 }
 0x338   :  { %v643_v13 = vpop.xlane.xlu1 %642 }
 0x339   :  { %v724_v3 = vsel %vm723_vm5, %v707_v29, %v643_v13 }
 0x33a   :  { %v744_v30 = vadd.f32 %v4730_v32, %v724_v3  ;;  %v676_v3 = vpop.xlane.xlu0 %675 }
 0x33c   :  { %760 = vxpose.xlu0.b32.start.end [1/1] (short) (narrow) %v744_v30, 8  ;;  %v556_v38 = vpop.xlane.xlu1 %555 }
 0x33d   :  { %v710_v11 = vsel %vm706_vm4, %v693_v18, %v556_v38 }
 0x33e   :  { %v727_v44 = vsel %vm723_vm5, %v710_v11, %v652_v49  ;;  %v490_v11 = vpop.xlane.xlu0 %489 }
 0x33f   :  { %v747_v47 = vadd.f32 %v4730_v32, %v727_v44 }
 0x340   :  { %v457_v19 = vpop.xlane.xlu1 %456 }
 0x341   :  { %v692_v62 = vsel %vm689_vm3, %v4632_v34, %v457_v19  ;;  %856 = vxpose.xlu0.b32.start.end [1/1] (short) (narrow) %v747_v47, 8  ;;  %v697_v34 = vsel %vm689_vm3, %v4651_v0, %v472_v61 }
 0x342   :  { %v709_v13 = vsel %vm706_vm4, %v692_v62, %v4713_v37  ;;  %v694_v37 = vsel %vm689_vm3, %v4628_v27, %v463_v55  ;;  %v586_v19 = vpop.xlane.xlu0 %585 }
 0x343   :  { %v726_v56 = vsel %vm723_vm5, %v709_v13, %v649_v10  ;;  %v714_v10 = vsel %vm706_vm4, %v697_v34, %v568_v26 }
 0x344   :  { %v562_v43 = vpop.xlane.xlu1 %561  ;;  %v746_v29 = vadd.f32 %v4730_v32, %v726_v56  ;;  %v731_v16 = vsel %vm723_vm5, %v714_v10, %v664_v9  ;;  %v699_v9 = vsel %vm689_vm3, %v4658_v52, %v478_v36 }
 0x345   :  { %v712_v49 = vsel %vm706_vm4, %v695_v7, %v562_v43  ;;  %v751_v61 = vadd.f32 %v4730_v32, %v731_v16  ;;  %v716_v47 = vsel %vm706_vm4, %v699_v9, %v574_v48 }
 0x346   :  { %v729_v30 = vsel %vm723_vm5, %v712_v49, %v658_v54  ;;  %824 = vxpose.xlu1.b32.start.end [1/1] (short) (narrow) %v746_v29, 8  ;;  %v696_v54 = vsel %vm689_vm3, %v4654_v15, %v469_v40  ;;  %v733_v40 = vsel %vm723_vm5, %v716_v47, %v670_v51  ;;  %v682_v7 = vpop.xlane.xlu0 %681 }
 0x347   :  { %v749_v18 = vadd.f32 %v4730_v32, %v729_v30  ;;  %v713_v27 = vsel %vm706_vm4, %v696_v54, %v565_v14  ;;  %v701_v14 = vsel %vm689_vm3, %v4669_v53, %v484_v8  ;;  %v753_v62 = vadd.f32 %v4730_v32, %v733_v40 }
 0x348   :  { %v559_v20 = vpop.xlane.xlu1 %558  ;;  %v730_v26 = vsel %vm723_vm5, %v713_v27, %v661_v63  ;;  %v718_v13 = vsel %vm706_vm4, %v701_v14, %v580_v60  ;;  %v703_v53 = vsel %vm689_vm3, %v4689_v42, %v490_v11 }
 0x349   :  { %v711_v38 = vsel %vm706_vm4, %v694_v37, %v559_v20  ;;  %v735_v48 = vsel %vm723_vm5, %v718_v13, %v676_v3  ;;  %v720_v8 = vsel %vm706_vm4, %v703_v53, %v586_v19 }
 0x34a   :  { %v728_v44 = vsel %vm723_vm5, %v711_v38, %v655_v21  ;;  %920 = vxpose.xlu1.b32.start.end [1/1] (short) (narrow) %v749_v18, 8  ;;  %v750_v21 = vadd.f32 %v4730_v32, %v730_v26  ;;  %v737_v43 = vsel %vm723_vm5, %v720_v8, %v682_v7 }
 0x34b   :  { %v748_v0 = vadd.f32 %v4730_v32, %v728_v44  ;;  %v757_v29 = vadd.f32 %v4730_v32, %v737_v43 }
 0x34c   :  { %v475_v55 = vpop.xlane.xlu1 %474 }
 0x34d   :  { %888 = vxpose.xlu0.b32.start.end [1/1] (short) (narrow) %v748_v0, 8  ;;  %v698_v63 = vsel %vm689_vm3, %v4661_v35, %v475_v55  ;;  %v755_v35 = vadd.f32 %v4730_v32, %v735_v48 }
 0x34e   :  { %984 = vxpose.xlu1.b32.start.end [1/1] (short) (narrow) %v751_v61, 8 }
 0x350   :  { %v571_v15 = vpop.xlane.xlu1 %570 }
 0x351   :  { %v715_v52 = vsel %vm706_vm4, %v698_v63, %v571_v15 }
 0x352   :  { %952 = vxpose.xlu1.b32.start.end [1/1] (short) (narrow) %v750_v21, 8 }
 0x354   :  { %v667_v36 = vpop.xlane.xlu1 %666 }
 0x355   :  { %v732_v56 = vsel %vm723_vm5, %v715_v52, %v667_v36 }
 0x356   :  { %v752_v51 = vadd.f32 %v4730_v32, %v732_v56  ;;  %1048 = vxpose.xlu1.b32.start.end [1/1] (short) (narrow) %v753_v62, 8 }
 0x358   :  { %1016 = vxpose.xlu0.b32.start.end [1/1] (short) (narrow) %v752_v51, 8  ;;  %v481_v60 = vpop.xlane.xlu1 %480 }
 0x359   :  { %v700_v3 = vsel %vm689_vm3, %v4679_v28, %v481_v60 }
 0x35a   :  { %1112 = vxpose.xlu1.b32.start.end [1/1] (short) (narrow) %v755_v35, 8 }
 0x35c   :  { %v577_v49 = vpop.xlane.xlu1 %576 }
 0x35d   :  { %v717_v30 = vsel %vm706_vm4, %v700_v3, %v577_v49 }
 0x35e   :  { %1176 = vxpose.xlu1.b32.start.end [1/1] (short) (narrow) %v757_v29, 8 }
 0x360   :  { %v673_v34 = vpop.xlane.xlu1 %672 }
 0x361   :  { %v734_v42 = vsel %vm723_vm5, %v717_v30, %v673_v34 }
 0x362   :  { %v754_v18 = vadd.f32 %v4730_v32, %v734_v42 }
 0x364   :  { %1080 = vxpose.xlu0.b32.start.end [1/1] (short) (narrow) %v754_v18, 8  ;;  %v487_v37 = vpop.xlane.xlu1 %486 }
 0x365   :  { %v702_v20 = vsel %vm689_vm3, %v4711_v1, %v487_v37 }
 0x368   :  { %v583_v10 = vpop.xlane.xlu1 %582 }
 0x369   :  { %v719_v16 = vsel %vm706_vm4, %v702_v20, %v583_v10 }
 0x36c   :  { %v679_v38 = vpop.xlane.xlu1 %678 }
 0x36d   :  { %v736_v11 = vsel %vm723_vm5, %v719_v16, %v679_v38 }
 0x36e   :  { %v756_v28 = vadd.f32 %v4730_v32, %v736_v11 }
 0x370   :  { %1144 = vxpose.xlu0.b32.start.end [1/1] (short) (narrow) %v756_v28, 8  ;;  %v493_v44 = vpop.xlane.xlu1 %492 }
 0x371   :  { %v704_v27 = vsel %vm689_vm3, %v4721_v24, %v493_v44 }
 0x372   :  { %v496_v54 = vpop.xlane.xlu0 %495 }
 0x373   :  { %v705_v1 = vsel %vm689_vm3, %v4701_v59, %v496_v54  ;;  %vm3512_vm3 = vcmask 93184  }
 0x374   :  { %v589_v0 = vpop.xlane.xlu1 %588 }
 0x375   :  { %v721_v55 = vsel %vm706_vm4, %v704_v27, %v589_v0 }
 0x376   :  { %v592_v61 = vpop.xlane.xlu0 %591 }
 0x377   :  { %v722_v21 = vsel %vm706_vm4, %v705_v1, %v592_v61 }
 0x378   :  { %v685_v26 = vpop.xlane.xlu1 %684 }
 0x379   :  { %v738_v9 = vsel %vm723_vm5, %v721_v55, %v685_v26 }
 0x37a   :  { %v758_v47 = vadd.f32 %v4730_v32, %v738_v9  ;;  %v688_v19 = vpop.xlane.xlu0 %687 }
 0x37b   :  { %v739_v15 = vsel %vm723_vm5, %v722_v21, %v688_v19 }
 0x37c   :  { %1208 = vxpose.xlu1.b32.start.end [1/1] (short) (narrow) %v758_v47, 8  ;;  %v759_v40 = vadd.f32 %v4730_v32, %v739_v15 }
 0x380   :  { %1240 = vxpose.xlu1.b32.start.end [1/1] (short) (narrow) %v759_v40, 8 }
 0x3ac   :  { %v4811_v24 = vpop.trf.xlu0 }
 0x3ad   :  { %v1276_v36 = vsel %vm1272_vm6, %v4811_v24, -inf }
 0x3b8   :  { %v776_v14 = vpop.trf.xlu0 }
 0x3b9   :  { %v1273_v62 = vsel %vm1272_vm6, %v776_v14, -inf }
 0x3bd   :  { %v872_v63 = vpop.trf.xlu0 }
 0x3be   :  { %v1282_v59 = vsel %vm1272_vm6, %v872_v63, -inf }
 0x3bf   :  { %1283 = vmax.xlane.f32.xlu1 %v1282_v59 }
 0x3c2   :  { %v840_v13 = vpop.trf.xlu1 }
 0x3c3   :  { %1274 = vmax.xlane.f32.xlu1 %v1273_v62  ;;  %v1279_v52 = vsel %vm1272_vm6, %v840_v13, -inf }
 0x3c4   :  { %1280 = vmax.xlane.f32.xlu0 %v1279_v52 }
 0x3c6   :  { %v936_v32 = vpop.trf.xlu1 }
 0x3c7   :  { %1277 = vmax.xlane.f32.xlu1 %v1276_v36  ;;  %v1288_v51 = vsel %vm1272_vm6, %v936_v32, -inf }
 0x3c9   :  { %v904_v48 = vpop.trf.xlu0 }
 0x3ca   :  { %v1285_v56 = vsel %vm1272_vm6, %v904_v48, -inf  ;;  %v4819_v7 = vpop.trf.xlu1 }
 0x3cb   :  { %1286 = vmax.xlane.f32.xlu0 %v1285_v56  ;;  %v1294_v43 = vsel %vm1272_vm6, %v4819_v7, -inf }
 0x3ce   :  { %v968_v53 = vpop.trf.xlu1 }
 0x3cf   :  { %1289 = vmax.xlane.f32.xlu0 %v1288_v51  ;;  %v1291_v35 = vsel %vm1272_vm6, %v968_v53, -inf }
 0x3d2   :  { %v4823_v8 = vpop.trf.xlu1 }
 0x3d3   :  { %1292 = vmax.xlane.f32.xlu0 %v1291_v35  ;;  %v1300_v3 = vsel %vm1272_vm6, %v4823_v8, -inf }
 0x3d4   :  { %v4825_v60 = vpop.trf.xlu0 }
 0x3d5   :  { %v1297_v29 = vsel %vm1272_vm6, %v4825_v60, -inf }
 0x3d6   :  { %1298 = vmax.xlane.f32.xlu1 %v1297_v29  ;;  %v4831_v49 = vpop.trf.xlu1 }
 0x3d7   :  { %1295 = vmax.xlane.f32.xlu0 %v1294_v43  ;;  %v1306_v30 = vsel %vm1272_vm6, %v4831_v49, -inf }
 0x3da   :  { %v4837_v34 = vpop.trf.xlu1 }
 0x3db   :  { %1301 = vmax.xlane.f32.xlu0 %v1300_v3  ;;  %v1312_v18 = vsel %vm1272_vm6, %v4837_v34, -inf }
 0x3df   :  { %1307 = vmax.xlane.f32.xlu0 %v1306_v30 }
 0x3e0   :  { %v4839_v42 = vpop.trf.xlu0 }
 0x3e1   :  { %v1303_v37 = vsel %vm1272_vm6, %v4839_v42, -inf }
 0x3e2   :  { %1304 = vmax.xlane.f32.xlu1 %v1303_v37 }
 0x3e3   :  { %1313 = vmax.xlane.f32.xlu0 %v1312_v18 }
 0x3ec   :  { %v4845_v10 = vpop.trf.xlu0 }
 0x3ed   :  { %v1309_v20 = vsel %vm1272_vm6, %v4845_v10, -inf }
 0x3ee   :  { %1310 = vmax.xlane.f32.xlu1 %v1309_v20 }
 0x3f8   :  { %v4849_v16 = vpop.trf.xlu1 }
 0x3f9   :  { %v1315_v38 = vsel %vm1272_vm6, %v4849_v16, -inf }
 0x3fa   :  { %1316 = vmax.xlane.f32.xlu1 %v1315_v38 }
 0x3fc   :  { %v4853_v11 = vpop.trf.xlu1 }
 0x3fd   :  { %v1318_v28 = vsel %vm1272_vm6, %v4853_v11, -inf }
 0x3fe   :  { %1319 = vmax.xlane.f32.xlu0 %v1318_v28 }
 0x448   :  { %v1284_v44 = vpop.xlane.xlu1 %1283 }
 0x449   :  { %v1324_v54 = vsub.f32 %v872_v63, %v1284_v44 }
 0x44b   :  { %v1343_v0 = vmul.f32 1.442695, %v1324_v54 }
 0x44c   :  { %v1275_v27 = vpop.xlane.xlu1 %1274 }
 0x44d   :  { %4087 = vpow2.f32 %v1343_v0  ;;  %v1281_v61 = vpop.xlane.xlu0 %1280  ;;  %v1321_v1 = vsub.f32 %v776_v14, %v1275_v27 }
 0x44e   :  { %v1323_v55 = vsub.f32 %v840_v13, %v1281_v61 }
 0x44f   :  { %v1337_v19 = vmul.f32 1.442695, %v1321_v1  ;;  %v4243_v1 = vmov 0.0  }
 0x450   :  { %v1341_v26 = vmul.f32 1.442695, %v1323_v55  ;;  %v1278_v9 = vpop.xlane.xlu1 %1277  ;;  %3948 = vmatprep.subr.mxu0 %v4243_v1  ;;  %3958 = vmatprep.subr.mxu1 %v4243_v1 }
 0x451   :  { %v1322_v15 = vsub.f32 %v4811_v24, %v1278_v9  ;;  %3949 = vmatpush3.msra.mxu0 %v4328_v12  ;;  %3959 = vmatpush3.msra.mxu1 %v4352_v22 }
 0x452   :  { %4089 = vpow2.f32 %v1341_v26  ;;  %3963 = vmatprep.subr.mxu1 %v4243_v1  ;;  %3953 = vmatprep.subr.mxu0 %v4243_v1 }
 0x453   :  { %v1339_v63 = vmul.f32 1.442695, %v1322_v15  ;;  %3960 = vmatprep.mubr.msk.f32.mxu1 %vm4244_vm7, %v4243_v1  ;;  %3950 = vmatprep.mubr.msk.f32.mxu0 %vm4244_vm7, %v4243_v1 }
 0x454   :  { %v1287_v21 = vpop.xlane.xlu0 %1286 }
 0x455   :  { %v1325_v47 = vsub.f32 %v904_v48, %v1287_v21 }
 0x457   :  { %v1345_v40 = vmul.f32 1.442695, %v1325_v47 }
 0x458   :  { %v1290_v59 = vpop.xlane.xlu0 %1289 }
 0x459   :  { %4091 = vpow2.f32 %v1345_v40  ;;  %v1326_v62 = vsub.f32 %v936_v32, %v1290_v59 }
 0x45a   :  { %v4858_v52 = vpop.eup %4087  ;;  %4093 = vpow2.f32 %v1337_v19 }
 0x45b   :  { %v1347_v36 = vmul.f32 1.442695, %v1326_v62  ;;  %v1378_v13 = vsel %vm1272_vm6, %v4858_v52, 0.0 }
 0x45c   :  { %v1293_v56 = vpop.xlane.xlu0 %1292  ;;  %1379 = vadd.xlane.f32.xlu0 %v1378_v13 }
 0x45d   :  { %4095 = vpow2.f32 %v1347_v36  ;;  %v1327_v14 = vsub.f32 %v968_v53, %v1293_v56 }
 0x45e   :  { %4097 = vpow2.f32 %v1339_v63 }
 0x45f   :  { %v4862_v48 = vpop.eup %4089  ;;  %v1349_v24 = vmul.f32 1.442695, %v1327_v14  ;;  %v1299_v51 = vpop.xlane.xlu1 %1298 }
 0x460   :  { %v1329_v35 = vsub.f32 %v4825_v60, %v1299_v51  ;;  %v1296_v32 = vpop.xlane.xlu0 %1295  ;;  %v1375_v43 = vsel %vm1272_vm6, %v4862_v48, 0.0 }
 0x461   :  { %4099 = vpow2.f32 %v1349_v24  ;;  %v1328_v29 = vsub.f32 %v4819_v7, %v1296_v32  ;;  %1376 = vadd.xlane.f32.xlu1 %v1375_v43 }
 0x462   :  { %v1353_v3 = vmul.f32 1.442695, %v1329_v35 }
 0x463   :  { %v1351_v30 = vmul.f32 1.442695, %v1328_v29 }
 0x464   :  { %4101 = vpow2.f32 %v1353_v3  ;;  %v1302_v18 = vpop.xlane.xlu0 %1301 }
 0x465   :  { %4103 = vpow2.f32 %v1351_v30  ;;  %v1330_v53 = vsub.f32 %v4823_v8, %v1302_v18 }
 0x466   :  { %v4869_v37 = vpop.eup %4091 }
 0x467   :  { %v1355_v20 = vmul.f32 1.442695, %v1330_v53  ;;  %v1381_v60 = vsel %vm1272_vm6, %v4869_v37, 0.0  ;;  %v4873_v38 = vpop.eup %4093 }
 0x468   :  { %v1308_v28 = vpop.xlane.xlu0 %1307  ;;  %1382 = vadd.xlane.f32.xlu1 %v1381_v60  ;;  %v1369_v61 = vsel %vm1272_vm6, %v4873_v38, 0.0 }
 0x469   :  { %4105 = vpow2.f32 %v1355_v20  ;;  %v1332_v7 = vsub.f32 %v4831_v49, %v1308_v28 }
 0x46a   :  { %v4876_v44 = vpop.eup %4095 }
 0x46b   :  { %v1359_v54 = vmul.f32 1.442695, %v1332_v7  ;;  %v1305_v0 = vpop.xlane.xlu1 %1304  ;;  %v1384_v8 = vsel %vm1272_vm6, %v4876_v44, 0.0  ;;  %v4882_v27 = vpop.eup %4097 }
 0x46c   :  { %v1331_v55 = vsub.f32 %v4839_v42, %v1305_v0  ;;  %v1314_v26 = vpop.xlane.xlu0 %1313  ;;  %1385 = vadd.xlane.f32.xlu0 %v1384_v8  ;;  %1370 = vadd.xlane.f32.xlu1 %v1369_v61  ;;  %v1372_v19 = vsel %vm1272_vm6, %v4882_v27, 0.0 }
 0x46d   :  { %4107 = vpow2.f32 %v1359_v54  ;;  %v1334_v49 = vsub.f32 %v4837_v34, %v1314_v26 }
 0x46e   :  { %v4888_v9 = vpop.eup %4099  ;;  %v1357_v21 = vmul.f32 1.442695, %v1331_v55 }
 0x46f   :  { %v1363_v47 = vmul.f32 1.442695, %v1334_v49  ;;  %v1387_v42 = vsel %vm1272_vm6, %v4888_v9, 0.0 }
 0x470   :  { %4109 = vpow2.f32 %v1357_v21  ;;  %1388 = vadd.xlane.f32.xlu0 %v1387_v42  ;;  %1373 = vadd.xlane.f32.xlu1 %v1372_v19 }
 0x471   :  { %v4898_v34 = vpop.eup %4101  ;;  %4111 = vpow2.f32 %v1363_v47 }
 0x472   :  { %v4900_v12 = vpop.eup %4103  ;;  %v1393_v22 = vsel %vm1272_vm6, %v4898_v34, 0.0 }
 0x473   :  { %v1390_v15 = vsel %vm1272_vm6, %v4900_v12, 0.0 }
 0x474   :  { %1391 = vadd.xlane.f32.xlu0 %v1390_v15  ;;  %1394 = vadd.xlane.f32.xlu1 %v1393_v22 }
 0x476   :  { %v4906_v40 = vpop.eup %4105 }
 0x477   :  { %v1311_v59 = vpop.xlane.xlu1 %1310  ;;  %v1396_v62 = vsel %vm1272_vm6, %v4906_v40, 0.0 }
 0x478   :  { %v1333_v63 = vsub.f32 %v4845_v10, %v1311_v59  ;;  %1397 = vadd.xlane.f32.xlu0 %v1396_v62 }
 0x47a   :  { %v4911_v36 = vpop.eup %4107  ;;  %v1361_v13 = vmul.f32 1.442695, %v1333_v63 }
 0x47b   :  { %v1402_v56 = vsel %vm1272_vm6, %v4911_v36, 0.0 }
 0x47c   :  { %4113 = vpow2.f32 %v1361_v13  ;;  %1403 = vadd.xlane.f32.xlu0 %v1402_v56 }
 0x47d   :  { %v4919_v14 = vpop.eup %4109 }
 0x47e   :  { %v4921_v24 = vpop.eup %4111  ;;  %v1399_v10 = vsel %vm1272_vm6, %v4919_v14, 0.0 }
 0x47f   :  { %1400 = vadd.xlane.f32.xlu1 %v1399_v10  ;;  %v1408_v51 = vsel %vm1272_vm6, %v4921_v24, 0.0 }
 0x480   :  { %1409 = vadd.xlane.f32.xlu0 %v1408_v51 }
 0x483   :  { %v1317_v35 = vpop.xlane.xlu1 %1316 }
 0x484   :  { %v1335_v32 = vsub.f32 %v4849_v16, %v1317_v35 }
 0x486   :  { %v1365_v43 = vmul.f32 1.442695, %v1335_v32 }
 0x487   :  { %v1320_v29 = vpop.xlane.xlu0 %1319 }
 0x488   :  { %4115 = vpow2.f32 %v1365_v43  ;;  %v1336_v3 = vsub.f32 %v4853_v11, %v1320_v29 }
 0x489   :  { %v4929_v30 = vpop.eup %4113 }
 0x48a   :  { %v1367_v18 = vmul.f32 1.442695, %v1336_v3  ;;  %v1405_v53 = vsel %vm1272_vm6, %v4929_v30, 0.0 }
 0x48b   :  { %1406 = vadd.xlane.f32.xlu1 %v1405_v53 }
 0x48c   :  { %4117 = vpow2.f32 %v1367_v18 }
 0x495   :  { %v4933_v20 = vpop.eup %4115 }
 0x496   :  { %v1411_v60 = vsel %vm1272_vm6, %v4933_v20, 0.0 }
 0x497   :  { %1412 = vadd.xlane.f32.xlu1 %v1411_v60 }
 0x499   :  { %v4937_v16 = vpop.eup %4117 }
 0x49a   :  { %v1414_v28 = vsel %vm1272_vm6, %v4937_v16, 0.0 }
 0x49b   :  { %1415 = vadd.xlane.f32.xlu0 %v1414_v28 }
 0x4e5   :  { %v1380_v11 = vpop.xlane.xlu0 %1379 }
 0x4e6   :  { %4119 = vrcp.f32 %v1380_v11 }
 0x4ea   :  { %v1377_v7 = vpop.xlane.xlu1 %1376 }
 0x4eb   :  { %4121 = vrcp.f32 %v1377_v7 }
 0x4f1   :  { %v1383_v54 = vpop.xlane.xlu1 %1382 }
 0x4f2   :  { %4123 = vrcp.f32 %v1383_v54 }
 0x4f3   :  { %v4120_v0 = vpop.eup %4119 }
 0x4f4   :  { %v1436_v8 = vmul.f32 %v4120_v0, %v4858_v52 }
 0x4f5   :  { %v1386_v61 = vpop.xlane.xlu0 %1385  ;;  %v1371_v55 = vpop.xlane.xlu1 %1370 }
 0x4f6   :  { %4125 = vrcp.f32 %v1386_v61  ;;  %1452 = vst.msk [vmem:[%s5601_s7 + $0xc] sm:$0xf] %vm1272_vm6, %v1436_v8 }
 0x4f7   :  { %4127 = vrcp.f32 %v1371_v55 }
 0x4f8   :  { %v4122_v26 = vpop.eup %4121 }
 0x4f9   :  { %v1389_v49 = vpop.xlane.xlu0 %1388  ;;  %v1374_v21 = vpop.xlane.xlu1 %1373  ;;  %v1435_v47 = vmul.f32 %v4122_v26, %v4862_v48 }
 0x4fa   :  { %4129 = vrcp.f32 %v1389_v49 }
 0x4fb   :  { %4131 = vrcp.f32 %v1374_v21  ;;  %1451 = vst.msk [vmem:[%s5601_s7 + $0x8] sm:$0xf] %vm1272_vm6, %v1435_v47  ;;  %3961 = vmatmul.mubr.msk.f32.vlgmr.msra.gmra.mxu1 %vm1465_vm8, %v1435_v47 }
 0x4fc   :  { %3964 = vmatpush3.msra.mxu1 %v4356_v23  ;;  %3965 = vmatprep.mubr.msk.f32.mxu1 %vm4244_vm7, %v4243_v1 }
 0x4fd   :  { %v1392_v52 = vpop.xlane.xlu0 %1391  ;;  %v1395_v42 = vpop.xlane.xlu1 %1394  ;;  %3968 = vmatprep.subr.mxu1 %v4243_v1 }
 0x4fe   :  { %4133 = vrcp.f32 %v1392_v52 }
 0x4ff   :  { %v4124_v48 = vpop.eup %4123  ;;  %4135 = vrcp.f32 %v1395_v42  ;;  %3966 = vmatmul.mubr.msk.f32.vlgmr.msra.gmra.mxu1 %vm1465_vm8, %v1436_v8 }
 0x500   :  { %3969 = vmatpush3.msra.mxu1 %v4361_v25  ;;  %3970 = vmatprep.mubr.msk.f32.mxu1 %vm4244_vm7, %v4243_v1  ;;  %v1437_v19 = vmul.f32 %v4124_v48, %v4869_v37 }
 0x501   :  { %v1398_v23 = vpop.xlane.xlu0 %1397  ;;  %3973 = vmatprep.subr.mxu1 %v4243_v1 }
 0x502   :  { %4137 = vrcp.f32 %v1398_v23  ;;  %1453 = vst.msk [vmem:[%s5601_s7 + $0x10] sm:$0xf] %vm1272_vm6, %v1437_v19 }
 0x503   :  { %v4126_v22 = vpop.eup %4125  ;;  %3971 = vmatmul.mubr.msk.f32.vlgmr.msra.gmra.mxu1 %vm1465_vm8, %v1437_v19 }
 0x504   :  { %v4128_v15 = vpop.eup %4127  ;;  %3974 = vmatpush3.msra.mxu1 %v4378_v31  ;;  %3975 = vmatprep.mubr.msk.f32.mxu1 %vm4244_vm7, %v4243_v1  ;;  %v1438_v25 = vmul.f32 %v4126_v22, %v4876_v44 }
 0x505   :  { %v1433_v37 = vmul.f32 %v4128_v15, %v4873_v38  ;;  %v1404_v59 = vpop.xlane.xlu0 %1403  ;;  %3978 = vmatprep.subr.mxu1 %v4243_v1 }
 0x506   :  { %4139 = vrcp.f32 %v1404_v59  ;;  %1454 = vst.msk [vmem:[%s5601_s7 + $0x14] sm:$0xf] %vm1272_vm6, %v1438_v25 }
 0x507   :  { %v4130_v62 = vpop.eup %4129  ;;  %1449 = vst.msk [vmem:[%s5601_s7] sm:$0xf] %vm1272_vm6, %v1433_v37  ;;  %3951 = vmatmul.mubr.msk.f32.vlgmr.msra.gmra.mxu0 %vm1465_vm8, %v1433_v37  ;;  %3976 = vmatmul.mubr.msk.f32.vlgmr.msra.gmra.mxu1 %vm1465_vm8, %v1438_v25 }
 0x508   :  { %v4132_v31 = vpop.eup %4131  ;;  %v1401_v38 = vpop.xlane.xlu1 %1400  ;;  %3954 = vmatpush3.msra.mxu0 %v4338_v17  ;;  %3955 = vmatprep.mubr.msk.f32.mxu0 %vm4244_vm7, %v4243_v1  ;;  %v1439_v44 = vmul.f32 %v4130_v62, %v4888_v9 }
 0x509   :  { %4141 = vrcp.f32 %v1401_v38  ;;  %v1410_v63 = vpop.xlane.xlu0 %1409  ;;  %v1434_v13 = vmul.f32 %v4132_v31, %v4882_v27  ;;  %3979 = vmatpush3.msra.mxu1 %v4383_v33  ;;  %3980 = vmatprep.mubr.msk.f32.mxu1 %vm4244_vm7, %v4243_v1 }
 0x50a   :  { %4143 = vrcp.f32 %v1410_v63  ;;  %1455 = vst.msk [vmem:[%s5601_s7 + $0x18] sm:$0xf] %vm1272_vm6, %v1439_v44  ;;  %3983 = vmatprep.subr.mxu1 %v4243_v1  ;;  %3993 = vmatprep.subr.mxu0 %v4243_v1 }
 0x50b   :  { %v4134_v17 = vpop.eup %4133  ;;  %1450 = vst.msk [vmem:[%s5601_s7 + $0x4] sm:$0xf] %vm1272_vm6, %v1434_v13  ;;  %3956 = vmatmul.mubr.msk.f32.vlgmr.msra.gmra.mxu0 %vm1465_vm8, %v1434_v13  ;;  %3981 = vmatmul.mubr.msk.f32.vlgmr.msra.gmra.mxu1 %vm1465_vm8, %v1439_v44 }
 0x50c   :  { %v4136_v33 = vpop.eup %4135  ;;  %3984 = vmatpush3.msra.mxu1 %v4400_v39  ;;  %3985 = vmatprep.mubr.msk.f32.mxu1 %vm4244_vm7, %v4243_v1  ;;  %v1440_v27 = vmul.f32 %v4134_v17, %v4900_v12 }
 0x50d   :  { %3988 = vmatprep.subr.mxu1 %v4243_v1  ;;  %3994 = vmatpush3.msra.mxu0 %v4416_v45  ;;  %v1441_v9 = vmul.f32 %v4136_v33, %v4898_v34  ;;  %v5158_v33 = vld [vmem:[%s5600_s5] sm:$0x7f] }
 0x50e   :  { %1456 = vst.msk [vmem:[%s5601_s7 + $0x1c] sm:$0xf] %vm1272_vm6, %v1440_v27  ;;  %3995 = vmatprep.mubr.msk.f32.mxu0 %vm4244_vm7, %v4243_v1  ;;  %4003 = vmatprep.subr.mxu0 %v4243_v1 }
 0x50f   :  { %v4138_v39 = vpop.eup %4137  ;;  %3986 = vmatmul.mubr.msk.f32.vlgmr.msra.gmra.mxu1 %vm1465_vm8, %v1440_v27  ;;  %1457 = vst.msk [vmem:[%s5601_s7 + $0x20] sm:$0xf] %vm1272_vm6, %v1441_v9  ;;  %v2890_v27 = vrot.slane %v5158_v33, 5 }
 0x510   :  { %3989 = vmatpush3.msra.mxu1 %v4405_v41  ;;  %3990 = vmatprep.mubr.msk.f32.mxu1 %vm4244_vm7, %v4243_v1  ;;  %v1442_v45 = vmul.f32 %v4138_v39, %v4906_v40 }
 0x511   :  { %3998 = vmatprep.subr.mxu1 %v4243_v1  ;;  %4044 = vpush %v2890_v27 }
 0x512   :  { %1458 = vst.msk [vmem:[%s5601_s7 + $0x24] sm:$0xf] %vm1272_vm6, %v1442_v45  ;;  %3996 = vmatmul.mubr.msk.f32.vlgmr.msra.gmra.mxu0 %vm1465_vm8, %v1442_v45 }
 0x513   :  { %v4140_v34 = vpop.eup %4139  ;;  %3991 = vmatmul.mubr.msk.f32.vlgmr.msra.gmra.mxu1 %vm1465_vm8, %v1441_v9  ;;  %4004 = vmatpush3.msra.mxu0 %v4433_v50  ;;  %v5162_v9 = vsub.s32 3, %v4478_v5 }
 0x514   :  { %v1407_v41 = vpop.xlane.xlu1 %1406  ;;  %4005 = vmatprep.mubr.msk.f32.mxu0 %vm4244_vm7, %v4243_v1  ;;  %v1444_v12 = vmul.f32 %v4140_v34, %v4911_v36  ;;  %3999 = vmatpush3.msra.mxu1 %v4420_v46 }
 0x515   :  { %4145 = vrcp.f32 %v1407_v41  ;;  %4000 = vmatprep.mubr.msk.f32.mxu1 %vm4244_vm7, %v4243_v1  ;;  %4013 = vmatprep.subr.mxu0 %v4243_v1  ;;  %v5166_v39 = vrot.slane %v5158_v33, %v5162_v9 }
 0x516   :  { %v4142_v40 = vpop.eup %4141  ;;  %1460 = vst.msk [vmem:[%s5601_s7 + $0x2c] sm:$0xf] %vm1272_vm6, %v1444_v12  ;;  %4006 = vmatmul.mubr.msk.f32.vlgmr.msra.gmra.mxu0 %vm1465_vm8, %v1444_v12  ;;  %4008 = vmatprep.subr.mxu1 %v4243_v1 }
 0x517   :  { %v4144_v50 = vpop.eup %4143  ;;  %v1443_v36 = vmul.f32 %v4142_v40, %v4919_v14  ;;  %4014 = vmatpush3.msra.mxu0 %v4453_v58  ;;  %4015 = vmatprep.mubr.msk.f32.mxu0 %vm4244_vm7, %v4243_v1 }
 0x518   :  { %v1446_v46 = vmul.f32 %v4144_v50, %v4921_v24  ;;  %4023 = vmatprep.subr.mxu0 %v4243_v1 }
 0x519   :  { %1459 = vst.msk [vmem:[%s5601_s7 + $0x28] sm:$0xf] %vm1272_vm6, %v1443_v36  ;;  %4001 = vmatmul.mubr.msk.f32.vlgmr.msra.gmra.mxu1 %vm1465_vm8, %v1443_v36 }
 0x51a   :  { %1462 = vst.msk [vmem:[%s5601_s7 + $0x34] sm:$0xf] %vm1272_vm6, %v1446_v46  ;;  %4016 = vmatmul.mubr.msk.f32.vlgmr.msra.gmra.mxu0 %vm1465_vm8, %v1446_v46  ;;  %4009 = vmatpush3.msra.mxu1 %v4451_v57  ;;  %v5172_v46 = vsub.s32 4, %v4478_v5 }
 0x51b   :  { %4010 = vmatprep.mubr.msk.f32.mxu1 %vm4244_vm7, %v4243_v1  ;;  %4018 = vmatprep.subr.mxu1 %v4243_v1 }
 0x51c   :  { %4024 = vmatpush3.msra.mxu0 %v4475_v4  ;;  %4025 = vmatprep.mubr.msk.f32.mxu0 %vm4244_vm7, %v4243_v1 }
 0x520   :  { %v1413_v58 = vpop.xlane.xlu1 %1412 }
 0x521   :  { %4147 = vrcp.f32 %v1413_v58 }
 0x522   :  { %v4146_v56 = vpop.eup %4145 }
 0x523   :  { %v1445_v14 = vmul.f32 %v4146_v56, %v4929_v30  ;;  %v5176_v56 = vrot.slane %v5158_v33, %v5172_v46 }
 0x524   :  { %v1416_v24 = vpop.xlane.xlu0 %1415 }
 0x525   :  { %4149 = vrcp.f32 %v1416_v24  ;;  %1461 = vst.msk [vmem:[%s5601_s7 + $0x30] sm:$0xf] %vm1272_vm6, %v1445_v14  ;;  %4011 = vmatmul.mubr.msk.f32.vlgmr.msra.gmra.mxu1 %vm1465_vm8, %v1445_v14 }
 0x526   :  { %4019 = vmatpush3.msra.mxu1 %v4473_v2  ;;  %4020 = vmatprep.mubr.msk.f32.mxu1 %vm4244_vm7, %v4243_v1  ;;  %v2635_v2 = vld [vmem:[%s5602_s4 + $0x8] sm:$0xf]  ;;  %v2634_v1 = vld [vmem:[%s5602_s4] sm:$0xff] }
 0x527   :  { %4028 = vmatprep.subr.msk.mxu1 %vm151_vm0, %v2635_v2 }
 0x52e   :  { %v4148_v57 = vpop.eup %4147 }
 0x52f   :  { %v1447_v4 = vmul.f32 %v4148_v57, %v4933_v20 }
 0x531   :  { %1463 = vst.msk [vmem:[%s5601_s7 + $0x38] sm:$0xf] %vm1272_vm6, %v1447_v4  ;;  %4021 = vmatmul.mubr.msk.f32.vlgmr.msra.gmra.mxu1 %vm1465_vm8, %v1447_v4 }
 0x532   :  { %v4150_v10 = vpop.eup %4149  ;;  %4029 = vmatpush3.msk.msra.mxu1 %vm151_vm0, %v2635_v2  ;;  %vm3004_vm0 = vcmask 1047559  }
 0x533   :  { %v1448_v51 = vmul.f32 %v4150_v10, %v4937_v16  ;;  %4030 = vmatprep.subr.mxu1 %v2634_v1 }
 0x534   :  { %4031 = vmatpush3.msra.mxu1 %v2634_v1 }
 0x535   :  { %1464 = vst.msk [vmem:[%s5601_s7 + $0x3c] sm:$0xf] %vm1272_vm6, %v1448_v51  ;;  %4026 = vmatmul.mubr.msk.f32.vlgmr.msra.gmra.mxu0 %vm1465_vm8, %v1448_v51 }
 0x542   :  { %s4045_s5 = spop %4044 }
 0x5bb   :  { %v5099_v35 = vpop.f32.mrf.mxu1 }
 0x5bd   :  { %v3962_v32 = vpop.f32.mrf.mxu1 }
 0x5bf   :  { %v5101_v43 = vpop.f32.mrf.mxu1 }
 0x5c0   :  { %v2657_v7 = vcombine.low %v5099_v35, %v5101_v43 }
 0x5c1   :  { %v3967_v29 = vpop.f32.mrf.mxu1 }
 0x5c3   :  { %v5103_v3 = vpop.f32.mrf.mxu1 }
 0x5c5   :  { %v3972_v30 = vpop.f32.mrf.mxu1 }
 0x5c7   :  { %v5105_v18 = vpop.f32.mrf.mxu0  ;;  %v5107_v53 = vpop.f32.mrf.mxu1 }
 0x5c8   :  { %v2658_v8 = vcombine.low %v5103_v3, %v5107_v53 }
 0x5c9   :  { %v3952_v20 = vpop.f32.mrf.mxu0  ;;  %v3977_v60 = vpop.f32.mrf.mxu1 }
 0x5cb   :  { %v5109_v16 = vpop.f32.mrf.mxu0  ;;  %v5111_v28 = vpop.f32.mrf.mxu1 }
 0x5cc   :  { %v2656_v11 = vcombine.low %v5105_v18, %v5109_v16 }
 0x5cd   :  { %v3957_v54 = vpop.f32.mrf.mxu0  ;;  %v3982_v0 = vpop.f32.mrf.mxu1 }
 0x5ce   :  { %4032 = vmatprep.mubr.msk.f32.mxu1 %vm102_vm1, %v2656_v11 }
 0x5cf   :  { %4033 = vmatmul.mubr.msk.f32.vlgmr.msra.gmra.mxu1 %vm102_vm1, %v2657_v7  ;;  %v5121_v61 = vpop.f32.mrf.mxu1 }
 0x5d0   :  { %v2659_v55 = vcombine.low %v5111_v28, %v5121_v61  ;;  %4035 = vmatprep.mubr.msk.f32.mxu1 %vm102_vm1, %v2658_v8 }
 0x5d1   :  { %v3987_v26 = vpop.f32.mrf.mxu1 }
 0x5d2   :  { %v5126_v49 = vpop.f32.mrf.mxu0 }
 0x5d3   :  { %4036 = vmatmul.mubr.msk.f32.gmra.mxu1 %vm102_vm1, %v2659_v55  ;;  %v5129_v21 = vpop.f32.mrf.mxu1 }
 0x5d4   :  { %v2660_v47 = vcombine.low %v5129_v21, %v5126_v49  ;;  %v3997_v52 = vpop.f32.mrf.mxu0 }
 0x5d5   :  { %v3992_v42 = vpop.f32.mrf.mxu1 }
 0x5d6   :  { %v5133_v48 = vpop.f32.mrf.mxu0  ;;  %4038 = vmatprep.mubr.msk.f32.mxu1 %vm102_vm1, %v2660_v47 }
 0x5d8   :  { %v4007_v19 = vpop.f32.mrf.mxu0 }
 0x5d9   :  { %v5136_v23 = vpop.f32.mrf.mxu1 }
 0x5da   :  { %v2661_v22 = vcombine.low %v5136_v23, %v5133_v48  ;;  %v5140_v15 = vpop.f32.mrf.mxu0 }
 0x5db   :  { %v4002_v25 = vpop.f32.mrf.mxu1 }
 0x5dc   :  { %v4017_v37 = vpop.f32.mrf.mxu0  ;;  %4039 = vmatmul.mubr.msk.f32.gmra.mxu1 %vm102_vm1, %v2661_v22 }
 0x5e5   :  { %v5143_v59 = vpop.f32.mrf.mxu1 }
 0x5e6   :  { %v2662_v62 = vcombine.low %v5143_v59, %v5140_v15 }
 0x5e7   :  { %v4012_v31 = vpop.f32.mrf.mxu1 }
 0x5e8   :  { %4041 = vmatprep.mubr.msk.f32.mxu1 %vm102_vm1, %v2662_v62 }
 0x5f1   :  { %v5148_v38 = vpop.f32.mrf.mxu1 }
 0x5f3   :  { %v4022_v44 = vpop.f32.mrf.mxu1 }
 0x5f5   :  { %v5150_v63 = vpop.f32.mrf.mxu0 }
 0x5f6   :  { %v2663_v13 = vcombine.low %v5148_v38, %v5150_v63 }
 0x5f7   :  { %v4027_v17 = vpop.f32.mrf.mxu0 }
 0x5f8   :  { %4042 = vmatmul.mubr.msk.f32.gmra.mxu1 %vm102_vm1, %v2663_v13 }
 0x68f   :  { %v4034_v45 = vpop.f32.mrf.mxu1 }
 0x690   :  { %v2755_v34 = vadd.f32 %v4034_v45, %v5166_v39 }
 0x691   :  { %v2749_v41 = vpop.f32.mrf.mxu1 }
 0x692   :  { %4151 = vtanh.f32 %v2755_v34  ;;  %v2750_v12 = vadd.f32 %v2749_v41, %v5166_v39 }
 0x693   :  { %v4037_v40 = vpop.f32.mrf.mxu1 }
 0x694   :  { %4153 = vtanh.f32 %v2750_v12  ;;  %v2765_v2 = vadd.f32 %v4037_v40, %v5166_v39 }
 0x695   :  { %v2759_v50 = vpop.f32.mrf.mxu1 }
 0x696   :  { %v2760_v36 = vadd.f32 %v2759_v50, %v5166_v39 }
 0x698   :  { %4155 = vtanh.f32 %v2760_v36 }
 0x69c   :  { %v4040_v58 = vpop.f32.mrf.mxu1 }
 0x69d   :  { %v2775_v14 = vadd.f32 %v4040_v58, %v5166_v39 }
 0x69e   :  { %v2769_v24 = vpop.f32.mrf.mxu1 }
 0x69f   :  { %v4152_v57 = vpop.eup %4151  ;;  %4157 = vtanh.f32 %v2775_v14  ;;  %v2770_v4 = vadd.f32 %v2769_v24, %v5166_v39 }
 0x6a0   :  { %v2826_v10 = vmul.f32 %v4152_v57, %v5176_v56  ;;  %v2805_v30 = vcombine.high %v4152_v57, %v4152_v57 }
 0x6a1   :  { %v4154_v51 = vpop.eup %4153  ;;  %4159 = vtanh.f32 %v2770_v4 }
 0x6a2   :  { %v2847_v1 = vsel %vm2840_vm9, %v2826_v10, 0.0  ;;  %v2824_v32 = vmul.f32 %v4154_v51, %v5176_v56  ;;  %v2804_v29 = vcombine.high %v4154_v51, %v4154_v51  ;;  %4161 = vtanh.f32 %v2765_v2 }
 0x6a3   :  { %2848 = vadd.xlane.f32.xlu1 %v2847_v1  ;;  %v2827_v7 = vmul.f32 %v5176_v56, %v2805_v30 }
 0x6a4   :  { %v2825_v20 = vmul.f32 %v5176_v56, %v2804_v29  ;;  %v2841_v60 = vsel %vm2840_vm9, %v2824_v32, 0.0 }
 0x6a5   :  { %v4156_v54 = vpop.eup %4155  ;;  %v2850_v0 = vsel %vm2840_vm9, %v2827_v7, 0.0 }
 0x6a6   :  { %v2844_v11 = vsel %vm2840_vm9, %v2825_v20, 0.0  ;;  %v2828_v8 = vmul.f32 %v4156_v54, %v5176_v56  ;;  %v2806_v55 = vcombine.high %v4156_v54, %v4156_v54 }
 0x6a7   :  { %2842 = vadd.xlane.f32.xlu1 %v2841_v60  ;;  %2845 = vadd.xlane.f32.xlu0 %v2844_v11 }
 0x6a8   :  { %v2853_v19 = vsel %vm2840_vm9, %v2828_v8, 0.0  ;;  %v2829_v22 = vmul.f32 %v5176_v56, %v2806_v55 }
 0x6aa   :  { %v2856_v31 = vsel %vm2840_vm9, %v2829_v22, 0.0 }
 0x6ab   :  { %2851 = vadd.xlane.f32.xlu1 %v2850_v0 }
 0x6ac   :  { %v4158_v26 = vpop.eup %4157 }
 0x6ad   :  { %v2834_v47 = vmul.f32 %v4158_v26, %v5176_v56  ;;  %v2809_v52 = vcombine.high %v4158_v26, %v4158_v26  ;;  %v5612_v26 = vlaneseq }
 0x6ae   :  { %v4160_v42 = vpop.eup %4159 }
 0x6af   :  { %2854 = vadd.xlane.f32.xlu1 %v2853_v19  ;;  %v2871_v25 = vsel %vm2840_vm9, %v2834_v47, 0.0  ;;  %v2835_v37 = vmul.f32 %v5176_v56, %v2809_v52  ;;  %v2808_v62 = vcombine.high %v4160_v42, %v4160_v42  ;;  %v2832_v44 = vmul.f32 %v4160_v42, %v5176_v56  ;;  %v4162_v13 = vpop.eup %4161 }
 0x6b0   :  { %2872 = vadd.xlane.f32.xlu0 %v2871_v25  ;;  %v2830_v34 = vmul.f32 %v4162_v13, %v5176_v56  ;;  %v2807_v41 = vcombine.high %v4162_v13, %v4162_v13  ;;  %v2927_v47 = vand.u32 127, %v5612_v26  ;;  %v5216_v52 = vstv %s4045_s5 }
 0x6b1   :  { %v2874_v17 = vsel %vm2840_vm9, %v2835_v37, 0.0  ;;  %v2833_v27 = vmul.f32 %v5176_v56, %v2808_v62  ;;  %v2865_v45 = vsel %vm2840_vm9, %v2832_v44, 0.0 }
 0x6b2   :  { %v2859_v58 = vsel %vm2840_vm9, %v2830_v34, 0.0  ;;  %v2831_v14 = vmul.f32 %v5176_v56, %v2807_v41  ;;  %v5225_v22 = vsub.s32 %v2927_v47, %v4478_v5 }
 0x6b3   :  { %2857 = vadd.xlane.f32.xlu1 %v2856_v31  ;;  %v2868_v12 = vsel %vm2840_vm9, %v2833_v27, 0.0 }
 0x6b4   :  { %2875 = vadd.xlane.f32.xlu0 %v2874_v17  ;;  %v2862_v57 = vsel %vm2840_vm9, %v2831_v14, 0.0 }
 0x6b7   :  { %2866 = vadd.xlane.f32.xlu1 %v2865_v45 }
 0x6b8   :  { %v4043_v40 = vpop.f32.mrf.mxu1  ;;  %2869 = vadd.xlane.f32.xlu0 %v2868_v12 }
 0x6b9   :  { %v2785_v50 = vadd.f32 %v4043_v40, %v5166_v39 }
 0x6ba   :  { %v2779_v36 = vpop.f32.mrf.mxu1 }
 0x6bb   :  { %4163 = vtanh.f32 %v2785_v50  ;;  %v2780_v24 = vadd.f32 %v2779_v36, %v5166_v39  ;;  %2860 = vadd.xlane.f32.xlu1 %v2859_v58 }
 0x6bd   :  { %4165 = vtanh.f32 %v2780_v24 }
 0x6bf   :  { %2863 = vadd.xlane.f32.xlu1 %v2862_v57 }
 0x6c8   :  { %v4164_v4 = vpop.eup %4163 }
 0x6c9   :  { %v2838_v10 = vmul.f32 %v4164_v4, %v5176_v56  ;;  %v2811_v39 = vcombine.high %v4164_v4, %v4164_v4 }
 0x6ca   :  { %v4166_v51 = vpop.eup %4165 }
 0x6cb   :  { %v2883_v2 = vsel %vm2840_vm9, %v2838_v10, 0.0  ;;  %v2836_v1 = vmul.f32 %v4166_v51, %v5176_v56  ;;  %v2810_v32 = vcombine.high %v4166_v51, %v4166_v51  ;;  %v2839_v60 = vmul.f32 %v5176_v56, %v2811_v39 }
 0x6cc   :  { %2884 = vadd.xlane.f32.xlu0 %v2883_v2 }
 0x6cd   :  { %v2877_v29 = vsel %vm2840_vm9, %v2836_v1, 0.0  ;;  %v2837_v30 = vmul.f32 %v5176_v56, %v2810_v32  ;;  %v2886_v11 = vsel %vm2840_vm9, %v2839_v60, 0.0 }
 0x6cf   :  { %v2880_v20 = vsel %vm2840_vm9, %v2837_v30, 0.0 }
 0x6d0   :  { %2878 = vadd.xlane.f32.xlu0 %v2877_v29 }
 0x6d4   :  { %2881 = vadd.xlane.f32.xlu0 %v2880_v20 }
 0x6d8   :  { %2887 = vadd.xlane.f32.xlu0 %v2886_v11 }
 0x72c   :  { %v2849_v7 = vpop.xlane.xlu1 %2848 }
 0x72d   :  { %v5235_v44 = vadd.f32 %v5216_v52, %v2849_v7 }
 0x72f   :  { %v2939_v40 = vrot.slane %v5235_v44, %v5225_v22 }
 0x730   :  { %v2843_v54 = vpop.xlane.xlu1 %2842  ;;  %v2846_v55 = vpop.xlane.xlu0 %2845 }
 0x731   :  { %v5219_v19 = vadd.f32 %v5216_v52, %v2843_v54  ;;  %v5222_v56 = vadd.f32 %v5216_v52, %v2846_v55 }
 0x733   :  { %v2931_v37 = vrot.slane %v5219_v19, %v5225_v22  ;;  %v2935_v62 = vrot.slane %v5222_v56, %v5225_v22 }
 0x734   :  { %v2852_v0 = vpop.xlane.xlu1 %2851 }
 0x735   :  { %v5232_v31 = vadd.f32 %v5216_v52, %v2852_v0  ;;  %v2993_v34 = vsel %vm2992_vm10, %v2935_v62, %v2931_v37 }
 0x736   :  { %v2995_v58 = vsel %vm2994_vm11, %v2939_v40, %v2993_v34 }
 0x737   :  { %v2943_v41 = vrot.slane %v5232_v31, %v5225_v22 }
 0x738   :  { %v2855_v8 = vpop.xlane.xlu1 %2854 }
 0x739   :  { %v5238_v13 = vadd.f32 %v5216_v52, %v2855_v8  ;;  %v2873_v17 = vpop.xlane.xlu0 %2872  ;;  %v2997_v57 = vsel %vm2996_vm12, %v2943_v41, %v2995_v58 }
 0x73a   :  { %v5278_v54 = vadd.f32 %v5216_v52, %v2873_v17 }
 0x73b   :  { %v2947_v50 = vrot.slane %v5238_v13, %v5225_v22 }
 0x73c   :  { %v2858_v42 = vpop.xlane.xlu1 %2857 }
 0x73d   :  { %v5241_v27 = vadd.f32 %v5216_v52, %v2858_v42  ;;  %v2876_v4 = vpop.xlane.xlu0 %2875  ;;  %v2999_v51 = vsel %vm2998_vm13, %v2947_v50, %v2997_v57  ;;  %v2971_v42 = vrot.slane %v5278_v54, %v5225_v22 }
 0x73e   :  { %v5283_v55 = vadd.f32 %v5216_v52, %v2876_v4 }
 0x73f   :  { %v2951_v36 = vrot.slane %v5241_v27, %v5225_v22 }
 0x740   :  { %v2867_v25 = vpop.xlane.xlu1 %2866  ;;  %v2975_v17 = vrot.slane %v5283_v55, %v5225_v22 }
 0x741   :  { %v3001_v2 = vsel %vm3000_vm14, %v2951_v36, %v2999_v51  ;;  %v2870_v39 = vpop.xlane.xlu0 %2869  ;;  %v5273_v60 = vadd.f32 %v5216_v52, %v2867_v25 }
 0x742   :  { %v5270_v20 = vadd.f32 %v5216_v52, %v2870_v39  ;;  %v5613_v39 = vld [vmem:[#allocation4_spill] sm:$0xff] }
 0x743   :  { %v2963_v0 = vrot.slane %v5273_v60, %v5225_v22 }
 0x744   :  { %v2861_v45 = vpop.xlane.xlu1 %2860  ;;  %v2967_v7 = vrot.slane %v5270_v20, %v5225_v22 }
 0x745   :  { %v5247_v12 = vadd.f32 %v5216_v52, %v2861_v45 }
 0x746   :  { %v3006_v26 = vsel %vm2992_vm10, %v2967_v7, %v2963_v0  ;;  %v5614_v7 = vld [vmem:[#allocation3_spill] sm:$0xff] }
 0x747   :  { %v2955_v14 = vrot.slane %v5247_v12, %v5225_v22  ;;  %v3007_v25 = vsel %vm2994_vm11, %v2971_v42, %v3006_v26 }
 0x748   :  { %v2864_v24 = vpop.xlane.xlu1 %2863  ;;  %v3008_v41 = vsel %vm2996_vm12, %v2975_v17, %v3007_v25 }
 0x749   :  { %v5260_v10 = vadd.f32 %v5216_v52, %v2864_v24  ;;  %v3003_v32 = vsel %vm3002_vm15, %v2955_v14, %v3001_v2 }
 0x74b   :  { %v2959_v1 = vrot.slane %v5260_v10, %v5225_v22 }
 0x74d   :  { %v3005_v29 = vsel %vm3004_vm0, %v2959_v1, %v3003_v32  ;;  %v4245_v1 = vmov 0   ;;  %v5318_v32 = vsub.s32 5, %v4478_v5 }
 0x74e   :  { %v3016_v30 = vsel %vm3015_vm2, %v3005_v29, -inf  ;;  %4054 = vset.pattern.permute.xlu0 %v4245_v1  ;;  %4053 = vset.pattern.permute.xlu1 %v4245_v1 }
 0x74f   :  { %3017 = vmax.xlane.f32.xlu1 %v3016_v30 }
 0x755   :  { %v2885_v11 = vpop.xlane.xlu0 %2884 }
 0x756   :  { %v5300_v34 = vadd.f32 %v5216_v52, %v2885_v11 }
 0x758   :  { %v2987_v24 = vrot.slane %v5300_v34, %v5225_v22 }
 0x759   :  { %v2879_v8 = vpop.xlane.xlu0 %2878 }
 0x75a   :  { %v5287_v47 = vadd.f32 %v5216_v52, %v2879_v8 }
 0x75c   :  { %v2979_v37 = vrot.slane %v5287_v47, %v5225_v22 }
 0x75d   :  { %v2882_v62 = vpop.xlane.xlu0 %2881 }
 0x75e   :  { %v5297_v45 = vadd.f32 %v5216_v52, %v2882_v62  ;;  %v3009_v50 = vsel %vm2998_vm13, %v2979_v37, %v3008_v41  ;;  %v5332_v62 = vsub.s32 7, %v4478_v5 }
 0x760   :  { %v2983_v40 = vrot.slane %v5297_v45, %v5225_v22 }
 0x761   :  { %v2888_v36 = vpop.xlane.xlu0 %2887 }
 0x762   :  { %v3010_v58 = vsel %vm3000_vm14, %v2983_v40, %v3009_v50  ;;  %v5308_v14 = vadd.f32 %v5216_v52, %v2888_v36  ;;  %v5321_v52 = vsub.s32 6, %v4478_v5 }
 0x763   :  { %v3011_v4 = vsel %vm3002_vm15, %v2987_v24, %v3010_v58 }
 0x764   :  { %v2991_v57 = vrot.slane %v5308_v14, %v5225_v22 }
 0x766   :  { %v3012_v51 = vsel %vm3004_vm0, %v2991_v57, %v3011_v4 }
 0x767   :  { %v3019_v2 = vsel %vm3015_vm2, %v3012_v51, -inf }
 0x768   :  { %3020 = vmax.xlane.f32.xlu0 %v3019_v2 }
 0x7d8   :  { %v3018_v29 = vpop.xlane.xlu1 %3017 }
 0x7d9   :  { %v3027_v30 = vrot.slane %v3018_v29, %v4485_v6  ;;  %v3031_v11 = vrot.slane %v3018_v29, %v5613_v39  ;;  %v3035_v0 = vrot.slane %v3018_v29, %v5614_v7  ;;  %v3047_v8 = vrot.slane %v3018_v29, %v5318_v32 }
 0x7da   :  { %v3039_v26 = vrot.slane %v3018_v29, %v5162_v9  ;;  %v3051_v17 = vrot.slane %v3018_v29, %v5321_v52  ;;  %v3043_v36 = vrot.slane %v3018_v29, %v5172_v46 }
 0x7db   :  { %v3104_v42 = vsub.f32 %v5219_v19, %v3027_v30  ;;  %v3105_v25 = vsub.f32 %v5222_v56, %v3031_v11  ;;  %v3106_v37 = vsub.f32 %v5235_v44, %v3035_v0  ;;  %v3109_v41 = vsub.f32 %v5241_v27, %v3047_v8 }
 0x7dc   :  { %v3107_v58 = vsub.f32 %v5232_v31, %v3039_v26  ;;  %v3055_v19 = vrot.slane %v3018_v29, %v5332_v62  ;;  %v3110_v56 = vsub.f32 %v5247_v12, %v3051_v17  ;;  %v3108_v5 = vsub.f32 %v5238_v13, %v3043_v36 }
 0x7dd   :  { %v3120_v40 = vmul.f32 1.442695, %v3104_v42  ;;  %v3122_v50 = vmul.f32 1.442695, %v3105_v25  ;;  %v3124_v24 = vmul.f32 1.442695, %v3106_v37 }
 0x7de   :  { %v3130_v44 = vmul.f32 1.442695, %v3109_v41  ;;  %v3126_v57 = vmul.f32 1.442695, %v3107_v58  ;;  %v3111_v27 = vsub.f32 %v5260_v10, %v3055_v19  ;;  %v3132_v4 = vmul.f32 1.442695, %v3110_v56 }
 0x7df   :  { %4167 = vpow2.f32 %v3120_v40  ;;  %v3128_v51 = vmul.f32 1.442695, %v3108_v5 }
 0x7e0   :  { %4169 = vpow2.f32 %v3122_v50  ;;  %v3134_v31 = vmul.f32 1.442695, %v3111_v27 }
 0x7e1   :  { %4171 = vpow2.f32 %v3124_v24 }
 0x7e2   :  { %4173 = vpow2.f32 %v3130_v44 }
 0x7e3   :  { %4175 = vpow2.f32 %v3126_v57 }
 0x7e4   :  { %4177 = vpow2.f32 %v3132_v4 }
 0x7e5   :  { %4179 = vpow2.f32 %v3128_v51 }
 0x7e6   :  { %4181 = vpow2.f32 %v3134_v31 }
 0x7ec   :  { %v5342_v2 = vpop.eup %4167 }
 0x7ed   :  { %v5344_v1 = vpop.eup %4169  ;;  %3169 = vperm.xlu1 %4053, %v5342_v2  }
 0x7ee   :  { %3172 = vperm.xlu0 %4054, %v5344_v1   ;;  %v5348_v13 = vpop.eup %4171 }
 0x7ef   :  { %v5350_v12 = vpop.eup %4173 }
 0x7f0   :  { %v5356_v11 = vpop.eup %4175 }
 0x7f1   :  { %3175 = vperm.xlu1 %4053, %v5348_v13   ;;  %v3021_v10 = vpop.xlane.xlu0 %3020  ;;  %v5361_v42 = vpop.eup %4177 }
 0x7f2   :  { %3184 = vperm.xlu0 %4054, %v5350_v12   ;;  %v3059_v29 = vrot.slane %v3021_v10, %v4485_v6  ;;  %v3063_v30 = vrot.slane %v3021_v10, %v5613_v39  ;;  %v3067_v0 = vrot.slane %v3021_v10, %v5614_v7  ;;  %v5365_v37 = vpop.eup %4179  ;;  %v3071_v17 = vrot.slane %v3021_v10, %v5162_v9 }
 0x7f3   :  { %v5369_v50 = vpop.eup %4181  ;;  %v3079_v58 = vrot.slane %v3021_v10, %v5318_v32  ;;  %v3083_v19 = vrot.slane %v3021_v10, %v5321_v52 }
 0x7f4   :  { %v3112_v8 = vsub.f32 %v5273_v60, %v3059_v29  ;;  %v3113_v26 = vsub.f32 %v5270_v20, %v3063_v30  ;;  %v3114_v41 = vsub.f32 %v5278_v54, %v3067_v0  ;;  %v3075_v20 = vrot.slane %v3021_v10, %v5172_v46 }
 0x7f5   :  { %3178 = vperm.xlu1 %4053, %v5356_v11   ;;  %v3115_v60 = vsub.f32 %v5283_v55, %v3071_v17  ;;  %v3117_v56 = vsub.f32 %v5297_v45, %v3079_v58  ;;  %v3087_v55 = vrot.slane %v3021_v10, %v5332_v62  ;;  %v3118_v57 = vsub.f32 %v5300_v34, %v3083_v19 }
 0x7f6   :  { %v3136_v25 = vmul.f32 1.442695, %v3112_v8  ;;  %3187 = vperm.xlu0 %4054, %v5361_v42   ;;  %v3138_v40 = vmul.f32 1.442695, %v3113_v26  ;;  %v3140_v36 = vmul.f32 1.442695, %v3114_v41  ;;  %v3116_v24 = vsub.f32 %v5287_v47, %v3075_v20 }
 0x7f7   :  { %v3142_v54 = vmul.f32 1.442695, %v3115_v60  ;;  %v3146_v27 = vmul.f32 1.442695, %v3117_v56  ;;  %v3119_v47 = vsub.f32 %v5308_v14, %v3087_v55  ;;  %v3148_v45 = vmul.f32 1.442695, %v3118_v57 }
 0x7f8   :  { %4183 = vpow2.f32 %v3136_v25  ;;  %v3144_v44 = vmul.f32 1.442695, %v3116_v24 }
 0x7f9   :  { %3181 = vperm.xlu1 %4053, %v5365_v37   ;;  %4185 = vpow2.f32 %v3138_v40  ;;  %v3150_v31 = vmul.f32 1.442695, %v3119_v47 }
 0x7fa   :  { %3190 = vperm.xlu0 %4054, %v5369_v50   ;;  %4187 = vpow2.f32 %v3140_v36 }
 0x7fb   :  { %4189 = vpow2.f32 %v3142_v54 }
 0x7fc   :  { %4191 = vpow2.f32 %v3144_v44 }
 0x7fd   :  { %4193 = vpow2.f32 %v3146_v27 }
 0x7fe   :  { %4195 = vpow2.f32 %v3148_v45 }
 0x7ff   :  { %4197 = vpow2.f32 %v3150_v31 }
 0x805   :  { %v5379_v5 = vpop.eup %4183 }
 0x806   :  { %3193 = vperm.xlu1 %4053, %v5379_v5   ;;  %v5384_v4 = vpop.eup %4185 }
 0x807   :  { %v5388_v51 = vpop.eup %4187 }
 0x808   :  { %v5391_v29 = vpop.eup %4189 }
 0x809   :  { %v5394_v34 = vpop.eup %4191 }
 0x80a   :  { %3196 = vperm.xlu1 %4053, %v5384_v4   ;;  %v5397_v10 = vpop.eup %4193 }
 0x80b   :  { %v5400_v14 = vpop.eup %4195 }
 0x80c   :  { %v5403_v30 = vpop.eup %4197 }
 0x80e   :  { %3199 = vperm.xlu1 %4053, %v5388_v51  }
 0x812   :  { %3202 = vperm.xlu1 %4053, %v5391_v29  }
 0x816   :  { %3205 = vperm.xlu1 %4053, %v5394_v34  }
 0x81a   :  { %3208 = vperm.xlu1 %4053, %v5397_v10  }
 0x81e   :  { %3211 = vperm.xlu1 %4053, %v5400_v14  }
 0x822   :  { %3214 = vperm.xlu1 %4053, %v5403_v30  }
 0x868   :  { %v3170_v0 = vpop.permute.xlu1 %3169 }
 0x869   :  { %v3173_v8 = vpop.permute.xlu0 %3172  ;;  %v3219_v17 = vrot.slane %v3170_v0, %v5225_v22 }
 0x86a   :  { %v3223_v41 = vrot.slane %v3173_v8, %v5225_v22 }
 0x86c   :  { %v3176_v26 = vpop.permute.xlu1 %3175  ;;  %v3280_v58 = vsel %vm2992_vm10, %v3223_v41, %v3219_v17 }
 0x86d   :  { %v3185_v25 = vpop.permute.xlu0 %3184  ;;  %v3227_v20 = vrot.slane %v3176_v26, %v5225_v22 }
 0x86e   :  { %v3239_v44 = vrot.slane %v3185_v25, %v5225_v22 }
 0x86f   :  { %v3281_v54 = vsel %vm2994_vm11, %v3227_v20, %v3280_v58 }
 0x870   :  { %v3179_v40 = vpop.permute.xlu1 %3178 }
 0x871   :  { %v3188_v60 = vpop.permute.xlu0 %3187  ;;  %v3231_v36 = vrot.slane %v3179_v40, %v5225_v22 }
 0x872   :  { %v3243_v57 = vrot.slane %v3188_v60, %v5225_v22 }
 0x873   :  { %v3282_v55 = vsel %vm2996_vm12, %v3231_v36, %v3281_v54 }
 0x874   :  { %v3182_v24 = vpop.permute.xlu1 %3181 }
 0x875   :  { %v3235_v19 = vrot.slane %v3182_v24, %v5225_v22  ;;  %v3191_v56 = vpop.permute.xlu0 %3190 }
 0x876   :  { %v3247_v47 = vrot.slane %v3191_v56, %v5225_v22 }
 0x877   :  { %v3283_v27 = vsel %vm2998_vm13, %v3235_v19, %v3282_v55 }
 0x878   :  { %v3284_v45 = vsel %vm3000_vm14, %v3239_v44, %v3283_v27 }
 0x879   :  { %v3285_v31 = vsel %vm3002_vm15, %v3243_v57, %v3284_v45 }
 0x87a   :  { %v3286_v0 = vsel %vm3004_vm0, %v3247_v47, %v3285_v31 }
 0x87b   :  { %v3296_v8 = vsel %vm3015_vm2, %v3286_v0, 0.0 }
 0x87c   :  { %3297 = vadd.xlane.f32.xlu0 %v3296_v8 }
 0x881   :  { %v3194_v26 = vpop.permute.xlu1 %3193 }
 0x882   :  { %v3251_v58 = vrot.slane %v3194_v26, %v5225_v22 }
 0x885   :  { %v3197_v17 = vpop.permute.xlu1 %3196 }
 0x886   :  { %v3255_v60 = vrot.slane %v3197_v17, %v5225_v22 }
 0x888   :  { %v3287_v56 = vsel %vm2992_vm10, %v3255_v60, %v3251_v58 }
 0x889   :  { %v3200_v25 = vpop.permute.xlu1 %3199 }
 0x88a   :  { %v3259_v36 = vrot.slane %v3200_v25, %v5225_v22 }
 0x88c   :  { %v3288_v55 = vsel %vm2994_vm11, %v3259_v36, %v3287_v56 }
 0x88d   :  { %v3203_v41 = vpop.permute.xlu1 %3202 }
 0x88e   :  { %v3263_v24 = vrot.slane %v3203_v41, %v5225_v22 }
 0x890   :  { %v3289_v27 = vsel %vm2996_vm12, %v3263_v24, %v3288_v55 }
 0x891   :  { %v3206_v40 = vpop.permute.xlu1 %3205 }
 0x892   :  { %v3267_v54 = vrot.slane %v3206_v40, %v5225_v22 }
 0x894   :  { %v3290_v47 = vsel %vm2998_vm13, %v3267_v54, %v3289_v27 }
 0x895   :  { %v3209_v20 = vpop.permute.xlu1 %3208 }
 0x896   :  { %v3271_v44 = vrot.slane %v3209_v20, %v5225_v22 }
 0x898   :  { %v3291_v31 = vsel %vm3000_vm14, %v3271_v44, %v3290_v47 }
 0x899   :  { %v3212_v19 = vpop.permute.xlu1 %3211 }
 0x89a   :  { %v3275_v57 = vrot.slane %v3212_v19, %v5225_v22 }
 0x89c   :  { %v3292_v8 = vsel %vm3002_vm15, %v3275_v57, %v3291_v31 }
 0x89d   :  { %v3215_v45 = vpop.permute.xlu1 %3214 }
 0x89e   :  { %v3279_v0 = vrot.slane %v3215_v45, %v5225_v22 }
 0x8a0   :  { %v3293_v26 = vsel %vm3004_vm0, %v3279_v0, %v3292_v8 }
 0x8a1   :  { %v3299_v17 = vsel %vm3015_vm2, %v3293_v26, 0.0 }
 0x8a2   :  { %3300 = vadd.xlane.f32.xlu1 %v3299_v17 }
 0x905   :  { %v3298_v25 = vpop.xlane.xlu0 %3297 }
 0x906   :  { %v3311_v41 = vrot.slane %v3298_v25, %v5613_v39  ;;  %v3315_v40 = vrot.slane %v3298_v25, %v5614_v7  ;;  %v3319_v20 = vrot.slane %v3298_v25, %v5162_v9  ;;  %v3307_v60 = vrot.slane %v3298_v25, %v4485_v6 }
 0x907   :  { %v3323_v36 = vrot.slane %v3298_v25, %v5172_v46  ;;  %v3327_v58 = vrot.slane %v3298_v25, %v5318_v32  ;;  %v3331_v19 = vrot.slane %v3298_v25, %v5321_v52  ;;  %v3335_v17 = vrot.slane %v3298_v25, %v5332_v62 }
 0x908   :  { %4199 = vrcp.f32 %v3311_v41 }
 0x909   :  { %4201 = vrcp.f32 %v3315_v40 }
 0x90a   :  { %4203 = vrcp.f32 %v3319_v20 }
 0x90b   :  { %4205 = vrcp.f32 %v3307_v60 }
 0x90c   :  { %4207 = vrcp.f32 %v3323_v36 }
 0x90d   :  { %4209 = vrcp.f32 %v3327_v58 }
 0x90e   :  { %4211 = vrcp.f32 %v3331_v19 }
 0x915   :  { %v4200_v24 = vpop.eup %4199 }
 0x916   :  { %v4202_v54 = vpop.eup %4201  ;;  %v3387_v56 = vmul.f32 %v4200_v24, %v5344_v1 }
 0x917   :  { %v4204_v44 = vpop.eup %4203  ;;  %v3389_v57 = vmul.f32 %v4202_v54, %v5348_v13 }
 0x918   :  { %v3391_v55 = vmul.f32 %v4204_v44, %v5356_v11  ;;  %3423 = vperm.xlu0 %4054, %v3387_v56   ;;  %v4206_v27 = vpop.eup %4205 }
 0x919   :  { %v3385_v47 = vmul.f32 %v4206_v27, %v5342_v2  ;;  %v4208_v45 = vpop.eup %4207 }
 0x91a   :  { %3433 = vperm.xlu1 %4053, %v3391_v55   ;;  %v3393_v31 = vmul.f32 %v4208_v45, %v5365_v37  ;;  %v4210_v0 = vpop.eup %4209 }
 0x91b   :  { %v3395_v1 = vmul.f32 %v4210_v0, %v5350_v12  ;;  %v4212_v8 = vpop.eup %4211 }
 0x91c   :  { %3428 = vperm.xlu0 %4054, %v3389_v57   ;;  %v3397_v26 = vmul.f32 %v4212_v8, %v5361_v42 }
 0x920   :  { %3418 = vperm.xlu0 %4054, %v3385_v47  }
 0x924   :  { %3438 = vperm.xlu0 %4054, %v3393_v31  }
 0x928   :  { %3443 = vperm.xlu0 %4054, %v3395_v1  }
 0x92b   :  { %v3301_v11 = vpop.xlane.xlu1 %3300 }
 0x92c   :  { %v3339_v13 = vrot.slane %v3301_v11, %v4485_v6  ;;  %v3343_v41 = vrot.slane %v3301_v11, %v5613_v39  ;;  %v3347_v2 = vrot.slane %v3301_v11, %v5614_v7  ;;  %3448 = vperm.xlu0 %4054, %v3397_v26   ;;  %v3351_v37 = vrot.slane %v3301_v11, %v5162_v9 }
 0x92d   :  { %v3355_v12 = vrot.slane %v3301_v11, %v5172_v46  ;;  %v3359_v42 = vrot.slane %v3301_v11, %v5318_v32  ;;  %v3363_v7 = vrot.slane %v3301_v11, %v5321_v52  ;;  %v3367_v46 = vrot.slane %v3301_v11, %v5332_v62 }
 0x92e   :  { %4213 = vrcp.f32 %v3339_v13 }
 0x92f   :  { %4215 = vrcp.f32 %v3343_v41 }
 0x930   :  { %4217 = vrcp.f32 %v3335_v17 }
 0x931   :  { %4219 = vrcp.f32 %v3347_v2 }
 0x932   :  { %4221 = vrcp.f32 %v3351_v37 }
 0x933   :  { %4223 = vrcp.f32 %v3355_v12 }
 0x934   :  { %4225 = vrcp.f32 %v3359_v42 }
 0x935   :  { %4227 = vrcp.f32 %v3363_v7 }
 0x936   :  { %4229 = vrcp.f32 %v3367_v46 }
 0x93b   :  { %v4214_v25 = vpop.eup %4213 }
 0x93c   :  { %v4216_v40 = vpop.eup %4215  ;;  %v3401_v6 = vmul.f32 %v4214_v25, %v5379_v5 }
 0x93d   :  { %v4218_v39 = vpop.eup %4217  ;;  %v3403_v20 = vmul.f32 %v4216_v40, %v5384_v4 }
 0x93e   :  { %v4220_v60 = vpop.eup %4219  ;;  %3458 = vperm.xlu0 %4054, %v3401_v6   ;;  %v3399_v9 = vmul.f32 %v4218_v39, %v5369_v50 }
 0x93f   :  { %3463 = vperm.xlu1 %4053, %v3403_v20   ;;  %v3405_v32 = vmul.f32 %v4220_v60, %v5388_v51  ;;  %v4222_v36 = vpop.eup %4221 }
 0x940   :  { %v3407_v5 = vmul.f32 %v4222_v36, %v5391_v29  ;;  %v4224_v58 = vpop.eup %4223 }
 0x941   :  { %v3409_v4 = vmul.f32 %v4224_v58, %v5394_v34  ;;  %v4226_v24 = vpop.eup %4225 }
 0x942   :  { %3453 = vperm.xlu0 %4054, %v3399_v9   ;;  %v3411_v54 = vmul.f32 %v4226_v24, %v5397_v10  ;;  %v4228_v50 = vpop.eup %4227 }
 0x943   :  { %3468 = vperm.xlu1 %4053, %v3405_v32   ;;  %v3413_v62 = vmul.f32 %v4228_v50, %v5400_v14  ;;  %v4230_v19 = vpop.eup %4229 }
 0x944   :  { %v3415_v51 = vmul.f32 %v4230_v19, %v5403_v30 }
 0x947   :  { %3473 = vperm.xlu1 %4053, %v3407_v5  }
 0x94b   :  { %3478 = vperm.xlu1 %4053, %v3409_v4  }
 0x94f   :  { %3483 = vperm.xlu1 %4053, %v3411_v54  }
 0x953   :  { %3488 = vperm.xlu1 %4053, %v3413_v62  }
 0x957   :  { %3493 = vperm.xlu1 %4053, %v3415_v51  }
 0x993   :  { %v3424_v56 = vpop.permute.xlu0 %3423 }
 0x994   :  { %v3722_v57 = vrot.slane %v3424_v56, %v5225_v22  ;;  %v3497_v27 = vmul.f32 %v3424_v56, %v5109_v16 }
 0x995   :  { %v3434_v55 = vpop.permute.xlu1 %3433 }
 0x996   :  { %v3499_v30 = vmul.f32 %v3434_v55, %v5101_v43  ;;  %v3730_v31 = vrot.slane %v3434_v55, %v5225_v22  ;;  %v3520_v16 = vsel %vm3512_vm3, %v3497_v27, 0.0 }
 0x997   :  { %v3429_v44 = vpop.permute.xlu0 %3428 }
 0x998   :  { %v3498_v10 = vmul.f32 %v3429_v44, %v5099_v35  ;;  %v3726_v47 = vrot.slane %v3429_v44, %v5225_v22  ;;  %v3534_v26 = vsel %vm3512_vm3, %v3499_v30, 0.0 }
 0x999   :  { %v3535_v12 = vrot.slane %v3534_v26, 4 }
 0x99a   :  { %v3527_v35 = vsel %vm3512_vm3, %v3498_v10, 0.0 }
 0x99b   :  { %v3419_v29 = vpop.permute.xlu0 %3418  ;;  %v3528_v2 = vrot.slane %v3527_v35, 4  ;;  %v3536_v46 = vadd.f32 %v3535_v12, %v3534_v26 }
 0x99c   :  { %v3718_v34 = vrot.slane %v3419_v29, %v5225_v22  ;;  %v3496_v0 = vmul.f32 %v3419_v29, %v5105_v18  ;;  %v3521_v18 = vrot.slane %v3520_v16, 4 }
 0x99d   :  { %v3529_v60 = vadd.f32 %v3528_v2, %v3527_v35 }
 0x99e   :  { %v3779_v14 = vsel %vm2992_vm10, %v3722_v57, %v3718_v34  ;;  %v3513_v43 = vsel %vm3512_vm3, %v3496_v0, 0.0  ;;  %v3522_v20 = vadd.f32 %v3521_v18, %v3520_v16 }
 0x99f   :  { %v3439_v45 = vpop.permute.xlu0 %3438  ;;  %v3780_v1 = vsel %vm2994_vm11, %v3726_v47, %v3779_v14  ;;  %v3514_v40 = vrot.slane %v3513_v43, 4  ;;  %v3530_v4 = vrot.slane %v3529_v60, 2 }
 0x9a0   :  { %v3734_v8 = vrot.slane %v3439_v45, %v5225_v22  ;;  %v3781_v11 = vsel %vm2996_vm12, %v3730_v31, %v3780_v1  ;;  %v3500_v37 = vmul.f32 %v3439_v45, %v5103_v3  ;;  %v3523_v58 = vrot.slane %v3522_v20, 2 }
 0x9a1   :  { %v3515_v36 = vadd.f32 %v3514_v40, %v3513_v43  ;;  %v3531_v51 = vadd.f32 %v3530_v4, %v3529_v60  ;;  %v5501_v45 = vrot.slane %v5158_v33, %v5321_v52 }
 0x9a2   :  { %v3782_v13 = vsel %vm2998_vm13, %v3734_v8, %v3781_v11  ;;  %v3541_v9 = vsel %vm3512_vm3, %v3500_v37, 0.0  ;;  %v3524_v19 = vadd.f32 %v3523_v58, %v3522_v20 }
 0x9a3   :  { %v3444_v17 = vpop.permute.xlu0 %3443  ;;  %v3516_v54 = vrot.slane %v3515_v36, 2  ;;  %v3532_v27 = vrot.slane %v3531_v51, 1 }
 0x9a4   :  { %v3738_v41 = vrot.slane %v3444_v17, %v5225_v22  ;;  %v3501_v42 = vmul.f32 %v3444_v17, %v5107_v53  ;;  %v3542_v53 = vrot.slane %v3541_v9, 4  ;;  %v3525_v34 = vrot.slane %v3524_v19, 1 }
 0x9a5   :  { %v3517_v29 = vadd.f32 %v3516_v54, %v3515_v36  ;;  %v3533_v8 = vadd.f32 %v3532_v27, %v3531_v51 }
 0x9a6   :  { %v3783_v25 = vsel %vm3000_vm14, %v3738_v41, %v3782_v13  ;;  %v3548_v32 = vsel %vm3512_vm3, %v3501_v42, 0.0  ;;  %v3543_v62 = vadd.f32 %v3542_v53, %v3541_v9  ;;  %v3526_v1 = vadd.f32 %v3525_v34, %v3524_v19 }
 0x9a7   :  { %v3449_v6 = vpop.permute.xlu0 %3448  ;;  %v3549_v24 = vrot.slane %v3548_v32, 4  ;;  %v3518_v14 = vrot.slane %v3517_v29, 1  ;;  %v3631_v12 = vmul.f32 %v5501_v45, %v3533_v8 }
 0x9a8   :  { %v3502_v39 = vmul.f32 %v3449_v6, %v5111_v28  ;;  %v3742_v7 = vrot.slane %v3449_v6, %v5225_v22  ;;  %v3537_v28 = vrot.slane %v3536_v46, 2  ;;  %v3544_v57 = vrot.slane %v3543_v62, 2 }
 0x9a9   :  { %v3550_v56 = vadd.f32 %v3549_v24, %v3548_v32  ;;  %v3519_v13 = vadd.f32 %v3518_v14, %v3517_v29  ;;  %v3630_v37 = vmul.f32 %v5501_v45, %v3526_v1  ;;  %v3663_v58 = vrot.slane %v3631_v12, 6 }
 0x9aa   :  { %v5496_v3 = vsel %vm3002_vm15, %v3742_v7, %v3783_v25  ;;  %v3555_v5 = vsel %vm3512_vm3, %v3502_v39, 0.0  ;;  %v3538_v44 = vadd.f32 %v3537_v28, %v3536_v46  ;;  %v3545_v31 = vadd.f32 %v3544_v57, %v3543_v62 }
 0x9ab   :  { %v3556_v50 = vrot.slane %v3555_v5, 4  ;;  %v3551_v10 = vrot.slane %v3550_v56, 2  ;;  %v3629_v20 = vmul.f32 %v5501_v45, %v3519_v13 }
 0x9ac   :  { %v3539_v47 = vrot.slane %v3538_v44, 1  ;;  %v3546_v18 = vrot.slane %v3545_v31, 1 }
 0x9ad   :  { %v3557_v55 = vadd.f32 %v3556_v50, %v3555_v5  ;;  %v3552_v16 = vadd.f32 %v3551_v10, %v3550_v56  ;;  %v3661_v5 = vrot.slane %v3630_v37, 7 }
 0x9ae   :  { %v3540_v26 = vadd.f32 %v3539_v47, %v3538_v44  ;;  %v3547_v32 = vadd.f32 %v3546_v18, %v3545_v31 }
 0x9af   :  { %v3558_v30 = vrot.slane %v3557_v55, 2  ;;  %v3553_v42 = vrot.slane %v3552_v16, 1  ;;  %v3662_v62 = vsel %vm2992_vm10, %v3661_v5, %v3629_v20 }
 0x9b0   :  { %v3632_v40 = vmul.f32 %v5501_v45, %v3540_v26  ;;  %v3633_v44 = vmul.f32 %v5501_v45, %v3547_v32 }
 0x9b1   :  { %v3559_v41 = vadd.f32 %v3558_v30, %v3557_v55  ;;  %v3554_v4 = vadd.f32 %v3553_v42, %v3552_v16 }
 0x9b2   :  { %v3665_v34 = vrot.slane %v3632_v40, 5 }
 0x9b3   :  { %v3560_v60 = vrot.slane %v3559_v41, 1  ;;  %v3634_v27 = vmul.f32 %v5501_v45, %v3554_v4 }
 0x9b5   :  { %v3561_v19 = vadd.f32 %v3560_v60, %v3559_v41  ;;  %v3669_v13 = vrot.slane %v3634_v27, 3 }
 0x9b9   :  { %v3459_v0 = vpop.permute.xlu0 %3458 }
 0x9ba   :  { %v3464_v35 = vpop.permute.xlu1 %3463  ;;  %v3750_v11 = vrot.slane %v3459_v0, %v5225_v22  ;;  %v3504_v6 = vmul.f32 %v3459_v0, %v5129_v21  ;;  %v3664_v0 = vsel %vm2994_vm11, %v3663_v58, %v3662_v62 }
 0x9bb   :  { %v3505_v17 = vmul.f32 %v3464_v35, %v5126_v49  ;;  %v3754_v43 = vrot.slane %v3464_v35, %v5225_v22  ;;  %v3635_v35 = vmul.f32 %v5501_v45, %v3561_v19  ;;  %v3666_v42 = vsel %vm2996_vm12, %v3665_v34, %v3664_v0 }
 0x9bd   :  { %v3576_v2 = vsel %vm3512_vm3, %v3505_v17, 0.0  ;;  %v3786_v33 = vsel %vm2992_vm10, %v3754_v43, %v3750_v11  ;;  %v5508_v52 = vpop.permute.xlu0 %3453  ;;  %v3667_v11 = vrot.slane %v3633_v44, 4 }
 0x9be   :  { %v3469_v25 = vpop.permute.xlu1 %3468  ;;  %v3503_v49 = vmul.f32 %v5508_v52, %v5121_v61  ;;  %v3577_v9 = vrot.slane %v3576_v2, 4 }
 0x9bf   :  { %v3506_v39 = vmul.f32 %v3469_v25, %v5136_v23  ;;  %v3758_v7 = vrot.slane %v3469_v25, %v5225_v22  ;;  %v3569_v23 = vsel %vm3512_vm3, %v3504_v6, 0.0  ;;  %v3671_v6 = vrot.slane %v3635_v35, 2 }
 0x9c0   :  { %v3562_v46 = vsel %vm3512_vm3, %v3503_v49, 0.0  ;;  %v3578_v51 = vadd.f32 %v3577_v9, %v3576_v2  ;;  %v3570_v10 = vrot.slane %v3569_v23, 4  ;;  %v3668_v60 = vsel %vm2998_vm13, %v3667_v11, %v3666_v42 }
 0x9c1   :  { %v3583_v36 = vsel %vm3512_vm3, %v3506_v39, 0.0  ;;  %v3787_v53 = vsel %vm2994_vm11, %v3758_v7, %v3786_v33  ;;  %v3563_v61 = vrot.slane %v3562_v46, 4 }
 0x9c2   :  { %v3584_v21 = vrot.slane %v3583_v36, 4  ;;  %v3474_v24 = vpop.permute.xlu1 %3473  ;;  %v3579_v1 = vrot.slane %v3578_v51, 2  ;;  %v3571_v41 = vadd.f32 %v3570_v10, %v3569_v23 }
 0x9c3   :  { %v3564_v28 = vadd.f32 %v3563_v61, %v3562_v46  ;;  %v3507_v54 = vmul.f32 %v3474_v24, %v5133_v48  ;;  %v3762_v50 = vrot.slane %v3474_v24, %v5225_v22 }
 0x9c4   :  { %v3585_v56 = vadd.f32 %v3584_v21, %v3583_v36  ;;  %v3580_v25 = vadd.f32 %v3579_v1, %v3578_v51  ;;  %v3572_v9 = vrot.slane %v3571_v41, 2  ;;  %v3670_v36 = vsel %vm3000_vm14, %v3669_v13, %v3668_v60 }
 0x9c5   :  { %v3565_v29 = vrot.slane %v3564_v28, 2  ;;  %v3590_v55 = vsel %vm3512_vm3, %v3507_v54, 0.0  ;;  %v3788_v57 = vsel %vm2996_vm12, %v3762_v50, %v3787_v53  ;;  %v3672_v23 = vsel %vm3002_vm15, %v3671_v6, %v3670_v36 }
 0x9c6   :  { %v3591_v47 = vrot.slane %v3590_v55, 4  ;;  %v3479_v48 = vpop.permute.xlu1 %3478  ;;  %v3586_v8 = vrot.slane %v3585_v56, 2  ;;  %v3581_v4 = vrot.slane %v3580_v25, 1  ;;  %v3573_v19 = vadd.f32 %v3572_v9, %v3571_v41 }
 0x9c7   :  { %v3566_v14 = vadd.f32 %v3565_v29, %v3564_v28  ;;  %v3508_v30 = vmul.f32 %v3479_v48, %v5143_v59  ;;  %v3766_v31 = vrot.slane %v3479_v48, %v5225_v22 }
 0x9c8   :  { %v3592_v16 = vadd.f32 %v3591_v47, %v3590_v55  ;;  %v3587_v49 = vadd.f32 %v3586_v8, %v3585_v56  ;;  %v3582_v34 = vadd.f32 %v3581_v4, %v3580_v25  ;;  %v3699_v4 = vld [vmem:[%s5603_s6] sm:$0xff] }
 0x9c9   :  { %v3567_v26 = vrot.slane %v3566_v14, 1  ;;  %v3597_v17 = vsel %vm3512_vm3, %v3508_v30, 0.0  ;;  %v3789_v43 = vsel %vm2998_vm13, %v3766_v31, %v3788_v57 }
 0x9ca   :  { %v3593_v18 = vrot.slane %v3592_v16, 2  ;;  %v3598_v2 = vrot.slane %v3597_v17, 4  ;;  %v3484_v59 = vpop.permute.xlu1 %3483  ;;  %v3588_v21 = vrot.slane %v3587_v49, 1 }
 0x9cb   :  { %v3568_v33 = vadd.f32 %v3567_v26, %v3566_v14  ;;  %v3509_v37 = vmul.f32 %v3484_v59, %v5140_v15  ;;  %v3770_v12 = vrot.slane %v3484_v59, %v5225_v22  ;;  %v3574_v14 = vrot.slane %v3573_v19, 1 }
 0x9cc   :  { %v3599_v40 = vadd.f32 %v3598_v2, %v3597_v17  ;;  %v3594_v46 = vadd.f32 %v3593_v18, %v3592_v16  ;;  %v3589_v10 = vadd.f32 %v3588_v21, %v3587_v49  ;;  %v3638_v16 = vmul.f32 %v5501_v45, %v3582_v34 }
 0x9cd   :  { %v3604_v39 = vsel %vm3512_vm3, %v3509_v37, 0.0  ;;  %v3790_v7 = vsel %vm3000_vm14, %v3770_v12, %v3789_v43  ;;  %v3636_v20 = vmul.f32 %v5501_v45, %v3568_v33  ;;  %v3575_v17 = vadd.f32 %v3574_v14, %v3573_v19 }
 0x9ce   :  { %v3600_v32 = vrot.slane %v3599_v40, 2  ;;  %v3489_v15 = vpop.permute.xlu1 %3488  ;;  %v3605_v53 = vrot.slane %v3604_v39, 4  ;;  %v3595_v51 = vrot.slane %v3594_v46, 1  ;;  %v3639_v26 = vmul.f32 %v5501_v45, %v3589_v10 }
 0x9cf   :  { %v3510_v61 = vmul.f32 %v3489_v15, %v5148_v38  ;;  %v3774_v5 = vrot.slane %v3489_v15, %v5225_v22  ;;  %v3673_v58 = vrot.slane %v3636_v20, 1  ;;  %v3675_v2 = vrot.slane %v3638_v16, 7 }
 0x9d0   :  { %v3601_v24 = vadd.f32 %v3600_v32, %v3599_v40  ;;  %v3606_v28 = vadd.f32 %v3605_v53, %v3604_v39  ;;  %v3596_v30 = vadd.f32 %v3595_v51, %v3594_v46  ;;  %v3677_v12 = vrot.slane %v3639_v26, 6 }
 0x9d1   :  { %v3611_v54 = vsel %vm3512_vm3, %v3510_v61, 0.0  ;;  %v3674_v50 = vsel %vm3004_vm0, %v3673_v58, %v3672_v23  ;;  %v5550_v62 = vsel %vm3002_vm15, %v3774_v5, %v3790_v7  ;;  %v3637_v42 = vmul.f32 %v5501_v45, %v3575_v17 }
 0x9d2   :  { %v3612_v56 = vrot.slane %v3611_v54, 4  ;;  %v5552_v38 = vpop.permute.xlu1 %3493  ;;  %v3691_v44 = vsel %vm102_vm1, %v3674_v50, 0.0  ;;  %v3602_v29 = vrot.slane %v3601_v24, 1  ;;  %v3607_v55 = vrot.slane %v3606_v28, 2  ;;  %v3700_v50 = vld [vmem:[%s5603_s6 + $0x8] sm:$0xff] }
 0x9d3   :  { %v3511_v57 = vmul.f32 %v5552_v38, %v5150_v63  ;;  %3692 = vadd.xlane.f32.xlu0 %v3691_v44  ;;  %v3640_v43 = vmul.f32 %v5501_v45, %v3596_v30  ;;  %v3676_v39 = vsel %vm2992_vm10, %v3675_v2, %v3637_v42  ;;  %v3778_v14 = vrot.slane %v5552_v38, %v5225_v22 }
 0x9d4   :  { %v3613_v27 = vadd.f32 %v3612_v56, %v3611_v54  ;;  %v3608_v47 = vadd.f32 %v3607_v55, %v3606_v28  ;;  %v3603_v1 = vadd.f32 %v3602_v29, %v3601_v24  ;;  %v3678_v60 = vsel %vm2994_vm11, %v3677_v12, %v3676_v39 }
 0x9d5   :  { %v3618_v48 = vsel %vm3512_vm3, %v3511_v57, 0.0  ;;  %v3679_v25 = vrot.slane %v3640_v43, 5 }
 0x9d6   :  { %v3614_v31 = vrot.slane %v3613_v27, 2  ;;  %v3619_v0 = vrot.slane %v3618_v48, 4  ;;  %v3609_v8 = vrot.slane %v3608_v47, 1  ;;  %v3641_v18 = vmul.f32 %v5501_v45, %v3603_v1 }
 0x9d7   :  { %v3680_v32 = vsel %vm2996_vm12, %v3679_v25, %v3678_v60 }
 0x9d8   :  { %v3615_v35 = vadd.f32 %v3614_v31, %v3613_v27  ;;  %v3620_v11 = vadd.f32 %v3619_v0, %v3618_v48  ;;  %v3610_v63 = vadd.f32 %v3609_v8, %v3608_v47  ;;  %v3681_v6 = vrot.slane %v3641_v18, 4 }
 0x9d9   :  { %v3746_v27 = vrot.slane %v5508_v52, %v5225_v22  ;;  %v3792_v31 = vsel %vm3004_vm0, %v3778_v14, %v5550_v62 }
 0x9da   :  { %v3616_v13 = vrot.slane %v3615_v35, 1  ;;  %v3621_v41 = vrot.slane %v3620_v11, 2  ;;  %v3642_v59 = vmul.f32 %v5501_v45, %v3610_v63  ;;  %v3682_v15 = vsel %vm2998_vm13, %v3681_v6, %v3680_v32 }
 0x9db   :  { %v3785_v47 = vsel %vm3004_vm0, %v3746_v27, %v5496_v3 }
 0x9dc   :  { %v3617_v33 = vadd.f32 %v3616_v13, %v3615_v35  ;;  %v3622_v37 = vadd.f32 %v3621_v41, %v3620_v11  ;;  %v3683_v7 = vrot.slane %v3642_v59, 3 }
 0x9de   :  { %v3623_v49 = vrot.slane %v3622_v37, 1  ;;  %v3643_v40 = vmul.f32 %v5501_v45, %v3617_v33  ;;  %v3684_v36 = vsel %vm3000_vm14, %v3683_v7, %v3682_v15 }
 0x9e0   :  { %v3624_v20 = vadd.f32 %v3623_v49, %v3622_v37  ;;  %v3685_v9 = vrot.slane %v3643_v40, 2 }
 0x9e2   :  { %v3644_v46 = vmul.f32 %v5501_v45, %v3624_v20  ;;  %v3686_v61 = vsel %vm3002_vm15, %v3685_v9, %v3684_v36 }
 0x9e4   :  { %v3687_v53 = vrot.slane %v3644_v46, 1 }
 0x9e6   :  { %v3688_v5 = vsel %vm3004_vm0, %v3687_v53, %v3686_v61 }
 0x9e7   :  { %v3694_v58 = vsel %vm102_vm1, %v3688_v5, 0.0  ;;  %vm3805_vm1 = vcmask 39936  }
 0x9e8   :  { %3695 = vadd.xlane.f32.xlu1 %v3694_v58 }
 0xa5c   :  { %v3693_v21 = vpop.xlane.xlu0 %3692 }
 0xa5d   :  { %v3697_v45 = vmax.f32 %v3693_v21, 0.0 }
 0xa5f   :  { %v3701_v24 = vadd.f32 %v3699_v4, %v3697_v45 }
 0xa61   :  { %v3858_v23 = vmul.f32 -1.442695, %v3701_v24 }
 0xa63   :  { %4231 = vpow2.f32 %v3858_v23 }
 0xa70   :  { %v4232_v28 = vpop.eup %4231 }
 0xa71   :  { %v3709_v54 = vadd.f32 1.0, %v4232_v28  ;;  %v3696_v19 = vpop.xlane.xlu1 %3695 }
 0xa72   :  { %v3698_v51 = vmax.f32 %v3696_v19, 0.0 }
 0xa73   :  { %4233 = vrcp.f32 %v3709_v54 }
 0xa74   :  { %v3702_v56 = vadd.f32 %v3700_v50, %v3698_v51 }
 0xa76   :  { %v3859_v44 = vmul.f32 -1.442695, %v3702_v56 }
 0xa78   :  { %4235 = vpow2.f32 %v3859_v44 }
 0xa80   :  { %v4234_v29 = vpop.eup %4233 }
 0xa81   :  { %3797 = vrot.lane.b32.xlu0 %v4234_v29, %s4246_s18 }
 0xa85   :  { %v4236_v55 = vpop.eup %4235 }
 0xa86   :  { %v3710_v57 = vadd.f32 1.0, %v4236_v55 }
 0xa88   :  { %4237 = vrcp.f32 %v3710_v57 }
 0xa95   :  { %v4238_v34 = vpop.eup %4237 }
 0xa96   :  { %3799 = vrot.lane.b32.xlu1 %v4238_v34, %s4246_s18 }
 0xaf3   :  { %v3798_v10 = vpop.permute.xlu0 %3797 }
 0xaf4   :  { %v3803_v48 = vsel %vm3015_vm2, %v3785_v47, %v3798_v10 }
 0xaf5   :  { %3806 = vst.msk [vmem:[%s5604_s8] sm:$0xff] %vm3805_vm1, %v3803_v48 }
 0xb08   :  { %v3800_v30 = vpop.permute.xlu1 %3799 }
 0xb09   :  { %v3804_v52 = vsel %vm3015_vm2, %v3792_v31, %v3800_v30 }
 0xb0a   :  { %3807 = vst.msk [vmem:[%s5604_s8 + $0x8] sm:$0xff] %vm3805_vm1, %v3804_v52 }

</bundles_post_ra>
